<compile_context>
chip_gen: v7x
topology: tpu7x:2x2x1
jax: 0.10.0
libtpu: 0.0.40
codegen_flags: <defaults>
</compile_context>

<pallas_src>
import jax
import jax.numpy as jnp
from jax.experimental import pallas as pl
from jax.experimental.pallas import tpu as pltpu


def _make_fused_kernel(C, HW, H0, O):
    """Builds the fused kernel; C/HW/H0/O are static for in-kernel masks/splits."""
    F = C * HW
    f32 = jnp.float32
    bf16 = jnp.bfloat16

    def kernel(xf_ref, bn2ds_ref, bn2dt_ref,
               sew1_ref, seb1_ref, sew2_ref, seb2_ref, sew3_ref, seb3_ref,
               w1_ref, b1_ref, bn1s_ref, bn1t_ref,
               w2_ref, b2_ref, bn2s_ref, bn2t_ref,
               w3_ref, b3_ref,
               hw1_ref, hb1_ref, hw2_ref, hb2_ref, hw3_ref, hb3_ref,
               out_ref):
        # BatchNorm2d (eval) folded to per-flattened-feature scale/shift (f32).
        x = xf_ref[...].astype(f32) * bn2ds_ref[...] + bn2dt_ref[...]     # (TB, F)
        x_bf = x.astype(bf16)

        # --- In-kernel 0/1 channel-selection masks (no HBM constants, exact in bf16).
        f_row = jax.lax.broadcasted_iota(jnp.int32, (F, C), 0)
        c_col = jax.lax.broadcasted_iota(jnp.int32, (F, C), 1)
        pool_m = jnp.where((f_row >= c_col * HW) & (f_row < (c_col + 1) * HW),
                           1.0, 0.0).astype(bf16)                          # (F, C)
        c_row = jax.lax.broadcasted_iota(jnp.int32, (C, F), 0)
        f_col = jax.lax.broadcasted_iota(jnp.int32, (C, F), 1)
        expand_m = jnp.where((f_col >= c_row * HW) & (f_col < (c_row + 1) * HW),
                             1.0, 0.0).astype(bf16)                        # (C, F)

        # --- SE block: AdaptiveAvgPool2d(1) via mask matmul (1/HW scale kept f32),
        #     1x1 convs == channel-axis linears, sigmoid gate, rescale.
        pooled = jnp.dot(x_bf, pool_m, preferred_element_type=f32) * (1.0 / HW)  # (TB, C)
        h = jnp.maximum(jnp.dot(pooled.astype(bf16), sew1_ref[...],
                                preferred_element_type=f32) + seb1_ref[...], 0.0)
        h = jnp.maximum(jnp.dot(h.astype(bf16), sew2_ref[...],
                                preferred_element_type=f32) + seb2_ref[...], 0.0)
        se = jax.nn.sigmoid(jnp.dot(h.astype(bf16), sew3_ref[...],
                                    preferred_element_type=f32) + seb3_ref[...])  # (TB, C)
        gate = jnp.dot(se.astype(bf16), expand_m, preferred_element_type=f32)     # (TB, F)
        xs = (x * gate).astype(bf16)                                       # SE rescale

        # --- FC stack; fc1 || residual_connection1 fused into one matmul.
        z1 = jnp.dot(xs, w1_ref[...], preferred_element_type=f32) + b1_ref[...]   # (TB, H0+O)
        res1 = z1[:, H0:]                                                  # 128-aligned split
        h1 = jnp.maximum(z1[:, :H0] * bn1s_ref[...] + bn1t_ref[...], 0.0)  # BN1 + ReLU
        # (dropout: eval-mode identity)
        h2 = jnp.dot(h1.astype(bf16), w2_ref[...],
                     preferred_element_type=f32) + b2_ref[...]             # (TB, H1)
        h2 = jnp.maximum(h2 * bn2s_ref[...] + bn2t_ref[...], 0.0)          # BN2 + ReLU
        # fc3 || residual_connection2 fused into one matmul.
        z3 = jnp.dot(h2.astype(bf16), w3_ref[...],
                     preferred_element_type=f32) + b3_ref[...]             # (TB, 2*O)
        y = jnp.maximum(z3[:, :O], 0.0)
        res2 = z3[:, O:]
        block_out = (y + res1 + res2).astype(bf16)                         # (TB, O)

        # --- CAEClassifier.fc2 head: Linear/ReLU x2 + final Linear (lane-padded to 128).
        g = jnp.maximum(jnp.dot(block_out, hw1_ref[...],
                                preferred_element_type=f32) + hb1_ref[...], 0.0)
        g = jnp.maximum(jnp.dot(g.astype(bf16), hw2_ref[...],
                                preferred_element_type=f32) + hb2_ref[...], 0.0)
        out_ref[...] = jnp.dot(g.astype(bf16), hw3_ref[...],
                               preferred_element_type=f32) + hb3_ref[...]

    return kernel


@jax.jit
def cae_classifier_forward(x, p):
    """Fused BatchNorm2d + ResidualSEBlockFC + fc2-head forward (eval mode)."""
    B, C, H, W = x.shape
    HW = H * W
    F = C * HW
    H0 = p["fc1_w"].shape[1]
    H1 = p["fc2_w"].shape[1]
    O = p["fc3_w"].shape[1]
    Cr = p["se_w1"].shape[1]
    D1 = p["head1_w"].shape[1]
    D2 = p["head2_w"].shape[1]
    NC = p["head3_w"].shape[1]
    NCp = pl.cdiv(NC, 128) * 128      # lane-dense output width

    # In-kernel column splits are free only on 128-lane boundaries.
    assert F % 128 == 0, f"F={F} must be a multiple of 128 (C must be mult. of 16 for 6x12 maps)"
    assert H0 % 128 == 0 and O % 128 == 0, "fc1/fc3 split points must be 128-multiples"

    bf16 = jnp.bfloat16
    # NCHW flatten (== torch.nn.Flatten) -> lane-dense (B, F); bf16 halves the
    # only per-step-varying DMA stream (BN/epilogue stays f32 in-kernel).
    xf = x.reshape(B, F).astype(bf16)

    # Batch tiling: single full-batch block for small B, 128-row tiles otherwise.
    # No padding: Pallas masks the ragged last block.
    tile_b = B if B <= 128 else 128
    n_tiles = pl.cdiv(B, tile_b)

    # Eval-mode BatchNorm2d folded to per-flattened-feature scale/shift (tiny, f32).
    bn2d_scale_f = jnp.repeat(p["bn2d_scale"], HW, axis=1)                 # (1, F)
    bn2d_shift_f = jnp.repeat(p["bn2d_shift"], HW, axis=1)                 # (1, F)

    # Concatenate matmuls sharing an LHS; all weights stored bf16 (f32 accumulate).
    w1cat = jnp.concatenate([p["fc1_w"], p["r1_w"]], axis=1).astype(bf16)  # (F, H0+O)
    b1cat = jnp.concatenate([p["fc1_b"], p["r1_b"]], axis=1)
    w3cat = jnp.concatenate([p["fc3_w"], p["r2_w"]], axis=1).astype(bf16)  # (H1, 2*O)
    b3cat = jnp.concatenate([p["fc3_b"], p["r2_b"]], axis=1)
    w2 = p["fc2_w"].astype(bf16)

    # Final head weight/bias zero-padded to a lane-dense 128-wide output.
    hw3 = jnp.pad(p["head3_w"], ((0, 0), (0, NCp - NC))).astype(bf16)
    hb3 = jnp.pad(p["head3_b"], ((0, 0), (0, NCp - NC)))

    inputs = [
        xf, bn2d_scale_f, bn2d_shift_f,
        p["se_w1"].astype(bf16), p["se_b1"],
        p["se_w2"].astype(bf16), p["se_b2"],
        p["se_w3"].astype(bf16), p["se_b3"],
        w1cat, b1cat, p["bn1_scale"], p["bn1_shift"],
        w2, p["fc2_b"], p["bn2_scale"], p["bn2_shift"],
        w3cat, b3cat,
        p["head1_w"].astype(bf16), p["head1_b"],
        p["head2_w"].astype(bf16), p["head2_b"],
        hw3, hb3,
    ]

    # Activation tiled over batch; all weights map to block (0, 0) every step,
    # so they stay resident in VMEM across the grid.
    # TODO(synk): if the pipeline double-buffers the invariant weight blocks at
    # production scale, add pipeline_mode=pl.Buffered(1) to the weight specs.
    in_specs = [pl.BlockSpec((tile_b, F), lambda b: (b, 0))]
    in_specs += [pl.BlockSpec(a.shape, lambda b: (0, 0)) for a in inputs[1:]]

    # Only shard batch tiles across TensorCores when the per-TC work amortizes
    # a full duplicate weight DMA (small B stays on one core).
    dims = ("parallel",) if n_tiles >= 4 else ("arbitrary",)

    # VMEM budget: resident weights + double-buffered activation tiles + headroom.
    weight_bytes = sum(int(a.size) * a.dtype.itemsize for a in inputs[1:])
    act_bytes = 2 * (tile_b * F * 2 + tile_b * NCp * 4)
    vmem_limit = int(min(max(2 * (weight_bytes + act_bytes), 32 << 20), 64 << 20))

    flops = 2 * B * (F * C + C * Cr + Cr * Cr + Cr * C + C * F
                     + F * (H0 + O) + H0 * H1 + H1 * 2 * O
                     + O * D1 + D1 * D2 + D2 * NCp)
    bytes_accessed = sum(int(a.size) * a.dtype.itemsize for a in inputs) + B * NCp * 4
    cost = pl.CostEstimate(flops=int(flops), transcendentals=int(B * C),
                           bytes_accessed=int(bytes_accessed))

    out = pl.pallas_call(
        _make_fused_kernel(C, HW, H0, O),
        out_shape=jax.ShapeDtypeStruct((B, NCp), jnp.float32),
        grid_spec=pltpu.PrefetchScalarGridSpec(
            num_scalar_prefetch=0,
            grid=(n_tiles,),
            in_specs=in_specs,
            out_specs=pl.BlockSpec((tile_b, NCp), lambda b: (b, 0)),
        ),
        compiler_params=pltpu.CompilerParams(
            dimension_semantics=dims,
            vmem_limit_bytes=vmem_limit,
        ),
        cost_estimate=cost,
    )(*inputs)
    return out[:, :NC]


# ---------------------------------------------------------------------------
# Deterministic synthetic parameters (shapes match the module structure).
# NOTE: weights are stored (in, out); a real PyTorch checkpoint (out, in) must
# be transposed before use.
# ---------------------------------------------------------------------------
def init_params(key, C, reduction_ratio, hidden_dims, output_dim, head_dims,
                num_classes, H=6, W=12):
    Cr = max(C // reduction_ratio, 1)
    F = C * H * W
    H0, H1 = hidden_dims
    O = output_dim
    D1, D2 = head_dims
    keys = iter(jax.random.split(key, 24))

    def w(shape, scale=0.05):
        return jax.random.normal(next(keys), shape, jnp.float32) * scale

    p = dict(
        # 1x1 convs on pooled channels == linear layers on the channel axis.
        se_w1=w((C, Cr)),  se_b1=w((1, Cr)),
        se_w2=w((Cr, Cr)), se_b2=w((1, Cr)),
        se_w3=w((Cr, C)),  se_b3=w((1, C)),
        fc1_w=w((F, H0)),  fc1_b=w((1, H0)),
        fc2_w=w((H0, H1)), fc2_b=w((1, H1)),
        fc3_w=w((H1, O)),  fc3_b=w((1, O)),
        r1_w=w((F, O)),    r1_b=w((1, O)),
        r2_w=w((H1, O)),   r2_b=w((1, O)),
        # CAEClassifier.fc2 head (he_init fills biases with 0.01).
        head1_w=w((O, D1)),  head1_b=jnp.full((1, D1), 0.01, jnp.float32),
        head2_w=w((D1, D2)), head2_b=jnp.full((1, D2), 0.01, jnp.float32),
        head3_w=w((D2, num_classes)),
        head3_b=jnp.full((1, num_classes), 0.01, jnp.float32),
    )
    # Eval-mode BatchNorm at fresh init: gamma=1, beta=0, mean=0, var=1.
    eps = 1e-5
    for name, dim in (("bn2d", C), ("bn1", H0), ("bn2", H1)):
        gamma = jnp.ones((1, dim), jnp.float32)
        beta = jnp.zeros((1, dim), jnp.float32)
        mean = jnp.zeros((1, dim), jnp.float32)
        var = jnp.ones((1, dim), jnp.float32)
        scale = gamma / jnp.sqrt(var + eps)
        p[f"{name}_scale"] = scale
        p[f"{name}_shift"] = beta - mean * scale
    return p


# ---------------------------------------------------------------------------
# Pure-JAX f32 reference (module eval-mode semantics) for correctness checking.
# ---------------------------------------------------------------------------
def reference_forward(x, p):
    B, C, H, W = x.shape
    xb = x * p["bn2d_scale"].reshape(1, C, 1, 1) + p["bn2d_shift"].reshape(1, C, 1, 1)
    pooled = jnp.mean(xb, axis=(2, 3))                                  # (B, C)
    h = jnp.maximum(pooled @ p["se_w1"] + p["se_b1"], 0.0)
    h = jnp.maximum(h @ p["se_w2"] + p["se_b2"], 0.0)
    se = jax.nn.sigmoid(h @ p["se_w3"] + p["se_b3"])
    xs = xb * se[:, :, None, None]
    xf = xs.reshape(B, -1)
    res1 = xf @ p["r1_w"] + p["r1_b"]
    h = jnp.maximum((xf @ p["fc1_w"] + p["fc1_b"]) * p["bn1_scale"] + p["bn1_shift"], 0.0)
    h = jnp.maximum((h @ p["fc2_w"] + p["fc2_b"]) * p["bn2_scale"] + p["bn2_shift"], 0.0)
    res2 = h @ p["r2_w"] + p["r2_b"]
    y = jnp.maximum(h @ p["fc3_w"] + p["fc3_b"], 0.0)
    out = y + res1 + res2
    g = jnp.maximum(out @ p["head1_w"] + p["head1_b"], 0.0)
    g = jnp.maximum(g @ p["head2_w"] + p["head2_b"], 0.0)
    return g @ p["head3_w"] + p["head3_b"]


if __name__ == "__main__":
    # Small shapes consistent with the module: H=6, W=12 are fixed by fc1's
    # in-dim (C*6*12); C / hidden dims / output / head dims scaled down from
    # 512 / [1024, 512] / 256 / (128, 64) / 2 while keeping 128-multiples where
    # the kernel requires them.
    B, C, H, W = 16, 16, 6, 12
    reduction_ratio = 8
    hidden_dims = (256, 128)
    output_dim = 128
    head_dims = (64, 32)
    num_classes = 2

    key = jax.random.PRNGKey(0)
    kx, kp = jax.random.split(key)
    x = jax.random.normal(kx, (B, C, H, W), jnp.float32)
    params = init_params(kp, C, reduction_ratio, hidden_dims, output_dim,
                         head_dims, num_classes, H, W)

    out = cae_classifier_forward(x, params)
    out = jax.block_until_ready(out)
    ref = reference_forward(x, params)

    assert out.shape == (B, num_classes)
    # bf16 activation DMA + bf16 MXU weights -> looser tolerance than pure f32.
    assert jnp.allclose(out, ref, atol=5e-2, rtol=5e-2), "mismatch vs reference"
    print("KERNEL_OK")
</pallas_src>

<mosaic_0001>
module attributes {stable_mosaic.version = 11 : i64} {
  func.func @kernel(%arg0: i32, %arg1: memref<16x1152xbf16, #tpu.memory_space<vmem>>, %arg2: memref<1x1152xf32, #tpu.memory_space<vmem>>, %arg3: memref<1x1152xf32, #tpu.memory_space<vmem>>, %arg4: memref<16x2xbf16, #tpu.memory_space<vmem>>, %arg5: memref<1x2xf32, #tpu.memory_space<vmem>>, %arg6: memref<2x2xbf16, #tpu.memory_space<vmem>>, %arg7: memref<1x2xf32, #tpu.memory_space<vmem>>, %arg8: memref<2x16xbf16, #tpu.memory_space<vmem>>, %arg9: memref<1x16xf32, #tpu.memory_space<vmem>>, %arg10: memref<1152x384xbf16, #tpu.memory_space<vmem>>, %arg11: memref<1x384xf32, #tpu.memory_space<vmem>>, %arg12: memref<1x256xf32, #tpu.memory_space<vmem>>, %arg13: memref<1x256xf32, #tpu.memory_space<vmem>>, %arg14: memref<256x128xbf16, #tpu.memory_space<vmem>>, %arg15: memref<1x128xf32, #tpu.memory_space<vmem>>, %arg16: memref<1x128xf32, #tpu.memory_space<vmem>>, %arg17: memref<1x128xf32, #tpu.memory_space<vmem>>, %arg18: memref<128x256xbf16, #tpu.memory_space<vmem>>, %arg19: memref<1x256xf32, #tpu.memory_space<vmem>>, %arg20: memref<128x64xbf16, #tpu.memory_space<vmem>>, %arg21: memref<1x64xf32, #tpu.memory_space<vmem>>, %arg22: memref<64x32xbf16, #tpu.memory_space<vmem>>, %arg23: memref<1x32xf32, #tpu.memory_space<vmem>>, %arg24: memref<32x128xbf16, #tpu.memory_space<vmem>>, %arg25: memref<1x128xf32, #tpu.memory_space<vmem>>, %arg26: memref<16x128xf32, #tpu.memory_space<vmem>>) attributes {dimension_semantics = [#tpu.dimension_semantics<arbitrary>], iteration_bounds = array<i64: 1>, scalar_prefetch = 0 : i64, scratch_operands = 0 : i64, tpu.core_type = #tpu.core_type<tc>, window_params = [{transform_indices = @transform_0, window_bounds = array<i64: 16, 1152>}, {pipeline_mode = #tpu.pipeline_mode<synchronous>, transform_indices = @transform_1, window_bounds = array<i64: 1, 1152>}, {pipeline_mode = #tpu.pipeline_mode<synchronous>, transform_indices = @transform_2, window_bounds = array<i64: 1, 1152>}, {pipeline_mode = #tpu.pipeline_mode<synchronous>, transform_indices = @transform_3, window_bounds = array<i64: 16, 2>}, {pipeline_mode = #tpu.pipeline_mode<synchronous>, transform_indices = @transform_4, window_bounds = array<i64: 1, 2>}, {pipeline_mode = #tpu.pipeline_mode<synchronous>, transform_indices = @transform_5, window_bounds = array<i64: 2, 2>}, {pipeline_mode = #tpu.pipeline_mode<synchronous>, transform_indices = @transform_6, window_bounds = array<i64: 1, 2>}, {pipeline_mode = #tpu.pipeline_mode<synchronous>, transform_indices = @transform_7, window_bounds = array<i64: 2, 16>}, {pipeline_mode = #tpu.pipeline_mode<synchronous>, transform_indices = @transform_8, window_bounds = array<i64: 1, 16>}, {pipeline_mode = #tpu.pipeline_mode<synchronous>, transform_indices = @transform_9, window_bounds = array<i64: 1152, 384>}, {pipeline_mode = #tpu.pipeline_mode<synchronous>, transform_indices = @transform_10, window_bounds = array<i64: 1, 384>}, {pipeline_mode = #tpu.pipeline_mode<synchronous>, transform_indices = @transform_11, window_bounds = array<i64: 1, 256>}, {pipeline_mode = #tpu.pipeline_mode<synchronous>, transform_indices = @transform_12, window_bounds = array<i64: 1, 256>}, {pipeline_mode = #tpu.pipeline_mode<synchronous>, transform_indices = @transform_13, window_bounds = array<i64: 256, 128>}, {pipeline_mode = #tpu.pipeline_mode<synchronous>, transform_indices = @transform_14, window_bounds = array<i64: 1, 128>}, {pipeline_mode = #tpu.pipeline_mode<synchronous>, transform_indices = @transform_15, window_bounds = array<i64: 1, 128>}, {pipeline_mode = #tpu.pipeline_mode<synchronous>, transform_indices = @transform_16, window_bounds = array<i64: 1, 128>}, {pipeline_mode = #tpu.pipeline_mode<synchronous>, transform_indices = @transform_17, window_bounds = array<i64: 128, 256>}, {pipeline_mode = #tpu.pipeline_mode<synchronous>, transform_indices = @transform_18, window_bounds = array<i64: 1, 256>}, {pipeline_mode = #tpu.pipeline_mode<synchronous>, transform_indices = @transform_19, window_bounds = array<i64: 128, 64>}, {pipeline_mode = #tpu.pipeline_mode<synchronous>, transform_indices = @transform_20, window_bounds = array<i64: 1, 64>}, {pipeline_mode = #tpu.pipeline_mode<synchronous>, transform_indices = @transform_21, window_bounds = array<i64: 64, 32>}, {pipeline_mode = #tpu.pipeline_mode<synchronous>, transform_indices = @transform_22, window_bounds = array<i64: 1, 32>}, {pipeline_mode = #tpu.pipeline_mode<synchronous>, transform_indices = @transform_23, window_bounds = array<i64: 32, 128>}, {pipeline_mode = #tpu.pipeline_mode<synchronous>, transform_indices = @transform_24, window_bounds = array<i64: 1, 128>}, {transform_indices = @transform_25, window_bounds = array<i64: 16, 128>}]} {
    %c0 = arith.constant 0 : index
    %c0_0 = arith.constant 0 : index
    %0 = vector.load %arg1[%c0, %c0_0] : memref<16x1152xbf16, #tpu.memory_space<vmem>>, vector<16x1152xbf16>
    %1 = arith.extf %0 : vector<16x1152xbf16> to vector<16x1152xf32>
    %c0_1 = arith.constant 0 : index
    %c0_2 = arith.constant 0 : index
    %2 = vector.load %arg2[%c0_1, %c0_2] : memref<1x1152xf32, #tpu.memory_space<vmem>>, vector<1x1152xf32>
    %3 = vector.broadcast %2 : vector<1x1152xf32> to vector<16x1152xf32>
    %4 = arith.mulf %1, %3 : vector<16x1152xf32>
    %c0_3 = arith.constant 0 : index
    %c0_4 = arith.constant 0 : index
    %5 = vector.load %arg3[%c0_3, %c0_4] : memref<1x1152xf32, #tpu.memory_space<vmem>>, vector<1x1152xf32>
    %6 = vector.broadcast %5 : vector<1x1152xf32> to vector<16x1152xf32>
    %7 = arith.addf %4, %6 : vector<16x1152xf32>
    %8 = arith.truncf %7 : vector<16x1152xf32> to vector<16x1152xbf16>
    %9 = tpu.iota {dimensions = array<i32: 0>} : vector<1152x16xi32>
    %10 = tpu.iota {dimensions = array<i32: 1>} : vector<1152x16xi32>
    %c72_i32 = arith.constant 72 : i32
    %11 = vector.broadcast %c72_i32 : i32 to vector<1152x16xi32>
    %12 = arith.muli %10, %11 : vector<1152x16xi32>
    %13 = arith.cmpi sge, %9, %12 : vector<1152x16xi32>
    %c1_i32 = arith.constant 1 : i32
    %14 = vector.broadcast %c1_i32 : i32 to vector<1152x16xi32>
    %15 = arith.addi %10, %14 : vector<1152x16xi32>
    %c72_i32_5 = arith.constant 72 : i32
    %16 = vector.broadcast %c72_i32_5 : i32 to vector<1152x16xi32>
    %17 = arith.muli %15, %16 : vector<1152x16xi32>
    %18 = arith.cmpi slt, %9, %17 : vector<1152x16xi32>
    %19 = arith.andi %13, %18 : vector<1152x16xi1>
    %cst = arith.constant 1.000000e+00 : f32
    %cst_6 = arith.constant 0.000000e+00 : f32
    %20 = vector.broadcast %cst : f32 to vector<1152x16xf32>
    %21 = vector.broadcast %cst_6 : f32 to vector<1152x16xf32>
    %22 = arith.select %19, %20, %21 : vector<1152x16xi1>, vector<1152x16xf32>
    %23 = arith.truncf %22 : vector<1152x16xf32> to vector<1152x16xbf16>
    %24 = tpu.iota {dimensions = array<i32: 0>} : vector<16x1152xi32>
    %25 = tpu.iota {dimensions = array<i32: 1>} : vector<16x1152xi32>
    %c72_i32_7 = arith.constant 72 : i32
    %26 = vector.broadcast %c72_i32_7 : i32 to vector<16x1152xi32>
    %27 = arith.muli %24, %26 : vector<16x1152xi32>
    %28 = arith.cmpi sge, %25, %27 : vector<16x1152xi32>
    %c1_i32_8 = arith.constant 1 : i32
    %29 = vector.broadcast %c1_i32_8 : i32 to vector<16x1152xi32>
    %30 = arith.addi %24, %29 : vector<16x1152xi32>
    %c72_i32_9 = arith.constant 72 : i32
    %31 = vector.broadcast %c72_i32_9 : i32 to vector<16x1152xi32>
    %32 = arith.muli %30, %31 : vector<16x1152xi32>
    %33 = arith.cmpi slt, %25, %32 : vector<16x1152xi32>
    %34 = arith.andi %28, %33 : vector<16x1152xi1>
    %cst_10 = arith.constant 1.000000e+00 : f32
    %cst_11 = arith.constant 0.000000e+00 : f32
    %35 = vector.broadcast %cst_10 : f32 to vector<16x1152xf32>
    %36 = vector.broadcast %cst_11 : f32 to vector<16x1152xf32>
    %37 = arith.select %34, %35, %36 : vector<16x1152xi1>, vector<16x1152xf32>
    %38 = arith.truncf %37 : vector<16x1152xf32> to vector<16x1152xbf16>
    %cst_12 = arith.constant dense<0.000000e+00> : vector<16x16xf32>
    %39 = tpu.matmul %8, %23, %cst_12 {dimension_numbers = #tpu.dot_dimension_numbers<[1], [0], [0], [1], [0, 0, 1, 1], [], []>} : vector<16x1152xbf16>, vector<1152x16xbf16>, vector<16x16xf32> -> vector<16x16xf32>
    %cst_13 = arith.constant 0.013888889 : f32
    %40 = vector.broadcast %cst_13 : f32 to vector<16x16xf32>
    %41 = arith.mulf %39, %40 : vector<16x16xf32>
    %42 = arith.truncf %41 : vector<16x16xf32> to vector<16x16xbf16>
    %c0_14 = arith.constant 0 : index
    %c0_15 = arith.constant 0 : index
    %43 = vector.load %arg4[%c0_14, %c0_15] : memref<16x2xbf16, #tpu.memory_space<vmem>>, vector<16x2xbf16>
    %cst_16 = arith.constant dense<0.000000e+00> : vector<16x2xf32>
    %44 = tpu.matmul %42, %43, %cst_16 {dimension_numbers = #tpu.dot_dimension_numbers<[1], [0], [0], [1], [0, 0, 1, 1], [], []>} : vector<16x16xbf16>, vector<16x2xbf16>, vector<16x2xf32> -> vector<16x2xf32>
    %c0_17 = arith.constant 0 : index
    %c0_18 = arith.constant 0 : index
    %45 = vector.load %arg5[%c0_17, %c0_18] : memref<1x2xf32, #tpu.memory_space<vmem>>, vector<1x2xf32>
    %46 = vector.broadcast %45 : vector<1x2xf32> to vector<16x2xf32>
    %47 = arith.addf %44, %46 : vector<16x2xf32>
    %cst_19 = arith.constant 0.000000e+00 : f32
    %48 = vector.broadcast %cst_19 : f32 to vector<16x2xf32>
    %49 = arith.maximumf %47, %48 : vector<16x2xf32>
    %50 = arith.truncf %49 : vector<16x2xf32> to vector<16x2xbf16>
    %c0_20 = arith.constant 0 : index
    %c0_21 = arith.constant 0 : index
    %51 = vector.load %arg6[%c0_20, %c0_21] : memref<2x2xbf16, #tpu.memory_space<vmem>>, vector<2x2xbf16>
    %cst_22 = arith.constant dense<0.000000e+00> : vector<16x2xf32>
    %52 = tpu.matmul %50, %51, %cst_22 {dimension_numbers = #tpu.dot_dimension_numbers<[1], [0], [0], [1], [0, 0, 1, 1], [], []>} : vector<16x2xbf16>, vector<2x2xbf16>, vector<16x2xf32> -> vector<16x2xf32>
    %c0_23 = arith.constant 0 : index
    %c0_24 = arith.constant 0 : index
    %53 = vector.load %arg7[%c0_23, %c0_24] : memref<1x2xf32, #tpu.memory_space<vmem>>, vector<1x2xf32>
    %54 = vector.broadcast %53 : vector<1x2xf32> to vector<16x2xf32>
    %55 = arith.addf %52, %54 : vector<16x2xf32>
    %cst_25 = arith.constant 0.000000e+00 : f32
    %56 = vector.broadcast %cst_25 : f32 to vector<16x2xf32>
    %57 = arith.maximumf %55, %56 : vector<16x2xf32>
    %58 = arith.truncf %57 : vector<16x2xf32> to vector<16x2xbf16>
    %c0_26 = arith.constant 0 : index
    %c0_27 = arith.constant 0 : index
    %59 = vector.load %arg8[%c0_26, %c0_27] : memref<2x16xbf16, #tpu.memory_space<vmem>>, vector<2x16xbf16>
    %cst_28 = arith.constant dense<0.000000e+00> : vector<16x16xf32>
    %60 = tpu.matmul %58, %59, %cst_28 {dimension_numbers = #tpu.dot_dimension_numbers<[1], [0], [0], [1], [0, 0, 1, 1], [], []>} : vector<16x2xbf16>, vector<2x16xbf16>, vector<16x16xf32> -> vector<16x16xf32>
    %c0_29 = arith.constant 0 : index
    %c0_30 = arith.constant 0 : index
    %61 = vector.load %arg9[%c0_29, %c0_30] : memref<1x16xf32, #tpu.memory_space<vmem>>, vector<1x16xf32>
    %62 = vector.broadcast %61 : vector<1x16xf32> to vector<16x16xf32>
    %63 = arith.addf %60, %62 : vector<16x16xf32>
    %64 = arith.negf %63 : vector<16x16xf32>
    %65 = math.exp %64 : vector<16x16xf32>
    %cst_31 = arith.constant 1.000000e+00 : f32
    %66 = vector.broadcast %cst_31 : f32 to vector<16x16xf32>
    %67 = arith.addf %66, %65 : vector<16x16xf32>
    %68 = arith.divf %66, %67 : vector<16x16xf32>
    %69 = arith.truncf %68 : vector<16x16xf32> to vector<16x16xbf16>
    %cst_32 = arith.constant dense<0.000000e+00> : vector<16x1152xf32>
    %70 = tpu.matmul %69, %38, %cst_32 {dimension_numbers = #tpu.dot_dimension_numbers<[1], [0], [0], [1], [0, 0, 1, 1], [], []>} : vector<16x16xbf16>, vector<16x1152xbf16>, vector<16x1152xf32> -> vector<16x1152xf32>
    %71 = arith.mulf %7, %70 : vector<16x1152xf32>
    %72 = arith.truncf %71 : vector<16x1152xf32> to vector<16x1152xbf16>
    %c0_33 = arith.constant 0 : index
    %c0_34 = arith.constant 0 : index
    %73 = vector.load %arg10[%c0_33, %c0_34] : memref<1152x384xbf16, #tpu.memory_space<vmem>>, vector<1152x384xbf16>
    %cst_35 = arith.constant dense<0.000000e+00> : vector<16x384xf32>
    %74 = tpu.matmul %72, %73, %cst_35 {dimension_numbers = #tpu.dot_dimension_numbers<[1], [0], [0], [1], [0, 0, 1, 1], [], []>} : vector<16x1152xbf16>, vector<1152x384xbf16>, vector<16x384xf32> -> vector<16x384xf32>
    %c0_36 = arith.constant 0 : index
    %c0_37 = arith.constant 0 : index
    %75 = vector.load %arg11[%c0_36, %c0_37] : memref<1x384xf32, #tpu.memory_space<vmem>>, vector<1x384xf32>
    %76 = vector.broadcast %75 : vector<1x384xf32> to vector<16x384xf32>
    %77 = arith.addf %74, %76 : vector<16x384xf32>
    %78 = vector.extract_strided_slice %77 {offsets = [0, 256], sizes = [16, 128], strides = [1, 1]} : vector<16x384xf32> to vector<16x128xf32>
    %79 = vector.extract_strided_slice %77 {offsets = [0, 0], sizes = [16, 256], strides = [1, 1]} : vector<16x384xf32> to vector<16x256xf32>
    %c0_38 = arith.constant 0 : index
    %c0_39 = arith.constant 0 : index
    %80 = vector.load %arg12[%c0_38, %c0_39] : memref<1x256xf32, #tpu.memory_space<vmem>>, vector<1x256xf32>
    %81 = vector.broadcast %80 : vector<1x256xf32> to vector<16x256xf32>
    %82 = arith.mulf %79, %81 : vector<16x256xf32>
    %c0_40 = arith.constant 0 : index
    %c0_41 = arith.constant 0 : index
    %83 = vector.load %arg13[%c0_40, %c0_41] : memref<1x256xf32, #tpu.memory_space<vmem>>, vector<1x256xf32>
    %84 = vector.broadcast %83 : vector<1x256xf32> to vector<16x256xf32>
    %85 = arith.addf %82, %84 : vector<16x256xf32>
    %cst_42 = arith.constant 0.000000e+00 : f32
    %86 = vector.broadcast %cst_42 : f32 to vector<16x256xf32>
    %87 = arith.maximumf %85, %86 : vector<16x256xf32>
    %88 = arith.truncf %87 : vector<16x256xf32> to vector<16x256xbf16>
    %c0_43 = arith.constant 0 : index
    %c0_44 = arith.constant 0 : index
    %89 = vector.load %arg14[%c0_43, %c0_44] : memref<256x128xbf16, #tpu.memory_space<vmem>>, vector<256x128xbf16>
    %cst_45 = arith.constant dense<0.000000e+00> : vector<16x128xf32>
    %90 = tpu.matmul %88, %89, %cst_45 {dimension_numbers = #tpu.dot_dimension_numbers<[1], [0], [0], [1], [0, 0, 1, 1], [], []>} : vector<16x256xbf16>, vector<256x128xbf16>, vector<16x128xf32> -> vector<16x128xf32>
    %c0_46 = arith.constant 0 : index
    %c0_47 = arith.constant 0 : index
    %91 = vector.load %arg15[%c0_46, %c0_47] : memref<1x128xf32, #tpu.memory_space<vmem>>, vector<1x128xf32>
    %92 = vector.broadcast %91 : vector<1x128xf32> to vector<16x128xf32>
    %93 = arith.addf %90, %92 : vector<16x128xf32>
    %c0_48 = arith.constant 0 : index
    %c0_49 = arith.constant 0 : index
    %94 = vector.load %arg16[%c0_48, %c0_49] : memref<1x128xf32, #tpu.memory_space<vmem>>, vector<1x128xf32>
    %95 = vector.broadcast %94 : vector<1x128xf32> to vector<16x128xf32>
    %96 = arith.mulf %93, %95 : vector<16x128xf32>
    %c0_50 = arith.constant 0 : index
    %c0_51 = arith.constant 0 : index
    %97 = vector.load %arg17[%c0_50, %c0_51] : memref<1x128xf32, #tpu.memory_space<vmem>>, vector<1x128xf32>
    %98 = vector.broadcast %97 : vector<1x128xf32> to vector<16x128xf32>
    %99 = arith.addf %96, %98 : vector<16x128xf32>
    %cst_52 = arith.constant 0.000000e+00 : f32
    %100 = vector.broadcast %cst_52 : f32 to vector<16x128xf32>
    %101 = arith.maximumf %99, %100 : vector<16x128xf32>
    %102 = arith.truncf %101 : vector<16x128xf32> to vector<16x128xbf16>
    %c0_53 = arith.constant 0 : index
    %c0_54 = arith.constant 0 : index
    %103 = vector.load %arg18[%c0_53, %c0_54] : memref<128x256xbf16, #tpu.memory_space<vmem>>, vector<128x256xbf16>
    %cst_55 = arith.constant dense<0.000000e+00> : vector<16x256xf32>
    %104 = tpu.matmul %102, %103, %cst_55 {dimension_numbers = #tpu.dot_dimension_numbers<[1], [0], [0], [1], [0, 0, 1, 1], [], []>} : vector<16x128xbf16>, vector<128x256xbf16>, vector<16x256xf32> -> vector<16x256xf32>
    %c0_56 = arith.constant 0 : index
    %c0_57 = arith.constant 0 : index
    %105 = vector.load %arg19[%c0_56, %c0_57] : memref<1x256xf32, #tpu.memory_space<vmem>>, vector<1x256xf32>
    %106 = vector.broadcast %105 : vector<1x256xf32> to vector<16x256xf32>
    %107 = arith.addf %104, %106 : vector<16x256xf32>
    %108 = vector.extract_strided_slice %107 {offsets = [0, 0], sizes = [16, 128], strides = [1, 1]} : vector<16x256xf32> to vector<16x128xf32>
    %cst_58 = arith.constant 0.000000e+00 : f32
    %109 = vector.broadcast %cst_58 : f32 to vector<16x128xf32>
    %110 = arith.maximumf %108, %109 : vector<16x128xf32>
    %111 = vector.extract_strided_slice %107 {offsets = [0, 128], sizes = [16, 128], strides = [1, 1]} : vector<16x256xf32> to vector<16x128xf32>
    %112 = arith.addf %110, %78 : vector<16x128xf32>
    %113 = arith.addf %112, %111 : vector<16x128xf32>
    %114 = arith.truncf %113 : vector<16x128xf32> to vector<16x128xbf16>
    %c0_59 = arith.constant 0 : index
    %c0_60 = arith.constant 0 : index
    %115 = vector.load %arg20[%c0_59, %c0_60] : memref<128x64xbf16, #tpu.memory_space<vmem>>, vector<128x64xbf16>
    %cst_61 = arith.constant dense<0.000000e+00> : vector<16x64xf32>
    %116 = tpu.matmul %114, %115, %cst_61 {dimension_numbers = #tpu.dot_dimension_numbers<[1], [0], [0], [1], [0, 0, 1, 1], [], []>} : vector<16x128xbf16>, vector<128x64xbf16>, vector<16x64xf32> -> vector<16x64xf32>
    %c0_62 = arith.constant 0 : index
    %c0_63 = arith.constant 0 : index
    %117 = vector.load %arg21[%c0_62, %c0_63] : memref<1x64xf32, #tpu.memory_space<vmem>>, vector<1x64xf32>
    %118 = vector.broadcast %117 : vector<1x64xf32> to vector<16x64xf32>
    %119 = arith.addf %116, %118 : vector<16x64xf32>
    %cst_64 = arith.constant 0.000000e+00 : f32
    %120 = vector.broadcast %cst_64 : f32 to vector<16x64xf32>
    %121 = arith.maximumf %119, %120 : vector<16x64xf32>
    %122 = arith.truncf %121 : vector<16x64xf32> to vector<16x64xbf16>
    %c0_65 = arith.constant 0 : index
    %c0_66 = arith.constant 0 : index
    %123 = vector.load %arg22[%c0_65, %c0_66] : memref<64x32xbf16, #tpu.memory_space<vmem>>, vector<64x32xbf16>
    %cst_67 = arith.constant dense<0.000000e+00> : vector<16x32xf32>
    %124 = tpu.matmul %122, %123, %cst_67 {dimension_numbers = #tpu.dot_dimension_numbers<[1], [0], [0], [1], [0, 0, 1, 1], [], []>} : vector<16x64xbf16>, vector<64x32xbf16>, vector<16x32xf32> -> vector<16x32xf32>
    %c0_68 = arith.constant 0 : index
    %c0_69 = arith.constant 0 : index
    %125 = vector.load %arg23[%c0_68, %c0_69] : memref<1x32xf32, #tpu.memory_space<vmem>>, vector<1x32xf32>
    %126 = vector.broadcast %125 : vector<1x32xf32> to vector<16x32xf32>
    %127 = arith.addf %124, %126 : vector<16x32xf32>
    %cst_70 = arith.constant 0.000000e+00 : f32
    %128 = vector.broadcast %cst_70 : f32 to vector<16x32xf32>
    %129 = arith.maximumf %127, %128 : vector<16x32xf32>
    %130 = arith.truncf %129 : vector<16x32xf32> to vector<16x32xbf16>
    %c0_71 = arith.constant 0 : index
    %c0_72 = arith.constant 0 : index
    %131 = vector.load %arg24[%c0_71, %c0_72] : memref<32x128xbf16, #tpu.memory_space<vmem>>, vector<32x128xbf16>
    %cst_73 = arith.constant dense<0.000000e+00> : vector<16x128xf32>
    %132 = tpu.matmul %130, %131, %cst_73 {dimension_numbers = #tpu.dot_dimension_numbers<[1], [0], [0], [1], [0, 0, 1, 1], [], []>} : vector<16x32xbf16>, vector<32x128xbf16>, vector<16x128xf32> -> vector<16x128xf32>
    %c0_74 = arith.constant 0 : index
    %c0_75 = arith.constant 0 : index
    %133 = vector.load %arg25[%c0_74, %c0_75] : memref<1x128xf32, #tpu.memory_space<vmem>>, vector<1x128xf32>
    %134 = vector.broadcast %133 : vector<1x128xf32> to vector<16x128xf32>
    %135 = arith.addf %132, %134 : vector<16x128xf32>
    %c0_76 = arith.constant 0 : index
    %c0_77 = arith.constant 0 : index
    %136 = vector.load %arg26[%c0_76, %c0_77] : memref<16x128xf32, #tpu.memory_space<vmem>>, vector<16x128xf32>
    tpu.vector_store %arg26[%c0_76, %c0_77], %135 {strides = array<i32>} : memref<16x128xf32, #tpu.memory_space<vmem>>, vector<16x128xf32>,
    return
  }
  func.func @transform_0(%arg0: i32) -> (i32, i32) {
    %c0_i32 = arith.constant 0 : i32
    %c0_i32_0 = arith.constant 0 : i32
    return %arg0, %c0_i32 : i32, i32
  }
  func.func @transform_1(%arg0: i32) -> (i32, i32) {
    %c0_i32 = arith.constant 0 : i32
    %c0_i32_0 = arith.constant 0 : i32
    %c0_i32_1 = arith.constant 0 : i32
    return %c0_i32, %c0_i32_0 : i32, i32
  }
  func.func @transform_2(%arg0: i32) -> (i32, i32) {
    %c0_i32 = arith.constant 0 : i32
    %c0_i32_0 = arith.constant 0 : i32
    %c0_i32_1 = arith.constant 0 : i32
    return %c0_i32, %c0_i32_0 : i32, i32
  }
  func.func @transform_3(%arg0: i32) -> (i32, i32) {
    %c0_i32 = arith.constant 0 : i32
    %c0_i32_0 = arith.constant 0 : i32
    %c0_i32_1 = arith.constant 0 : i32
    return %c0_i32, %c0_i32_0 : i32, i32
  }
  func.func @transform_4(%arg0: i32) -> (i32, i32) {
    %c0_i32 = arith.constant 0 : i32
    %c0_i32_0 = arith.constant 0 : i32
    %c0_i32_1 = arith.constant 0 : i32
    return %c0_i32, %c0_i32_0 : i32, i32
  }
  func.func @transform_5(%arg0: i32) -> (i32, i32) {
    %c0_i32 = arith.constant 0 : i32
    %c0_i32_0 = arith.constant 0 : i32
    %c0_i32_1 = arith.constant 0 : i32
    return %c0_i32, %c0_i32_0 : i32, i32
  }
  func.func @transform_6(%arg0: i32) -> (i32, i32) {
    %c0_i32 = arith.constant 0 : i32
    %c0_i32_0 = arith.constant 0 : i32
    %c0_i32_1 = arith.constant 0 : i32
    return %c0_i32, %c0_i32_0 : i32, i32
  }
  func.func @transform_7(%arg0: i32) -> (i32, i32) {
    %c0_i32 = arith.constant 0 : i32
    %c0_i32_0 = arith.constant 0 : i32
    %c0_i32_1 = arith.constant 0 : i32
    return %c0_i32, %c0_i32_0 : i32, i32
  }
  func.func @transform_8(%arg0: i32) -> (i32, i32) {
    %c0_i32 = arith.constant 0 : i32
    %c0_i32_0 = arith.constant 0 : i32
    %c0_i32_1 = arith.constant 0 : i32
    return %c0_i32, %c0_i32_0 : i32, i32
  }
  func.func @transform_9(%arg0: i32) -> (i32, i32) {
    %c0_i32 = arith.constant 0 : i32
    %c0_i32_0 = arith.constant 0 : i32
    %c0_i32_1 = arith.constant 0 : i32
    return %c0_i32, %c0_i32_0 : i32, i32
  }
  func.func @transform_10(%arg0: i32) -> (i32, i32) {
    %c0_i32 = arith.constant 0 : i32
    %c0_i32_0 = arith.constant 0 : i32
    %c0_i32_1 = arith.constant 0 : i32
    return %c0_i32, %c0_i32_0 : i32, i32
  }
  func.func @transform_11(%arg0: i32) -> (i32, i32) {
    %c0_i32 = arith.constant 0 : i32
    %c0_i32_0 = arith.constant 0 : i32
    %c0_i32_1 = arith.constant 0 : i32
    return %c0_i32, %c0_i32_0 : i32, i32
  }
  func.func @transform_12(%arg0: i32) -> (i32, i32) {
    %c0_i32 = arith.constant 0 : i32
    %c0_i32_0 = arith.constant 0 : i32
    %c0_i32_1 = arith.constant 0 : i32
    return %c0_i32, %c0_i32_0 : i32, i32
  }
  func.func @transform_13(%arg0: i32) -> (i32, i32) {
    %c0_i32 = arith.constant 0 : i32
    %c0_i32_0 = arith.constant 0 : i32
    %c0_i32_1 = arith.constant 0 : i32
    return %c0_i32, %c0_i32_0 : i32, i32
  }
  func.func @transform_14(%arg0: i32) -> (i32, i32) {
    %c0_i32 = arith.constant 0 : i32
    %c0_i32_0 = arith.constant 0 : i32
    %c0_i32_1 = arith.constant 0 : i32
    return %c0_i32, %c0_i32_0 : i32, i32
  }
  func.func @transform_15(%arg0: i32) -> (i32, i32) {
    %c0_i32 = arith.constant 0 : i32
    %c0_i32_0 = arith.constant 0 : i32
    %c0_i32_1 = arith.constant 0 : i32
    return %c0_i32, %c0_i32_0 : i32, i32
  }
  func.func @transform_16(%arg0: i32) -> (i32, i32) {
    %c0_i32 = arith.constant 0 : i32
    %c0_i32_0 = arith.constant 0 : i32
    %c0_i32_1 = arith.constant 0 : i32
    return %c0_i32, %c0_i32_0 : i32, i32
  }
  func.func @transform_17(%arg0: i32) -> (i32, i32) {
    %c0_i32 = arith.constant 0 : i32
    %c0_i32_0 = arith.constant 0 : i32
    %c0_i32_1 = arith.constant 0 : i32
    return %c0_i32, %c0_i32_0 : i32, i32
  }
  func.func @transform_18(%arg0: i32) -> (i32, i32) {
    %c0_i32 = arith.constant 0 : i32
    %c0_i32_0 = arith.constant 0 : i32
    %c0_i32_1 = arith.constant 0 : i32
    return %c0_i32, %c0_i32_0 : i32, i32
  }
  func.func @transform_19(%arg0: i32) -> (i32, i32) {
    %c0_i32 = arith.constant 0 : i32
    %c0_i32_0 = arith.constant 0 : i32
    %c0_i32_1 = arith.constant 0 : i32
    return %c0_i32, %c0_i32_0 : i32, i32
  }
  func.func @transform_20(%arg0: i32) -> (i32, i32) {
    %c0_i32 = arith.constant 0 : i32
    %c0_i32_0 = arith.constant 0 : i32
    %c0_i32_1 = arith.constant 0 : i32
    return %c0_i32, %c0_i32_0 : i32, i32
  }
  func.func @transform_21(%arg0: i32) -> (i32, i32) {
    %c0_i32 = arith.constant 0 : i32
    %c0_i32_0 = arith.constant 0 : i32
    %c0_i32_1 = arith.constant 0 : i32
    return %c0_i32, %c0_i32_0 : i32, i32
  }
  func.func @transform_22(%arg0: i32) -> (i32, i32) {
    %c0_i32 = arith.constant 0 : i32
    %c0_i32_0 = arith.constant 0 : i32
    %c0_i32_1 = arith.constant 0 : i32
    return %c0_i32, %c0_i32_0 : i32, i32
  }
  func.func @transform_23(%arg0: i32) -> (i32, i32) {
    %c0_i32 = arith.constant 0 : i32
    %c0_i32_0 = arith.constant 0 : i32
    %c0_i32_1 = arith.constant 0 : i32
    return %c0_i32, %c0_i32_0 : i32, i32
  }
  func.func @transform_24(%arg0: i32) -> (i32, i32) {
    %c0_i32 = arith.constant 0 : i32
    %c0_i32_0 = arith.constant 0 : i32
    %c0_i32_1 = arith.constant 0 : i32
    return %c0_i32, %c0_i32_0 : i32, i32
  }
  func.func @transform_25(%arg0: i32) -> (i32, i32) {
    %c0_i32 = arith.constant 0 : i32
    %c0_i32_0 = arith.constant 0 : i32
    return %arg0, %c0_i32 : i32, i32
  }
}

</mosaic_0001>

<bundles_post_ra>
// kernel: cae_classifier_forward.1
= control target key start
LH: loop header
LB: loop body
LE: loop exit
PB: predicated region body
PF: predicated region fallthrough
CT: control target
= control target key end

     0   :  { %v113_v0 = vlaneseq  ;;  %v5503_v12 = vmov 1.0|1.0   ;;  %s7552_s0 = inlined_call_operand.vmem [shape: bf16[16,1152], index: 0, kind: input, shape index: {}]   ;;  %s7553_s1 = inlined_call_operand.vmem [shape: f32[1,1152], index: 1, kind: input, shape index: {}]   ;;  %s7554_s2 = inlined_call_operand.vmem [shape: f32[1,1152], index: 2, kind: input, shape index: {}]   ;;  %s7555_s3 = inlined_call_operand.vmem [shape: bf16[16,2], index: 3, kind: input, shape index: {}]   ;;  %s7556_s5 = inlined_call_operand.vmem [shape: bf16[2,2], index: 5, kind: input, shape index: {}]   ;;  %s7557_s4 = inlined_call_operand.vmem [shape: f32[1,2], index: 4, kind: input, shape index: {}]   ;;  %s7558_s7 = inlined_call_operand.vmem [shape: bf16[2,16], index: 7, kind: input, shape index: {}]   ;;  %s7559_s6 = inlined_call_operand.vmem [shape: f32[1,2], index: 6, kind: input, shape index: {}]   ;;  %s7560_s9 = inlined_call_operand.vmem [shape: bf16[1152,384], index: 9, kind: input, shape index: {}]   ;;  %s7561_s8 = inlined_call_operand.vmem [shape: f32[1,16], index: 8, kind: input, shape index: {}]   ;;  %s7562_s13 = inlined_call_operand.vmem [shape: bf16[256,128], index: 13, kind: input, shape index: {}]   ;;  %s7563_s10 = inlined_call_operand.vmem [shape: f32[1,384], index: 10, kind: input, shape index: {}]   ;;  %s7564_s17 = inlined_call_operand.vmem [shape: bf16[128,256], index: 17, kind: input, shape index: {}]   ;;  %s7565_s11 = inlined_call_operand.vmem [shape: f32[1,256], index: 11, kind: input, shape index: {}]   ;;  %s7566_s12 = inlined_call_operand.vmem [shape: f32[1,256], index: 12, kind: input, shape index: {}]   ;;  %s7567_s19 = inlined_call_operand.vmem [shape: bf16[128,64], index: 19, kind: input, shape index: {}]   ;;  %s7568_s14 = inlined_call_operand.vmem [shape: f32[1,128], index: 14, kind: input, shape index: {}]   ;;  %s7569_s15 = inlined_call_operand.vmem [shape: f32[1,128], index: 15, kind: input, shape index: {}]   ;;  %s7570_s16 = inlined_call_operand.vmem [shape: f32[1,128], index: 16, kind: input, shape index: {}]   ;;  %s7571_s21 = inlined_call_operand.vmem [shape: bf16[64,32], index: 21, kind: input, shape index: {}]   ;;  %s7572_s18 = inlined_call_operand.vmem [shape: f32[1,256], index: 18, kind: input, shape index: {}]   ;;  %s7573_s20 = inlined_call_operand.vmem [shape: f32[1,64], index: 20, kind: input, shape index: {}]   ;;  %s7574_s23 = inlined_call_operand.vmem [shape: bf16[32,128], index: 23, kind: input, shape index: {}]   ;;  %s7575_s22 = inlined_call_operand.vmem [shape: f32[1,32], index: 22, kind: input, shape index: {}]   ;;  %s7576_s24 = inlined_call_operand.vmem [shape: f32[1,128], index: 24, kind: input, shape index: {}]   ;;  %s7577_s25 = inlined_call_operand.vmem [shape: f32[16,128], index: 25, kind: output, shape index: {}]  }
   0x1   :  { %7585 = sst [smem:[#allocation2_spill]] %s7552_s0 }
   0x2   :  { %7586 = sst [smem:[#allocation3_spill]] %s7553_s1  ;;  %v5637_v1 = vshrl.u32 %v113_v0, 7  ;;  %v5639_v2 = vand.u32 127, %v113_v0 }
   0x3   :  { %7587 = sst [smem:[#allocation4_spill]] %s7554_s2  ;;  %s7598_s1 = sld [smem:[#allocation3_spill]] }
   0x4   :  { %7588 = sst [smem:[#allocation5_spill]] %s7555_s3  ;;  %v269_v3 = vadd.s32 128, %v5637_v1  ;;  %v270_v4 = vadd.s32 136, %v5637_v1  ;;  %v5644_v5 = vmul.u32 72, %v5639_v2  ;;  %v544_v6 = vadd.s32 1, %v5639_v2 }
   0x5   :  { %7589 = sst [smem:[#allocation6_spill]] %s7556_s5  ;;  %v301_v7 = vadd.s32 384, %v5637_v1  ;;  %v302_v9 = vadd.s32 392, %v5637_v1  ;;  %v5658_v10 = vadd.s32 8, %v5637_v1  ;;  %v285_v11 = vadd.s32 256, %v5637_v1  ;;  %s7599_s5 = sld [smem:[#allocation4_spill]] }
   0x6   :  { %7590 = sst [smem:[#allocation7_spill]] %s7557_s4  ;;  %vm416_vm0 = vcmp.ge.s32.totalorder %v269_v3, %v5644_v5  ;;  %v5649_v8 = vmul.u32 72, %v544_v6  ;;  %vm417_vm1 = vcmp.ge.s32.totalorder %v270_v4, %v5644_v5  ;;  %vm400_vm12 = vcmp.ge.s32.totalorder %v5637_v1, %v5644_v5  ;;  %s7626_s26 = sld [smem:[#allocation5_spill]] }
   0x7   :  { %7591 = sst [smem:[#allocation8_spill]] %s7558_s7  ;;  %vm448_vm5 = vcmp.ge.s32.totalorder %v301_v7, %v5644_v5  ;;  %vm449_vm8 = vcmp.ge.s32.totalorder %v302_v9, %v5644_v5  ;;  %v286_v13 = vadd.s32 264, %v5637_v1  ;;  %vm401_vm15 = vcmp.ge.s32.totalorder %v5658_v10, %v5644_v5  ;;  %s7595_s7 = sld [smem:[#allocation2_spill]] }
   0x8   :  { %7592 = sst [smem:[#allocation9_spill]] %s7559_s6  ;;  %vm562_vm2 = vcmp.lt.s32.totalorder %v269_v3, %v5649_v8  ;;  %vm563_vm3 = vcmp.lt.s32.totalorder %v270_v4, %v5649_v8  ;;  %vm594_vm6 = vcmp.lt.s32.totalorder %v301_v7, %v5649_v8  ;;  %vm595_vm9 = vcmp.lt.s32.totalorder %v302_v9, %v5649_v8  ;;  %s7627_s28 = sld [smem:[#allocation6_spill]] }
   0x9   :  { %7593 = sst [smem:[#allocation10_spill]] %s7560_s9  ;;  %vm706_vm4 = vmand %vm416_vm0, %vm562_vm2  ;;  %vm546_vm13 = vcmp.lt.s32.totalorder %v5637_v1, %v5649_v8  ;;  %vm547_vm0 = vcmp.lt.s32.totalorder %v5658_v10, %v5649_v8  ;;  %v271_v14 = vadd.s32 144, %v5637_v1  ;;  %v272_v15 = vadd.s32 152, %v5637_v1  ;;  %v5775_v42 = vld [vmem:[%s7598_s1] sm:$0xff]  ;;  %s7628_s0 = sld [smem:[#allocation7_spill]] }
   0xa   :  { %7594 = sst [smem:[#allocation11_spill]] %s7561_s8  ;;  %vm707_vm7 = vmand %vm417_vm1, %vm563_vm3  ;;  %vm432_vm3 = vcmp.ge.s32.totalorder %v285_v11, %v5644_v5  ;;  %v303_v16 = vadd.s32 400, %v5637_v1  ;;  %v304_v17 = vadd.s32 408, %v5637_v1  ;;  %v255_v18 = vadd.s32 16, %v5637_v1  ;;  %s7630_s6 = sld [smem:[#allocation9_spill]] }
   0xb   :  { %vm4351_vm10 = vmpackc.low %vm707_vm7, %vm706_vm4  ;;  %vm578_vm4 = vcmp.lt.s32.totalorder %v285_v11, %v5649_v8  ;;  %vm579_vm7 = vcmp.lt.s32.totalorder %v286_v13, %v5649_v8  ;;  %v256_v19 = vadd.s32 24, %v5637_v1  ;;  %v287_v20 = vadd.s32 272, %v5637_v1  ;;  %v5786_v45 = vld [vmem:[%s7599_s5] sm:$0xff] }
   0xc   :  { %4781 = vmatprep.subr.msk.bf16.mxu0 %vm4351_vm10, %v5503_v12  ;;  %vm738_vm11 = vmand %vm448_vm5, %vm594_vm6  ;;  %vm433_vm6 = vcmp.ge.s32.totalorder %v286_v13, %v5644_v5  ;;  %vm418_vm10 = vcmp.ge.s32.totalorder %v271_v14, %v5644_v5  ;;  %v288_v21 = vadd.s32 280, %v5637_v1  ;;  %v273_v22 = vadd.s32 160, %v5637_v1 }
   0xd   :  { %vm739_vm14 = vmand %vm449_vm8, %vm595_vm9  ;;  %v274_v23 = vadd.s32 168, %v5637_v1  ;;  %v305_v24 = vadd.s32 416, %v5637_v1  ;;  %v306_v25 = vadd.s32 424, %v5637_v1  ;;  %v257_v26 = vadd.s32 32, %v5637_v1  ;;  %v5754_v37 = vld [vmem:[%s7595_s7] sm:$0xff]  ;;  %v5791_v46 = vld [vmem:[%s7595_s7 + $0x8] sm:$0xff] }
   0xe   :  { %vm4383_vm1 = vmpackc.low %vm739_vm14, %vm738_vm11  ;;  %vm564_vm11 = vcmp.lt.s32.totalorder %v271_v14, %v5649_v8  ;;  %vm565_vm14 = vcmp.lt.s32.totalorder %v272_v15, %v5649_v8  ;;  %v258_v27 = vadd.s32 40, %v5637_v1  ;;  %v289_v28 = vadd.s32 288, %v5637_v1  ;;  %v5767_v40 = vld [vmem:[%s7595_s7 + $0x24] sm:$0xff]  ;;  %v5807_v50 = vld [vmem:[%s7595_s7 + $0x2c] sm:$0xff] }
   0xf   :  { %4803 = vmatprep.subr.msk.bf16.mxu1 %vm4383_vm1, %v5503_v12  ;;  %vm690_vm2 = vmand %vm400_vm12, %vm546_vm13  ;;  %vm419_vm13 = vcmp.ge.s32.totalorder %v272_v15, %v5644_v5  ;;  %vm450_vm1 = vcmp.ge.s32.totalorder %v303_v16, %v5644_v5  ;;  %v290_v29 = vadd.s32 296, %v5637_v1  ;;  %v275_v30 = vadd.s32 176, %v5637_v1 }
  0x10   :  { %vm691_vm5 = vmand %vm401_vm15, %vm547_vm0  ;;  %v276_v31 = vadd.s32 184, %v5637_v1  ;;  %v307_v32 = vadd.s32 432, %v5637_v1  ;;  %v308_v33 = vadd.s32 440, %v5637_v1  ;;  %v259_v34 = vadd.s32 48, %v5637_v1 }
  0x11   :  { %vm4335_vm8 = vmpackc.low %vm691_vm5, %vm690_vm2  ;;  %vm596_vm2 = vcmp.lt.s32.totalorder %v303_v16, %v5649_v8  ;;  %vm597_vm5 = vcmp.lt.s32.totalorder %v304_v17, %v5649_v8  ;;  %v260_v35 = vadd.s32 56, %v5637_v1  ;;  %v291_v36 = vadd.s32 304, %v5637_v1 }
  0x12   :  { %4782 = vmatpush3.bf16.msk.msra.mxu0 %vm4335_vm8, %v5503_v12  ;;  %vm722_vm9 = vmand %vm432_vm3, %vm578_vm4  ;;  %vm451_vm4 = vcmp.ge.s32.totalorder %v304_v17, %v5644_v5  ;;  %vm402_vm8 = vcmp.ge.s32.totalorder %v255_v18, %v5644_v5  ;;  %v292_v39 = vadd.s32 312, %v5637_v1  ;;  %v277_v41 = vadd.s32 192, %v5637_v1 }
  0x13   :  { %vm723_vm12 = vmand %vm433_vm6, %vm579_vm7  ;;  %v92_v43 = vunpack.c.h.bf16 %v5754_v37  ;;  %v5781_v44 = vsub.s32 1, %v5637_v1  ;;  %v278_v48 = vadd.s32 200, %v5637_v1  ;;  %v101_v49 = vunpack.c.h.bf16 %v5767_v40 }
  0x14   :  { %vm4367_vm15 = vmpackc.low %vm723_vm12, %vm722_vm9  ;;  %vm548_vm9 = vcmp.lt.s32.totalorder %v255_v18, %v5649_v8  ;;  %vm549_vm12 = vcmp.lt.s32.totalorder %v256_v19, %v5649_v8  ;;  %v309_v51 = vadd.s32 448, %v5637_v1  ;;  %v94_v54 = vunpack.c.h.bf16 %v5791_v46 }
  0x15   :  { %4804 = vmatpush3.bf16.msk.msra.mxu1 %vm4367_vm15, %v5503_v12  ;;  %vm708_vm0 = vmand %vm418_vm10, %vm564_vm11  ;;  %vm403_vm11 = vcmp.ge.s32.totalorder %v256_v19, %v5644_v5  ;;  %vm434_vm15 = vcmp.ge.s32.totalorder %v287_v20, %v5644_v5  ;;  %v120_v52 = vrot.slane %v5775_v42, %v5781_v44  ;;  %v187_v53 = vrot.slane %v5786_v45, %v5781_v44 }
  0x16   :  { %vm709_vm3 = vmand %vm419_vm13, %vm565_vm14  ;;  %v310_v56 = vadd.s32 456, %v5637_v1  ;;  %v103_v57 = vunpack.c.h.bf16 %v5807_v50  ;;  %v127_v58 = vsub.s32 3, %v5637_v1  ;;  %v261_v61 = vadd.s32 64, %v5637_v1 }
  0x17   :  { %vm4353_vm6 = vmpackc.low %vm709_vm3, %vm708_vm0  ;;  %vm580_vm0 = vcmp.lt.s32.totalorder %v287_v20, %v5649_v8  ;;  %vm581_vm3 = vcmp.lt.s32.totalorder %v288_v21, %v5649_v8  ;;  %v159_v59 = vmul.f32 %v120_v52, %v92_v43  ;;  %v168_v60 = vmul.f32 %v120_v52, %v101_v49 }
  0x18   :  { %4783 = vmatprep.subr.msk.bf16.mxu0 %vm4353_vm6, %v5503_v12  ;;  %vm740_vm7 = vmand %vm450_vm1, %vm596_vm2  ;;  %vm435_vm2 = vcmp.ge.s32.totalorder %v288_v21, %v5644_v5  ;;  %vm420_vm6 = vcmp.ge.s32.totalorder %v273_v22, %v5644_v5  ;;  %v128_v62 = vrot.slane %v5775_v42, %v127_v58  ;;  %v195_v63 = vrot.slane %v5786_v45, %v127_v58 }
  0x19   :  { %vm741_vm10 = vmand %vm451_vm4, %vm597_vm5  ;;  %v262_v0 = vadd.s32 72, %v5637_v1  ;;  %v5850_v3 = vadd.f32 %v187_v53, %v159_v59  ;;  %v5852_v4 = vadd.f32 %v187_v53, %v168_v60  ;;  %v293_v9 = vadd.s32 320, %v5637_v1 }
  0x1a   :  { %vm4385_vm13 = vmpackc.low %vm741_vm10, %vm740_vm7  ;;  %vm566_vm7 = vcmp.lt.s32.totalorder %v273_v22, %v5649_v8  ;;  %vm567_vm10 = vcmp.lt.s32.totalorder %v274_v23, %v5649_v8  ;;  %v161_v6 = vmul.f32 %v128_v62, %v94_v54  ;;  %v170_v7 = vmul.f32 %v128_v62, %v103_v57 }
  0x1b   :  { %4805 = vmatprep.subr.msk.bf16.mxu1 %vm4385_vm13, %v5503_v12  ;;  %vm692_vm14 = vmand %vm402_vm8, %vm548_vm9  ;;  %vm421_vm9 = vcmp.ge.s32.totalorder %v274_v23, %v5644_v5  ;;  %vm452_vm13 = vcmp.ge.s32.totalorder %v305_v24, %v5644_v5  ;;  %v294_v11 = vadd.s32 328, %v5637_v1  ;;  %v244_v13 = vpack.c.bf16 %v5852_v4, %v5850_v3 }
  0x1c   :  { %vm693_vm1 = vmand %vm403_vm11, %vm549_vm12  ;;  %v5867_v14 = vadd.f32 %v195_v63, %v161_v6  ;;  %v5869_v15 = vadd.f32 %v195_v63, %v170_v7  ;;  %v279_v16 = vadd.s32 208, %v5637_v1  ;;  %v280_v18 = vadd.s32 216, %v5637_v1 }
  0x1d   :  { %vm4337_vm4 = vmpackc.low %vm693_vm1, %vm692_vm14  ;;  %vm598_vm14 = vcmp.lt.s32.totalorder %v305_v24, %v5649_v8  ;;  %vm599_vm1 = vcmp.lt.s32.totalorder %v306_v25, %v5649_v8  ;;  %1177 = vmatprep.mubr.bf16.mxu0 %v244_v13  ;;  %v311_v19 = vadd.s32 464, %v5637_v1  ;;  %v312_v20 = vadd.s32 472, %v5637_v1 }
  0x1e   :  { %4784 = vmatpush3.bf16.msk.msra.mxu0 %vm4337_vm4, %v5503_v12  ;;  %vm724_vm5 = vmand %vm434_vm15, %vm580_vm0  ;;  %vm453_vm0 = vcmp.ge.s32.totalorder %v306_v25, %v5644_v5  ;;  %vm404_vm4 = vcmp.ge.s32.totalorder %v257_v26, %v5644_v5  ;;  %v246_v17 = vpack.c.bf16 %v5869_v15, %v5867_v14  ;;  %v263_v21 = vadd.s32 80, %v5637_v1 }
  0x1f   :  { %vm725_vm8 = vmand %vm435_vm2, %vm581_vm3  ;;  %v264_v22 = vadd.s32 88, %v5637_v1  ;;  %v295_v23 = vadd.s32 336, %v5637_v1  ;;  %v296_v24 = vadd.s32 344, %v5637_v1  ;;  %v281_v25 = vadd.s32 224, %v5637_v1 }
  0x20   :  { %vm4369_vm11 = vmpackc.low %vm725_vm8, %vm724_vm5  ;;  %vm550_vm5 = vcmp.lt.s32.totalorder %v257_v26, %v5649_v8  ;;  %vm551_vm8 = vcmp.lt.s32.totalorder %v258_v27, %v5649_v8  ;;  %1218 = vmatprep.mubr.bf16.mxu1 %v246_v17  ;;  %v282_v26 = vadd.s32 232, %v5637_v1  ;;  %v5943_v38 = vsub.s32 2, %v5637_v1  ;;  %v6022_v17 = vld [vmem:[%s7595_s7 + $0x10] sm:$0xff] }
  0x21   :  { %4806 = vmatpush3.bf16.msk.msra.mxu1 %vm4369_vm11, %v5503_v12  ;;  %vm710_vm12 = vmand %vm420_vm6, %vm566_vm7  ;;  %vm405_vm7 = vcmp.ge.s32.totalorder %v258_v27, %v5644_v5  ;;  %vm436_vm11 = vcmp.ge.s32.totalorder %v289_v28, %v5644_v5  ;;  %v313_v27 = vadd.s32 480, %v5637_v1  ;;  %v316_v47 = vadd.s32 504, %v5637_v1 }
  0x22   :  { %vm711_vm15 = vmand %vm421_vm9, %vm567_vm10  ;;  %v124_v49 = vrot.slane %v5775_v42, %v5943_v38  ;;  %v300_v54 = vadd.s32 376, %v5637_v1  ;;  %v191_v57 = vrot.slane %v5786_v45, %v5943_v38  ;;  %v333_v60 = vadd.s32 640, %v5637_v1 }
  0x23   :  { %vm4355_vm2 = vmpackc.low %vm711_vm15, %vm710_vm12  ;;  %vm582_vm12 = vcmp.lt.s32.totalorder %v289_v28, %v5649_v8  ;;  %vm583_vm15 = vcmp.lt.s32.totalorder %v290_v29, %v5649_v8  ;;  %v314_v28 = vadd.s32 488, %v5637_v1  ;;  %v317_v6 = vadd.s32 512, %v5637_v1 }
  0x24   :  { %4785 = vmatprep.subr.msk.bf16.mxu0 %vm4355_vm2, %v5503_v12  ;;  %vm742_vm3 = vmand %vm452_vm13, %vm598_vm14  ;;  %vm437_vm14 = vcmp.ge.s32.totalorder %v290_v29, %v5644_v5  ;;  %vm422_vm2 = vcmp.ge.s32.totalorder %v275_v30, %v5644_v5  ;;  %v265_v29 = vadd.s32 96, %v5637_v1  ;;  %v318_v7 = vadd.s32 520, %v5637_v1 }
  0x25   :  { %vm743_vm6 = vmand %vm453_vm0, %vm599_vm1  ;;  %v366_v13 = vadd.s32 904, %v5637_v1 }
  0x26   :  { %vm4387_vm9 = vmpackc.low %vm743_vm6, %vm742_vm3  ;;  %vm568_vm3 = vcmp.lt.s32.totalorder %v275_v30, %v5649_v8  ;;  %vm569_vm6 = vcmp.lt.s32.totalorder %v276_v31, %v5649_v8  ;;  %v266_v30 = vadd.s32 104, %v5637_v1 }
  0x27   :  { %4807 = vmatprep.subr.msk.bf16.mxu1 %vm4387_vm9, %v5503_v12  ;;  %vm694_vm10 = vmand %vm404_vm4, %vm550_vm5  ;;  %vm423_vm5 = vcmp.ge.s32.totalorder %v276_v31, %v5644_v5  ;;  %vm454_vm9 = vcmp.ge.s32.totalorder %v307_v32, %v5644_v5  ;;  %v297_v31 = vadd.s32 352, %v5637_v1 }
  0x28   :  { %vm695_vm13 = vmand %vm405_vm7, %vm551_vm8 }
  0x29   :  { %vm4339_vm0 = vmpackc.low %vm695_vm13, %vm694_vm10  ;;  %vm600_vm10 = vcmp.lt.s32.totalorder %v307_v32, %v5649_v8  ;;  %vm601_vm13 = vcmp.lt.s32.totalorder %v308_v33, %v5649_v8  ;;  %v298_v32 = vadd.s32 360, %v5637_v1 }
  0x2a   :  { %4786 = vmatpush3.bf16.msk.msra.mxu0 %vm4339_vm0, %v5503_v12  ;;  %vm726_vm1 = vmand %vm436_vm11, %vm582_vm12  ;;  %vm455_vm12 = vcmp.ge.s32.totalorder %v308_v33, %v5644_v5  ;;  %vm406_vm0 = vcmp.ge.s32.totalorder %v259_v34, %v5644_v5  ;;  %v5932_v33 = vsub.s32 0, %v5637_v1 }
  0x2b   :  { %vm727_vm4 = vmand %vm437_vm14, %vm583_vm15 }
  0x2c   :  { %vm4371_vm7 = vmpackc.low %vm727_vm4, %vm726_vm1  ;;  %vm552_vm1 = vcmp.lt.s32.totalorder %v259_v34, %v5649_v8  ;;  %vm553_vm4 = vcmp.lt.s32.totalorder %v260_v35, %v5649_v8  ;;  %v283_v34 = vadd.s32 240, %v5637_v1  ;;  %v116_v43 = vrot.slane %v5775_v42, %v5932_v33 }
  0x2d   :  { %4808 = vmatpush3.bf16.msk.msra.mxu1 %vm4371_vm7, %v5503_v12  ;;  %vm712_vm8 = vmand %vm422_vm2, %vm568_vm3  ;;  %vm407_vm3 = vcmp.ge.s32.totalorder %v260_v35, %v5644_v5  ;;  %vm438_vm7 = vcmp.ge.s32.totalorder %v291_v36, %v5644_v5  ;;  %v284_v35 = vadd.s32 248, %v5637_v1 }
  0x2e   :  { %vm713_vm11 = vmand %vm423_vm5, %vm569_vm6 }
  0x2f   :  { %vm4357_vm14 = vmpackc.low %vm713_vm11, %vm712_vm8  ;;  %vm584_vm8 = vcmp.lt.s32.totalorder %v291_v36, %v5649_v8  ;;  %vm585_vm11 = vcmp.lt.s32.totalorder %v292_v39, %v5649_v8  ;;  %v315_v36 = vadd.s32 496, %v5637_v1 }
  0x30   :  { %4787 = vmatprep.subr.msk.bf16.mxu0 %vm4357_vm14, %v5503_v12  ;;  %vm5757_vm15 = vmand %vm454_vm9, %vm600_vm10  ;;  %vm439_vm10 = vcmp.ge.s32.totalorder %v292_v39, %v5644_v5  ;;  %v91_v39 = vunpack.c.l.bf16 %v5754_v37  ;;  %v267_v37 = vadd.s32 112, %v5637_v1 }
  0x31   :  { %vm745_vm2 = vmand %vm455_vm12, %vm601_vm13  ;;  %vm424_vm13 = vcmp.ge.s32.totalorder %v277_v41, %v5644_v5 }
  0x32   :  { %vm4389_vm5 = vmpackc.low %vm745_vm2, %vm5757_vm15  ;;  %vm570_vm15 = vcmp.lt.s32.totalorder %v277_v41, %v5649_v8  ;;  %vm571_vm2 = vcmp.lt.s32.totalorder %v278_v48, %v5649_v8  ;;  %v100_v41 = vunpack.c.l.bf16 %v5767_v40  ;;  %v93_v40 = vunpack.c.l.bf16 %v5791_v46 }
  0x33   :  { %4809 = vmatprep.subr.msk.bf16.mxu1 %vm4389_vm5, %v5503_v12  ;;  %vm5796_vm6 = vmand %vm406_vm0, %vm552_vm1  ;;  %vm425_vm1 = vcmp.ge.s32.totalorder %v278_v48, %v5644_v5  ;;  %v102_v48 = vunpack.c.l.bf16 %v5807_v50  ;;  %v158_v52 = vmul.f32 %v116_v43, %v91_v39  ;;  %v183_v46 = vrot.slane %v5786_v45, %v5932_v33 }
  0x34   :  { %vm697_vm9 = vmand %vm407_vm3, %vm553_vm4  ;;  %vm456_vm4 = vcmp.ge.s32.totalorder %v309_v51, %v5644_v5  ;;  %v167_v53 = vmul.f32 %v116_v43, %v100_v41  ;;  %v299_v50 = vadd.s32 368, %v5637_v1  ;;  %v160_v55 = vmul.f32 %v124_v49, %v93_v40 }
  0x35   :  { %vm4341_vm12 = vmpackc.low %vm697_vm9, %vm5796_vm6  ;;  %vm602_vm6 = vcmp.lt.s32.totalorder %v309_v51, %v5649_v8  ;;  %vm603_vm9 = vcmp.lt.s32.totalorder %v310_v56, %v5649_v8  ;;  %v268_v51 = vadd.s32 120, %v5637_v1  ;;  %v5983_v58 = vadd.f32 %v183_v46, %v158_v52 }
  0x36   :  { %4788 = vmatpush3.bf16.msk.msra.mxu0 %vm4341_vm12, %v5503_v12  ;;  %vm5827_vm14 = vmand %vm438_vm7, %vm584_vm8  ;;  %vm457_vm8 = vcmp.ge.s32.totalorder %v310_v56, %v5644_v5  ;;  %vm408_vm12 = vcmp.ge.s32.totalorder %v261_v61, %v5644_v5  ;;  %v169_v56 = vmul.f32 %v124_v49, %v102_v48  ;;  %v5985_v59 = vadd.f32 %v183_v46, %v167_v53 }
  0x37   :  { %vm729_vm0 = vmand %vm439_vm10, %vm585_vm11  ;;  %v5996_v62 = vadd.f32 %v191_v57, %v160_v55  ;;  %v143_v41 = vsub.s32 7, %v5637_v1  ;;  %v368_v48 = vadd.s32 920, %v5637_v1  ;;  %v352_v52 = vadd.s32 792, %v5637_v1 }
  0x38   :  { %vm4373_vm3 = vmpackc.low %vm729_vm0, %vm5827_vm14  ;;  %vm555_vm0 = vcmp.lt.s32.totalorder %v262_v0, %v5649_v8  ;;  %v5998_v63 = vadd.f32 %v191_v57, %v169_v56  ;;  %v338_v55 = vadd.s32 680, %v5637_v1  ;;  %v321_v56 = vadd.s32 544, %v5637_v1 }
  0x39   :  { %4810 = vmatpush3.bf16.msk.msra.mxu1 %vm4373_vm3, %v5503_v12  ;;  %vm714_vm5 = vmand %vm424_vm13, %vm570_vm15  ;;  %vm554_vm13 = vcmp.lt.s32.totalorder %v261_v61, %v5649_v8  ;;  %vm409_vm15 = vcmp.ge.s32.totalorder %v262_v0, %v5644_v5  ;;  %vm440_vm3 = vcmp.ge.s32.totalorder %v293_v9, %v5644_v5  ;;  %v334_v61 = vadd.s32 648, %v5637_v1 }
  0x3a   :  { %vm715_vm7 = vmand %vm425_vm1, %vm571_vm2  ;;  %v243_v0 = vpack.c.bf16 %v5985_v59, %v5983_v58  ;;  %v211_v40 = vrot.slane %v5786_v45, %v143_v41  ;;  %v322_v57 = vadd.s32 552, %v5637_v1 }
  0x3b   :  { %vm4359_vm10 = vmpackc.low %vm715_vm7, %vm714_vm5  ;;  %vm587_vm7 = vcmp.lt.s32.totalorder %v294_v11, %v5649_v8 }
  0x3c   :  { %4789 = vmatprep.subr.msk.bf16.mxu0 %vm4359_vm10, %v5503_v12  ;;  %vm746_vm11 = vmand %vm456_vm4, %vm602_vm6  ;;  %vm586_vm4 = vcmp.lt.s32.totalorder %v293_v9, %v5649_v8  ;;  %vm441_vm6 = vcmp.ge.s32.totalorder %v294_v11, %v5644_v5  ;;  %vm426_vm10 = vcmp.ge.s32.totalorder %v279_v16, %v5644_v5  ;;  %v245_v9 = vpack.c.bf16 %v5998_v63, %v5996_v62 }
  0x3d   :  { %vm747_vm14 = vmand %vm457_vm8, %vm603_vm9  ;;  %v365_v11 = vadd.s32 896, %v5637_v1 }
  0x3e   :  { %vm4391_vm1 = vmpackc.low %vm747_vm14, %vm746_vm11  ;;  %vm572_vm11 = vcmp.lt.s32.totalorder %v279_v16, %v5649_v8  ;;  %vm573_vm14 = vcmp.lt.s32.totalorder %v280_v18, %v5649_v8  ;;  %v349_v16 = vadd.s32 768, %v5637_v1 }
  0x3f   :  { %4811 = vmatprep.subr.msk.bf16.mxu1 %vm4391_vm1, %v5503_v12  ;;  %vm698_vm2 = vmand %vm408_vm12, %vm554_vm13  ;;  %vm427_vm13 = vcmp.ge.s32.totalorder %v280_v18, %v5644_v5  ;;  %vm458_vm1 = vcmp.ge.s32.totalorder %v311_v19, %v5644_v5  ;;  %v6027_v18 = vld [vmem:[%s7595_s7 + $0x34] sm:$0xff] }
  0x40   :  { %vm699_vm5 = vmand %vm409_vm15, %vm555_vm0 }
  0x41   :  { %vm4343_vm8 = vmpackc.low %vm699_vm5, %vm698_vm2  ;;  %vm604_vm2 = vcmp.lt.s32.totalorder %v311_v19, %v5649_v8  ;;  %vm605_vm5 = vcmp.lt.s32.totalorder %v312_v20, %v5649_v8  ;;  %v350_v19 = vadd.s32 776, %v5637_v1 }
  0x42   :  { %4790 = vmatpush3.bf16.msk.msra.mxu0 %vm4343_vm8, %v5503_v12  ;;  %vm730_vm9 = vmand %vm440_vm3, %vm586_vm4  ;;  %vm459_vm4 = vcmp.ge.s32.totalorder %v312_v20, %v5644_v5  ;;  %vm410_vm8 = vcmp.ge.s32.totalorder %v263_v21, %v5644_v5  ;;  %v335_v20 = vadd.s32 656, %v5637_v1 }
  0x43   :  { %vm731_vm12 = vmand %vm441_vm6, %vm587_vm7 }
  0x44   :  { %vm4375_vm15 = vmpackc.low %vm731_vm12, %vm730_vm9  ;;  %vm556_vm9 = vcmp.lt.s32.totalorder %v263_v21, %v5649_v8  ;;  %vm557_vm12 = vcmp.lt.s32.totalorder %v264_v22, %v5649_v8  ;;  %v96_v21 = vunpack.c.h.bf16 %v6022_v17 }
  0x45   :  { %4812 = vmatpush3.bf16.msk.msra.mxu1 %vm4375_vm15, %v5503_v12  ;;  %vm716_vm0 = vmand %vm426_vm10, %vm572_vm11  ;;  %vm411_vm11 = vcmp.ge.s32.totalorder %v264_v22, %v5644_v5  ;;  %vm442_vm15 = vcmp.ge.s32.totalorder %v295_v23, %v5644_v5  ;;  %v105_v22 = vunpack.c.h.bf16 %v6027_v18 }
  0x46   :  { %vm717_vm3 = vmand %vm427_vm13, %vm573_vm14 }
  0x47   :  { %vm4361_vm6 = vmpackc.low %vm717_vm3, %vm716_vm0  ;;  %vm588_vm0 = vcmp.lt.s32.totalorder %v295_v23, %v5649_v8  ;;  %vm589_vm3 = vcmp.lt.s32.totalorder %v296_v24, %v5649_v8  ;;  %v135_v23 = vsub.s32 5, %v5637_v1 }
  0x48   :  { %4791 = vmatprep.subr.msk.bf16.mxu0 %vm4361_vm6, %v5503_v12  ;;  %vm748_vm7 = vmand %vm458_vm1, %vm604_vm2  ;;  %vm443_vm2 = vcmp.ge.s32.totalorder %v296_v24, %v5644_v5  ;;  %vm428_vm6 = vcmp.ge.s32.totalorder %v281_v25, %v5644_v5  ;;  %v325_v24 = vadd.s32 576, %v5637_v1 }
  0x49   :  { %vm749_vm10 = vmand %vm459_vm4, %vm605_vm5 }
  0x4a   :  { %vm4393_vm13 = vmpackc.low %vm749_vm10, %vm748_vm7  ;;  %vm574_vm7 = vcmp.lt.s32.totalorder %v281_v25, %v5649_v8  ;;  %vm575_vm10 = vcmp.lt.s32.totalorder %v282_v26, %v5649_v8  ;;  %v336_v25 = vadd.s32 664, %v5637_v1 }
  0x4b   :  { %4813 = vmatprep.subr.msk.bf16.mxu1 %vm4393_vm13, %v5503_v12  ;;  %vm700_vm14 = vmand %vm410_vm8, %vm556_vm9  ;;  %vm429_vm9 = vcmp.ge.s32.totalorder %v282_v26, %v5644_v5  ;;  %vm460_vm13 = vcmp.ge.s32.totalorder %v313_v27, %v5644_v5  ;;  %v136_v26 = vrot.slane %v5775_v42, %v135_v23 }
  0x4c   :  { %vm701_vm1 = vmand %vm411_vm11, %vm557_vm12 }
  0x4d   :  { %vm4345_vm4 = vmpackc.low %vm701_vm1, %vm700_vm14  ;;  %vm606_vm14 = vcmp.lt.s32.totalorder %v313_v27, %v5649_v8  ;;  %vm607_vm1 = vcmp.lt.s32.totalorder %v314_v28, %v5649_v8  ;;  %v203_v27 = vrot.slane %v5786_v45, %v135_v23  ;;  %v342_v23 = vadd.s32 712, %v5637_v1 }
  0x4e   :  { %4792 = vmatpush3.bf16.msk.msra.mxu0 %vm4345_vm4, %v5503_v12  ;;  %vm732_vm5 = vmand %vm442_vm15, %vm588_vm0  ;;  %vm461_vm0 = vcmp.ge.s32.totalorder %v314_v28, %v5644_v5  ;;  %vm412_vm4 = vcmp.ge.s32.totalorder %v265_v29, %v5644_v5  ;;  %v6052_v28 = vld [vmem:[%s7595_s7 + $0x18] sm:$0xff] }
  0x4f   :  { %vm733_vm8 = vmand %vm443_vm2, %vm589_vm3 }
  0x50   :  { %vm4377_vm11 = vmpackc.low %vm733_vm8, %vm732_vm5  ;;  %vm558_vm5 = vcmp.lt.s32.totalorder %v265_v29, %v5649_v8  ;;  %vm559_vm8 = vcmp.lt.s32.totalorder %v266_v30, %v5649_v8  ;;  %v6057_v29 = vld [vmem:[%s7595_s7 + $0x3c] sm:$0xff] }
  0x51   :  { %4814 = vmatpush3.bf16.msk.msra.mxu1 %vm4377_vm11, %v5503_v12  ;;  %vm718_vm12 = vmand %vm428_vm6, %vm574_vm7  ;;  %vm413_vm7 = vcmp.ge.s32.totalorder %v266_v30, %v5644_v5  ;;  %vm444_vm11 = vcmp.ge.s32.totalorder %v297_v31, %v5644_v5  ;;  %v319_v30 = vadd.s32 528, %v5637_v1  ;;  %v107_v39 = vunpack.c.h.bf16 %v6057_v29 }
  0x52   :  { %vm719_vm15 = vmand %vm429_vm9, %vm575_vm10 }
  0x53   :  { %vm4363_vm2 = vmpackc.low %vm719_vm15, %vm718_vm12  ;;  %vm590_vm12 = vcmp.lt.s32.totalorder %v297_v31, %v5649_v8  ;;  %vm591_vm15 = vcmp.lt.s32.totalorder %v298_v32, %v5649_v8  ;;  %v320_v31 = vadd.s32 536, %v5637_v1 }
  0x54   :  { %4793 = vmatprep.subr.msk.bf16.mxu0 %vm4363_vm2, %v5503_v12  ;;  %vm750_vm3 = vmand %vm460_vm13, %vm606_vm14  ;;  %vm445_vm14 = vcmp.ge.s32.totalorder %v298_v32, %v5644_v5  ;;  %vm430_vm2 = vcmp.ge.s32.totalorder %v283_v34, %v5644_v5  ;;  %v163_v32 = vmul.f32 %v136_v26, %v96_v21  ;;  %v356_v21 = vadd.s32 824, %v5637_v1 }
  0x55   :  { %vm751_vm6 = vmand %vm461_vm0, %vm607_vm1 }
  0x56   :  { %vm4395_vm9 = vmpackc.low %vm751_vm6, %vm750_vm3  ;;  %vm576_vm3 = vcmp.lt.s32.totalorder %v283_v34, %v5649_v8  ;;  %vm577_vm6 = vcmp.lt.s32.totalorder %v284_v35, %v5649_v8  ;;  %v172_v34 = vmul.f32 %v136_v26, %v105_v22  ;;  %v6082_v43 = vadd.f32 %v203_v27, %v163_v32 }
  0x57   :  { %4815 = vmatprep.subr.msk.bf16.mxu1 %vm4395_vm9, %v5503_v12  ;;  %vm702_vm10 = vmand %vm412_vm4, %vm558_vm5  ;;  %vm431_vm5 = vcmp.ge.s32.totalorder %v284_v35, %v5644_v5  ;;  %vm608_vm9 = vcmp.lt.s32.totalorder %v315_v36, %v5649_v8  ;;  %v367_v35 = vadd.s32 912, %v5637_v1  ;;  %v341_v22 = vadd.s32 704, %v5637_v1 }
  0x58   :  { %vm703_vm13 = vmand %vm413_vm7, %vm559_vm8  ;;  %vm462_vm8 = vcmp.ge.s32.totalorder %v315_v36, %v5644_v5  ;;  %v98_v36 = vunpack.c.h.bf16 %v6052_v28  ;;  %v373_v26 = vadd.s32 960, %v5637_v1  ;;  %v343_v32 = vadd.s32 720, %v5637_v1 }
  0x59   :  { %vm4347_vm0 = vmpackc.low %vm703_vm13, %vm702_vm10  ;;  %vm609_vm13 = vcmp.lt.s32.totalorder %v316_v47, %v5649_v8 }
  0x5a   :  { %4794 = vmatpush3.bf16.msk.msra.mxu0 %vm4347_vm0, %v5503_v12  ;;  %vm734_vm1 = vmand %vm444_vm11, %vm590_vm12  ;;  %vm463_vm12 = vcmp.ge.s32.totalorder %v316_v47, %v5644_v5  ;;  %v6084_v47 = vadd.f32 %v203_v27, %v172_v34  ;;  %v374_v27 = vadd.s32 968, %v5637_v1  ;;  %v344_v34 = vadd.s32 728, %v5637_v1 }
  0x5b   :  { %vm735_vm4 = vmand %vm445_vm14, %vm591_vm15  ;;  %vm414_vm15 = vcmp.ge.s32.totalorder %v267_v37, %v5644_v5 }
  0x5c   :  { %vm4379_vm7 = vmpackc.low %vm735_vm4, %vm734_vm1  ;;  %vm560_vm1 = vcmp.lt.s32.totalorder %v267_v37, %v5649_v8  ;;  %vm561_vm4 = vcmp.lt.s32.totalorder %v268_v51, %v5649_v8  ;;  %v144_v37 = vrot.slane %v5775_v42, %v143_v41  ;;  %v248_v49 = vpack.c.bf16 %v6084_v47, %v6082_v43 }
  0x5d   :  { %4816 = vmatpush3.bf16.msk.msra.mxu1 %vm4379_vm7, %v5503_v12  ;;  %vm720_vm10 = vmand %vm430_vm2, %vm576_vm3  ;;  %vm415_vm3 = vcmp.ge.s32.totalorder %v268_v51, %v5644_v5  ;;  %vm446_vm7 = vcmp.ge.s32.totalorder %v299_v50, %v5644_v5  ;;  %v351_v51 = vadd.s32 784, %v5637_v1  ;;  %v376_v41 = vadd.s32 984, %v5637_v1 }
  0x5e   :  { %vm721_vm11 = vmand %vm431_vm5, %vm577_vm6  ;;  %v165_v42 = vmul.f32 %v144_v37, %v98_v36  ;;  %v174_v45 = vmul.f32 %v144_v37, %v107_v39  ;;  %v328_v36 = vadd.s32 600, %v5637_v1  ;;  %v375_v39 = vadd.s32 976, %v5637_v1 }
  0x5f   :  { %vm4365_vm14 = vmpackc.low %vm721_vm11, %vm720_vm10  ;;  %vm447_vm10 = vcmp.ge.s32.totalorder %v300_v54, %v5644_v5  ;;  %vm593_vm11 = vcmp.lt.s32.totalorder %v300_v54, %v5649_v8  ;;  %v359_v37 = vadd.s32 848, %v5637_v1 }
  0x60   :  { %4795 = vmatprep.subr.msk.bf16.mxu0 %vm4365_vm14, %v5503_v12  ;;  %vm752_vm0 = vmand %vm462_vm8, %vm608_vm9  ;;  %vm592_vm8 = vcmp.lt.s32.totalorder %v299_v50, %v5649_v8  ;;  %vm480_vm14 = vcmp.ge.s32.totalorder %v333_v60, %v5644_v5  ;;  %v6105_v53 = vadd.f32 %v211_v40, %v165_v42  ;;  %v6107_v46 = vadd.f32 %v211_v40, %v174_v45 }
  0x61   :  { %vm753_vm2 = vmand %vm463_vm12, %vm609_vm13  ;;  %v337_v50 = vadd.s32 672, %v5637_v1  ;;  %v360_v40 = vadd.s32 856, %v5637_v1  ;;  %v329_v42 = vadd.s32 608, %v5637_v1  ;;  %v330_v45 = vadd.s32 616, %v5637_v1 }
  0x62   :  { %vm4397_vm5 = vmpackc.low %vm753_vm2, %vm752_vm0  ;;  %vm627_vm2 = vcmp.lt.s32.totalorder %v334_v61, %v5649_v8  ;;  %v250_v54 = vpack.c.bf16 %v6107_v46, %v6105_v53 }
  0x63   :  { %4817 = vmatprep.subr.msk.bf16.mxu1 %vm4397_vm5, %v5503_v12  ;;  %vm704_vm6 = vmand %vm414_vm15, %vm560_vm1  ;;  %vm626_vm15 = vcmp.lt.s32.totalorder %v333_v60, %v5649_v8  ;;  %vm481_vm1 = vcmp.ge.s32.totalorder %v334_v61, %v5644_v5  ;;  %vm464_vm5 = vcmp.ge.s32.totalorder %v317_v6, %v5644_v5  ;;  %v369_v60 = vadd.s32 928, %v5637_v1 }
  0x64   :  { %vm705_vm9 = vmand %vm415_vm3, %vm561_vm4  ;;  %v370_v61 = vadd.s32 936, %v5637_v1 }
  0x65   :  { %vm4349_vm12 = vmpackc.low %vm705_vm9, %vm704_vm6  ;;  %vm610_vm6 = vcmp.lt.s32.totalorder %v317_v6, %v5649_v8  ;;  %vm611_vm9 = vcmp.lt.s32.totalorder %v318_v7, %v5649_v8  ;;  %v354_v6 = vadd.s32 808, %v5637_v1 }
  0x66   :  { %4796 = vmatpush3.bf16.msk.msra.mxu0 %vm4349_vm12, %v5503_v12  ;;  %vm736_vm13 = vmand %vm446_vm7, %vm592_vm8  ;;  %vm465_vm8 = vcmp.ge.s32.totalorder %v318_v7, %v5644_v5  ;;  %vm512_vm12 = vcmp.ge.s32.totalorder %v365_v11, %v5644_v5  ;;  %v339_v7 = vadd.s32 688, %v5637_v1 }
  0x67   :  { %vm737_vm0 = vmand %vm447_vm10, %vm593_vm11 }
  0x68   :  { %vm4381_vm3 = vmpackc.low %vm737_vm0, %vm736_vm13  ;;  %vm513_vm13 = vcmp.ge.s32.totalorder %v366_v13, %v5644_v5  ;;  %vm659_vm0 = vcmp.lt.s32.totalorder %v366_v13, %v5649_v8  ;;  %v324_v13 = vadd.s32 568, %v5637_v1 }
  0x69   :  { %4818 = vmatpush3.bf16.msk.msra.mxu1 %vm4381_vm3, %v5503_v12  ;;  %1178 = vmatmul.mubr.bf16.vlgmr.msra.gmra.mrb[0].mxu0 %v243_v0  ;;  %vm770_vm4 = vmand %vm480_vm14, %vm626_vm15  ;;  %vm658_vm14 = vcmp.lt.s32.totalorder %v365_v11, %v5649_v8  ;;  %v353_v0 = vadd.s32 800, %v5637_v1  ;;  %v323_v11 = vadd.s32 560, %v5637_v1 }
  0x6a   :  { %vm771_vm7 = vmand %vm481_vm1, %vm627_vm2  ;;  %vm496_vm2 = vcmp.ge.s32.totalorder %v349_v16, %v5644_v5  ;;  %1259 = vmatprep.mubr.bf16.mxu0 %v248_v49  ;;  %v346_v49 = vadd.s32 744, %v5637_v1 }
  0x6b   :  { %vm4415_vm10 = vmpackc.low %vm771_vm7, %vm770_vm4  ;;  %vm642_vm4 = vcmp.lt.s32.totalorder %v349_v16, %v5649_v8  ;;  %vm643_vm7 = vcmp.lt.s32.totalorder %v350_v19, %v5649_v8  ;;  %v371_v16 = vadd.s32 944, %v5637_v1 }
  0x6c   :  { %1219 = vmatmul.mubr.bf16.vlgmr.msra.gmra.mrb[0].mxu1 %v245_v9  ;;  %4825 = vmatprep.subr.msk.bf16.mxu0 %vm4415_vm10, %v5503_v12  ;;  %vm754_vm11 = vmand %vm464_vm5, %vm610_vm6  ;;  %vm497_vm6 = vcmp.ge.s32.totalorder %v350_v19, %v5644_v5  ;;  %v340_v9 = vadd.s32 696, %v5637_v1  ;;  %v372_v19 = vadd.s32 952, %v5637_v1 }
  0x6d   :  { %vm755_vm15 = vmand %vm465_vm8, %vm611_vm9  ;;  %vm482_vm8 = vcmp.ge.s32.totalorder %v335_v20, %v5644_v5  ;;  %vm628_vm9 = vcmp.lt.s32.totalorder %v335_v20, %v5649_v8  ;;  %1300 = vmatprep.mubr.bf16.mxu1 %v250_v54  ;;  %v355_v20 = vadd.s32 816, %v5637_v1  ;;  %v361_v54 = vadd.s32 864, %v5637_v1 }
  0x6e   :  { %vm4399_vm1 = vmpackc.low %vm755_vm15, %vm754_vm11 }
  0x6f   :  { %4826 = vmatpush3.bf16.msk.msra.mxu0 %vm4399_vm1, %v5503_v12  ;;  %vm6041_vm3 = vmand %vm512_vm12, %vm658_vm14  ;;  %vm629_vm14 = vcmp.lt.s32.totalorder %v336_v25, %v5649_v8  ;;  %vm466_vm1 = vcmp.ge.s32.totalorder %v319_v30, %v5644_v5 }
  0x70   :  { %vm803_vm5 = vmand %vm513_vm13, %vm659_vm0  ;;  %vm483_vm13 = vcmp.ge.s32.totalorder %v336_v25, %v5644_v5  ;;  %v326_v25 = vadd.s32 584, %v5637_v1 }
  0x71   :  { %vm4447_vm10 = vmpackc.low %vm803_vm5, %vm6041_vm3  ;;  %vm613_vm5 = vcmp.lt.s32.totalorder %v320_v31, %v5649_v8 }
  0x72   :  { %4847 = vmatprep.subr.msk.bf16.mxu1 %vm4447_vm10, %v5503_v12  ;;  %vm786_vm11 = vmand %vm496_vm2, %vm642_vm4  ;;  %vm612_vm2 = vcmp.lt.s32.totalorder %v319_v30, %v5649_v8  ;;  %vm467_vm4 = vcmp.ge.s32.totalorder %v320_v31, %v5644_v5  ;;  %v357_v30 = vadd.s32 832, %v5637_v1  ;;  %v358_v31 = vadd.s32 840, %v5637_v1 }
  0x73   :  { %vm787_vm12 = vmand %vm497_vm6, %vm643_vm7  ;;  %vm514_vm7 = vcmp.ge.s32.totalorder %v367_v35, %v5644_v5 }
  0x74   :  { %vm4431_vm15 = vmpackc.low %vm787_vm12, %vm786_vm11  ;;  %vm515_vm11 = vcmp.ge.s32.totalorder %v368_v48, %v5644_v5  ;;  %vm661_vm12 = vcmp.lt.s32.totalorder %v368_v48, %v5649_v8  ;;  %v345_v48 = vadd.s32 736, %v5637_v1 }
  0x75   :  { %4848 = vmatpush3.bf16.msk.msra.mxu1 %vm4431_vm15, %v5503_v12  ;;  %vm772_vm0 = vmand %vm482_vm8, %vm628_vm9  ;;  %vm660_vm9 = vcmp.lt.s32.totalorder %v367_v35, %v5649_v8  ;;  %vm498_vm15 = vcmp.ge.s32.totalorder %v351_v51, %v5644_v5  ;;  %v327_v35 = vadd.s32 592, %v5637_v1 }
  0x76   :  { %vm773_vm3 = vmand %vm483_vm13, %vm629_vm14 }
  0x77   :  { %vm4417_vm6 = vmpackc.low %vm773_vm3, %vm772_vm0  ;;  %vm644_vm0 = vcmp.lt.s32.totalorder %v351_v51, %v5649_v8  ;;  %vm645_vm3 = vcmp.lt.s32.totalorder %v352_v52, %v5649_v8  ;;  %v377_v51 = vadd.s32 992, %v5637_v1 }
  0x78   :  { %4827 = vmatprep.subr.msk.bf16.mxu0 %vm4417_vm6, %v5503_v12  ;;  %vm756_vm8 = vmand %vm466_vm1, %vm612_vm2  ;;  %vm499_vm2 = vcmp.ge.s32.totalorder %v352_v52, %v5644_v5  ;;  %vm484_vm6 = vcmp.ge.s32.totalorder %v337_v50, %v5644_v5  ;;  %v378_v52 = vadd.s32 1000, %v5637_v1 }
  0x79   :  { %vm757_vm10 = vmand %vm467_vm4, %vm613_vm5 }
  0x7a   :  { %vm4401_vm13 = vmpackc.low %vm757_vm10, %vm756_vm8  ;;  %vm631_vm10 = vcmp.lt.s32.totalorder %v338_v55, %v5649_v8 }
  0x7b   :  { %4828 = vmatpush3.bf16.msk.msra.mxu0 %vm4401_vm13, %v5503_v12  ;;  %vm804_vm14 = vmand %vm514_vm7, %vm660_vm9  ;;  %vm630_vm7 = vcmp.lt.s32.totalorder %v337_v50, %v5649_v8  ;;  %vm485_vm9 = vcmp.ge.s32.totalorder %v338_v55, %v5644_v5  ;;  %vm468_vm13 = vcmp.ge.s32.totalorder %v321_v56, %v5644_v5  ;;  %v131_v50 = vsub.s32 4, %v5637_v1 }
  0x7c   :  { %vm805_vm1 = vmand %vm515_vm11, %vm661_vm12  ;;  %v362_v55 = vadd.s32 872, %v5637_v1 }
  0x7d   :  { %vm4449_vm4 = vmpackc.low %vm805_vm1, %vm804_vm14  ;;  %vm614_vm14 = vcmp.lt.s32.totalorder %v321_v56, %v5649_v8  ;;  %vm615_vm1 = vcmp.lt.s32.totalorder %v322_v57, %v5649_v8  ;;  %v347_v56 = vadd.s32 752, %v5637_v1 }
  0x7e   :  { %4849 = vmatprep.subr.msk.bf16.mxu1 %vm4449_vm4, %v5503_v12  ;;  %vm788_vm5 = vmand %vm498_vm15, %vm644_vm0  ;;  %vm469_vm0 = vcmp.ge.s32.totalorder %v322_v57, %v5644_v5  ;;  %vm516_vm4 = vcmp.ge.s32.totalorder %v369_v60, %v5644_v5  ;;  %v95_v57 = vunpack.c.l.bf16 %v6022_v17  ;;  %v139_v17 = vsub.s32 6, %v5637_v1 }
  0x7f   :  { %vm789_vm8 = vmand %vm499_vm2, %vm645_vm3 }
  0x80   :  { %vm4433_vm11 = vmpackc.low %vm789_vm8, %vm788_vm5  ;;  %vm662_vm5 = vcmp.lt.s32.totalorder %v369_v60, %v5649_v8  ;;  %vm663_vm8 = vcmp.lt.s32.totalorder %v370_v61, %v5649_v8  ;;  %v104_v60 = vunpack.c.l.bf16 %v6027_v18  ;;  %v331_v18 = vadd.s32 624, %v5637_v1 }
  0x81   :  { %4850 = vmatpush3.bf16.msk.msra.mxu1 %vm4433_vm11, %v5503_v12  ;;  %vm774_vm12 = vmand %vm484_vm6, %vm630_vm7  ;;  %vm517_vm7 = vcmp.ge.s32.totalorder %v370_v61, %v5644_v5  ;;  %vm500_vm11 = vcmp.ge.s32.totalorder %v353_v0, %v5644_v5  ;;  %v5501_v61 = vld [vmem:[%s7598_s1] sm:$0xff] }
  0x82   :  { %vm775_vm15 = vmand %vm485_vm9, %vm631_vm10 }
  0x83   :  { %vm4419_vm2 = vmpackc.low %vm775_vm15, %vm774_vm12  ;;  %vm646_vm12 = vcmp.lt.s32.totalorder %v353_v0, %v5649_v8  ;;  %vm647_vm15 = vcmp.lt.s32.totalorder %v354_v6, %v5649_v8  ;;  %v132_v0 = vrot.slane %v5501_v61, %v131_v50 }
  0x84   :  { %4829 = vmatprep.subr.msk.bf16.mxu0 %vm4419_vm2, %v5503_v12  ;;  %vm758_vm3 = vmand %vm468_vm13, %vm614_vm14  ;;  %vm501_vm14 = vcmp.ge.s32.totalorder %v354_v6, %v5644_v5  ;;  %vm486_vm2 = vcmp.ge.s32.totalorder %v339_v7, %v5644_v5  ;;  %v348_v6 = vadd.s32 760, %v5637_v1 }
  0x85   :  { %vm759_vm6 = vmand %vm469_vm0, %vm615_vm1 }
  0x86   :  { %vm4403_vm9 = vmpackc.low %vm759_vm6, %vm758_vm3  ;;  %vm632_vm3 = vcmp.lt.s32.totalorder %v339_v7, %v5649_v8  ;;  %vm633_vm6 = vcmp.lt.s32.totalorder %v340_v9, %v5649_v8  ;;  %v332_v7 = vadd.s32 632, %v5637_v1 }
  0x87   :  { %4830 = vmatpush3.bf16.msk.msra.mxu0 %vm4403_vm9, %v5503_v12  ;;  %vm806_vm10 = vmand %vm516_vm4, %vm662_vm5  ;;  %vm487_vm5 = vcmp.ge.s32.totalorder %v340_v9, %v5644_v5  ;;  %vm470_vm9 = vcmp.ge.s32.totalorder %v323_v11, %v5644_v5  ;;  %v162_v9 = vmul.f32 %v132_v0, %v95_v57  ;;  %v392_v57 = vadd.s32 1112, %v5637_v1 }
  0x88   :  { %vm807_vm13 = vmand %vm517_vm7, %vm663_vm8 }
  0x89   :  { %vm4451_vm0 = vmpackc.low %vm807_vm13, %vm806_vm10  ;;  %vm616_vm10 = vcmp.lt.s32.totalorder %v323_v11, %v5649_v8  ;;  %vm617_vm13 = vcmp.lt.s32.totalorder %v324_v13, %v5649_v8  ;;  %v171_v11 = vmul.f32 %v132_v0, %v104_v60  ;;  %v393_v0 = vadd.s32 1120, %v5637_v1 }
  0x8a   :  { %4851 = vmatprep.subr.msk.bf16.mxu1 %vm4451_vm0, %v5503_v12  ;;  %vm790_vm1 = vmand %vm500_vm11, %vm646_vm12  ;;  %vm471_vm12 = vcmp.ge.s32.totalorder %v324_v13, %v5644_v5  ;;  %vm518_vm0 = vcmp.ge.s32.totalorder %v371_v16, %v5644_v5  ;;  %v5502_v13 = vld [vmem:[%s7599_s5] sm:$0xff] }
  0x8b   :  { %vm791_vm4 = vmand %vm501_vm14, %vm647_vm15 }
  0x8c   :  { %vm4435_vm7 = vmpackc.low %vm791_vm4, %vm790_vm1  ;;  %vm664_vm1 = vcmp.lt.s32.totalorder %v371_v16, %v5649_v8  ;;  %vm665_vm4 = vcmp.lt.s32.totalorder %v372_v19, %v5649_v8  ;;  %v199_v16 = vrot.slane %v5502_v13, %v131_v50 }
  0x8d   :  { %4852 = vmatpush3.bf16.msk.msra.mxu1 %vm4435_vm7, %v5503_v12  ;;  %vm776_vm8 = vmand %vm486_vm2, %vm632_vm3  ;;  %vm519_vm3 = vcmp.ge.s32.totalorder %v372_v19, %v5644_v5  ;;  %vm502_vm7 = vcmp.ge.s32.totalorder %v355_v20, %v5644_v5  ;;  %v379_v19 = vadd.s32 1008, %v5637_v1 }
  0x8e   :  { %vm777_vm11 = vmand %vm487_vm5, %vm633_vm6 }
  0x8f   :  { %vm4421_vm14 = vmpackc.low %vm777_vm11, %vm776_vm8  ;;  %vm648_vm8 = vcmp.lt.s32.totalorder %v355_v20, %v5649_v8  ;;  %vm649_vm11 = vcmp.lt.s32.totalorder %v356_v21, %v5649_v8  ;;  %v97_v20 = vunpack.c.l.bf16 %v6052_v28  ;;  %v6292_v28 = vadd.f32 %v199_v16, %v162_v9 }
  0x90   :  { %4831 = vmatprep.subr.msk.bf16.mxu0 %vm4421_vm14, %v5503_v12  ;;  %vm760_vm15 = vmand %vm470_vm9, %vm616_vm10  ;;  %vm503_vm10 = vcmp.ge.s32.totalorder %v356_v21, %v5644_v5  ;;  %vm488_vm14 = vcmp.ge.s32.totalorder %v341_v22, %v5644_v5  ;;  %v106_v21 = vunpack.c.l.bf16 %v6057_v29  ;;  %v6294_v29 = vadd.f32 %v199_v16, %v171_v11 }
  0x91   :  { %vm761_vm2 = vmand %vm471_vm12, %vm617_vm13  ;;  %v395_v11 = vadd.s32 1136, %v5637_v1 }
  0x92   :  { %vm4405_vm5 = vmpackc.low %vm761_vm2, %vm760_vm15  ;;  %vm634_vm15 = vcmp.lt.s32.totalorder %v341_v22, %v5649_v8  ;;  %vm635_vm2 = vcmp.lt.s32.totalorder %v342_v23, %v5649_v8  ;;  %v140_v22 = vrot.slane %v5501_v61, %v139_v17 }
  0x93   :  { %4832 = vmatpush3.bf16.msk.msra.mxu0 %vm4405_vm5, %v5503_v12  ;;  %vm808_vm6 = vmand %vm518_vm0, %vm664_vm1  ;;  %vm489_vm1 = vcmp.ge.s32.totalorder %v342_v23, %v5644_v5  ;;  %vm472_vm5 = vcmp.ge.s32.totalorder %v325_v24, %v5644_v5  ;;  %v380_v23 = vadd.s32 1016, %v5637_v1 }
  0x94   :  { %vm809_vm9 = vmand %vm519_vm3, %vm665_vm4 }
  0x95   :  { %vm4453_vm12 = vmpackc.low %vm809_vm9, %vm808_vm6  ;;  %vm618_vm6 = vcmp.lt.s32.totalorder %v325_v24, %v5649_v8  ;;  %vm619_vm9 = vcmp.lt.s32.totalorder %v326_v25, %v5649_v8  ;;  %v363_v24 = vadd.s32 880, %v5637_v1 }
  0x96   :  { %4853 = vmatprep.subr.msk.bf16.mxu1 %vm4453_vm12, %v5503_v12  ;;  %vm792_vm13 = vmand %vm502_vm7, %vm648_vm8  ;;  %vm473_vm8 = vcmp.ge.s32.totalorder %v326_v25, %v5644_v5  ;;  %vm520_vm12 = vcmp.ge.s32.totalorder %v373_v26, %v5644_v5  ;;  %v364_v25 = vadd.s32 888, %v5637_v1 }
  0x97   :  { %vm793_vm0 = vmand %vm503_vm10, %vm649_vm11 }
  0x98   :  { %vm4437_vm3 = vmpackc.low %vm793_vm0, %vm792_vm13  ;;  %vm666_vm13 = vcmp.lt.s32.totalorder %v373_v26, %v5649_v8  ;;  %vm667_vm0 = vcmp.lt.s32.totalorder %v374_v27, %v5649_v8  ;;  %v164_v26 = vmul.f32 %v140_v22, %v97_v20 }
  0x99   :  { %4854 = vmatpush3.bf16.msk.msra.mxu1 %vm4437_vm3, %v5503_v12  ;;  %vm778_vm4 = vmand %vm488_vm14, %vm634_vm15  ;;  %vm521_vm15 = vcmp.ge.s32.totalorder %v374_v27, %v5644_v5  ;;  %vm504_vm3 = vcmp.ge.s32.totalorder %v357_v30, %v5644_v5  ;;  %v173_v27 = vmul.f32 %v140_v22, %v106_v21  ;;  %v4333_v21 = vld [vmem:[%s7598_s1 + $0x8] ss:$0 sm:$0xff] }
  0x9a   :  { %vm779_vm7 = vmand %vm489_vm1, %vm635_vm2 }
  0x9b   :  { %vm4423_vm10 = vmpackc.low %vm779_vm7, %vm778_vm4  ;;  %vm650_vm4 = vcmp.lt.s32.totalorder %v357_v30, %v5649_v8  ;;  %vm651_vm7 = vcmp.lt.s32.totalorder %v358_v31, %v5649_v8  ;;  %v207_v30 = vrot.slane %v5502_v13, %v139_v17  ;;  %v394_v17 = vadd.s32 1128, %v5637_v1 }
  0x9c   :  { %4833 = vmatprep.subr.msk.bf16.mxu0 %vm4423_vm10, %v5503_v12  ;;  %vm762_vm11 = vmand %vm472_vm5, %vm618_vm6  ;;  %vm505_vm6 = vcmp.ge.s32.totalorder %v358_v31, %v5644_v5  ;;  %vm490_vm10 = vcmp.ge.s32.totalorder %v343_v32, %v5644_v5  ;;  %v247_v31 = vpack.c.bf16 %v6294_v29, %v6292_v28  ;;  %v396_v13 = vadd.s32 1144, %v5637_v1 }
  0x9d   :  { %vm763_vm14 = vmand %vm473_vm8, %vm619_vm9 }
  0x9e   :  { %vm4407_vm1 = vmpackc.low %vm763_vm14, %vm762_vm11  ;;  %vm636_vm11 = vcmp.lt.s32.totalorder %v343_v32, %v5649_v8  ;;  %vm637_vm14 = vcmp.lt.s32.totalorder %v344_v34, %v5649_v8  ;;  %v381_v32 = vadd.s32 1024, %v5637_v1 }
  0x9f   :  { %4834 = vmatpush3.bf16.msk.msra.mxu0 %vm4407_vm1, %v5503_v12  ;;  %vm810_vm2 = vmand %vm520_vm12, %vm666_vm13  ;;  %vm491_vm13 = vcmp.ge.s32.totalorder %v344_v34, %v5644_v5  ;;  %vm474_vm1 = vcmp.ge.s32.totalorder %v327_v35, %v5644_v5  ;;  %v382_v34 = vadd.s32 1032, %v5637_v1 }
  0xa0   :  { %vm811_vm5 = vmand %vm521_vm15, %vm667_vm0 }
  0xa1   :  { %vm4455_vm8 = vmpackc.low %vm811_vm5, %vm810_vm2  ;;  %vm620_vm2 = vcmp.lt.s32.totalorder %v327_v35, %v5649_v8  ;;  %vm621_vm5 = vcmp.lt.s32.totalorder %v328_v36, %v5649_v8  ;;  %v5504_v35 = vmov 0.0  }
  0xa2   :  { %4855 = vmatprep.subr.msk.bf16.mxu1 %vm4455_vm8, %v5503_v12  ;;  %vm794_vm9 = vmand %vm504_vm3, %vm650_vm4  ;;  %vm475_vm4 = vcmp.ge.s32.totalorder %v328_v36, %v5644_v5  ;;  %vm522_vm8 = vcmp.ge.s32.totalorder %v375_v39, %v5644_v5  ;;  %v6315_v36 = vadd.f32 %v207_v30, %v164_v26 }
  0xa3   :  { %vm795_vm12 = vmand %vm505_vm6, %vm651_vm7 }
  0xa4   :  { %vm4439_vm15 = vmpackc.low %vm795_vm12, %vm794_vm9  ;;  %vm668_vm9 = vcmp.lt.s32.totalorder %v375_v39, %v5649_v8  ;;  %vm669_vm12 = vcmp.lt.s32.totalorder %v376_v41, %v5649_v8  ;;  %v6317_v39 = vadd.f32 %v207_v30, %v173_v27 }
  0xa5   :  { %4856 = vmatpush3.bf16.msk.msra.mxu1 %vm4439_vm15, %v5503_v12  ;;  %vm780_vm0 = vmand %vm490_vm10, %vm636_vm11  ;;  %vm523_vm11 = vcmp.ge.s32.totalorder %v376_v41, %v5644_v5  ;;  %vm506_vm15 = vcmp.ge.s32.totalorder %v359_v37, %v5644_v5  ;;  %v383_v41 = vadd.s32 1040, %v5637_v1 }
  0xa6   :  { %vm781_vm3 = vmand %vm491_vm13, %vm637_vm14 }
  0xa7   :  { %vm4425_vm6 = vmpackc.low %vm781_vm3, %vm780_vm0  ;;  %vm652_vm0 = vcmp.lt.s32.totalorder %v359_v37, %v5649_v8  ;;  %vm653_vm3 = vcmp.lt.s32.totalorder %v360_v40, %v5649_v8  ;;  %v384_v37 = vadd.s32 1048, %v5637_v1 }
  0xa8   :  { %4835 = vmatprep.subr.msk.bf16.mxu0 %vm4425_vm6, %v5503_v12  ;;  %vm764_vm7 = vmand %vm474_vm1, %vm620_vm2  ;;  %vm507_vm2 = vcmp.ge.s32.totalorder %v360_v40, %v5644_v5  ;;  %vm492_vm6 = vcmp.ge.s32.totalorder %v345_v48, %v5644_v5  ;;  %v249_v40 = vpack.c.bf16 %v6317_v39, %v6315_v36 }
  0xa9   :  { %vm765_vm10 = vmand %vm475_vm4, %vm621_vm5 }
  0xaa   :  { %vm4409_vm13 = vmpackc.low %vm765_vm10, %vm764_vm7  ;;  %vm638_vm7 = vcmp.lt.s32.totalorder %v345_v48, %v5649_v8  ;;  %vm639_vm10 = vcmp.lt.s32.totalorder %v346_v49, %v5649_v8  ;;  %v385_v48 = vadd.s32 1056, %v5637_v1 }
  0xab   :  { %4836 = vmatpush3.bf16.msk.msra.mxu0 %vm4409_vm13, %v5503_v12  ;;  %vm812_vm14 = vmand %vm522_vm8, %vm668_vm9  ;;  %vm493_vm9 = vcmp.ge.s32.totalorder %v346_v49, %v5644_v5  ;;  %vm476_vm13 = vcmp.ge.s32.totalorder %v329_v42, %v5644_v5  ;;  %v386_v49 = vadd.s32 1064, %v5637_v1 }
  0xac   :  { %vm813_vm1 = vmand %vm523_vm11, %vm669_vm12 }
  0xad   :  { %vm4457_vm4 = vmpackc.low %vm813_vm1, %vm812_vm14  ;;  %vm622_vm14 = vcmp.lt.s32.totalorder %v329_v42, %v5649_v8  ;;  %vm623_vm1 = vcmp.lt.s32.totalorder %v330_v45, %v5649_v8  ;;  %v387_v42 = vadd.s32 1072, %v5637_v1 }
  0xae   :  { %4857 = vmatprep.subr.msk.bf16.mxu1 %vm4457_vm4, %v5503_v12  ;;  %vm796_vm5 = vmand %vm506_vm15, %vm652_vm0  ;;  %vm477_vm0 = vcmp.ge.s32.totalorder %v330_v45, %v5644_v5  ;;  %vm524_vm4 = vcmp.ge.s32.totalorder %v377_v51, %v5644_v5  ;;  %v5150_v45 = vld [vmem:[%s7626_s26] sm:$0xff]   ;;  %s7647_s26 = sld [smem:[#allocation11_spill]] }
  0xaf   :  { %vm797_vm8 = vmand %vm507_vm2, %vm653_vm3 }
  0xb0   :  { %vm4441_vm11 = vmpackc.low %vm797_vm8, %vm796_vm5  ;;  %vm670_vm5 = vcmp.lt.s32.totalorder %v377_v51, %v5649_v8  ;;  %vm671_vm8 = vcmp.lt.s32.totalorder %v378_v52, %v5649_v8  ;;  %v388_v51 = vadd.s32 1080, %v5637_v1 }
  0xb1   :  { %4858 = vmatpush3.bf16.msk.msra.mxu1 %vm4441_vm11, %v5503_v12  ;;  %vm782_vm12 = vmand %vm492_vm6, %vm638_vm7  ;;  %vm525_vm7 = vcmp.ge.s32.totalorder %v378_v52, %v5644_v5  ;;  %vm508_vm11 = vcmp.ge.s32.totalorder %v361_v54, %v5644_v5  ;;  %v389_v52 = vadd.s32 1088, %v5637_v1 }
  0xb2   :  { %vm783_vm15 = vmand %vm493_vm9, %vm639_vm10 }
  0xb3   :  { %vm4427_vm2 = vmpackc.low %vm783_vm15, %vm782_vm12  ;;  %vm654_vm12 = vcmp.lt.s32.totalorder %v361_v54, %v5649_v8  ;;  %vm655_vm15 = vcmp.lt.s32.totalorder %v362_v55, %v5649_v8  ;;  %v390_v54 = vadd.s32 1096, %v5637_v1 }
  0xb4   :  { %4837 = vmatprep.subr.msk.bf16.mxu0 %vm4427_vm2, %v5503_v12  ;;  %vm766_vm3 = vmand %vm476_vm13, %vm622_vm14  ;;  %vm509_vm14 = vcmp.ge.s32.totalorder %v362_v55, %v5644_v5  ;;  %vm640_vm2 = vcmp.lt.s32.totalorder %v347_v56, %v5649_v8  ;;  %v391_v55 = vadd.s32 1104, %v5637_v1 }
  0xb5   :  { %vm767_vm6 = vmand %vm477_vm0, %vm623_vm1  ;;  %vm494_vm1 = vcmp.ge.s32.totalorder %v347_v56, %v5644_v5 }
  0xb6   :  { %vm4411_vm9 = vmpackc.low %vm767_vm6, %vm766_vm3  ;;  %vm641_vm6 = vcmp.lt.s32.totalorder %v348_v6, %v5649_v8 }
  0xb7   :  { %4838 = vmatpush3.bf16.msk.msra.mxu0 %vm4411_vm9, %v5503_v12  ;;  %vm814_vm10 = vmand %vm524_vm4, %vm670_vm5  ;;  %vm495_vm5 = vcmp.ge.s32.totalorder %v348_v6, %v5644_v5  ;;  %vm478_vm9 = vcmp.ge.s32.totalorder %v331_v18, %v5644_v5 }
  0xb8   :  { %vm815_vm13 = vmand %vm525_vm7, %vm671_vm8 }
  0xb9   :  { %vm4459_vm0 = vmpackc.low %vm815_vm13, %vm814_vm10  ;;  %vm624_vm10 = vcmp.lt.s32.totalorder %v331_v18, %v5649_v8  ;;  %vm625_vm13 = vcmp.lt.s32.totalorder %v332_v7, %v5649_v8 }
  0xba   :  { %4859 = vmatprep.subr.msk.bf16.mxu1 %vm4459_vm0, %v5503_v12  ;;  %vm798_vm3 = vmand %vm508_vm11, %vm654_vm12  ;;  %vm479_vm12 = vcmp.ge.s32.totalorder %v332_v7, %v5644_v5  ;;  %v85_v7 = vld [vmem:[%s7595_s7 + $0x20] ss:$36 sps:$4 sm:$0xff]   ;;  %s7629_s7 = sld [smem:[#allocation8_spill]] }
  0xbb   :  { %vm799_vm4 = vmand %vm509_vm14, %vm655_vm15  ;;  %vm526_vm15 = vcmp.ge.s32.totalorder %v379_v19, %v5644_v5  ;;  %v99_v16 = vunpack.c.l.bf16 %v85_v7 }
  0xbc   :  { %vm4443_vm7 = vmpackc.low %vm799_vm4, %vm798_vm3  ;;  %vm527_vm3 = vcmp.ge.s32.totalorder %v380_v23, %v5644_v5  ;;  %vm673_vm4 = vcmp.lt.s32.totalorder %v380_v23, %v5649_v8 }
  0xbd   :  { %4860 = vmatpush3.bf16.msk.msra.mxu1 %vm4443_vm7, %v5503_v12  ;;  %vm784_vm8 = vmand %vm494_vm1, %vm640_vm2  ;;  %vm672_vm1 = vcmp.lt.s32.totalorder %v379_v19, %v5649_v8  ;;  %vm510_vm7 = vcmp.ge.s32.totalorder %v363_v24, %v5644_v5  ;;  %v108_v19 = vunpack.c.h.bf16 %v85_v7  ;;  %v166_v23 = vmul.f32 %v4333_v21, %v99_v16 }
  0xbe   :  { %vm785_vm11 = vmand %vm495_vm5, %vm641_vm6 }
  0xbf   :  { %vm4429_vm14 = vmpackc.low %vm785_vm11, %vm784_vm8  ;;  %vm511_vm8 = vcmp.ge.s32.totalorder %v364_v25, %v5644_v5  ;;  %vm657_vm11 = vcmp.lt.s32.totalorder %v364_v25, %v5649_v8  ;;  %v4334_v25 = vld [vmem:[%s7599_s5 + $0x8] ss:$0 sm:$0xff] }
  0xc0   :  { %4839 = vmatprep.subr.msk.bf16.mxu0 %vm4429_vm14, %v5503_v12  ;;  %vm768_vm0 = vmand %vm478_vm9, %vm624_vm10  ;;  %vm656_vm9 = vcmp.lt.s32.totalorder %v363_v24, %v5649_v8  ;;  %vm528_vm14 = vcmp.ge.s32.totalorder %v381_v32, %v5644_v5  ;;  %v175_v24 = vmul.f32 %v4333_v21, %v108_v19 }
  0xc1   :  { %vm769_vm2 = vmand %vm479_vm12, %vm625_vm13 }
  0xc2   :  { %vm4413_vm5 = vmpackc.low %vm769_vm2, %vm768_vm0  ;;  %vm675_vm2 = vcmp.lt.s32.totalorder %v382_v34, %v5649_v8 }
  0xc3   :  { %4840 = vmatpush3.bf16.msk.msra.mxu0 %vm4413_vm5, %v5503_v12  ;;  %vm816_vm6 = vmand %vm526_vm15, %vm672_vm1  ;;  %vm674_vm15 = vcmp.lt.s32.totalorder %v381_v32, %v5649_v8  ;;  %vm529_vm1 = vcmp.ge.s32.totalorder %v382_v34, %v5644_v5 }
  0xc4   :  { %vm817_vm10 = vmand %vm527_vm3, %vm673_vm4  ;;  %5022 = vmatprep.subr.bf16.mxu0 %v5504_v35  ;;  %vm7582_vm3 = vmmov 0  }
  0xc5   :  { %vm4461_vm12 = vmpackc.low %vm817_vm10, %vm816_vm6  ;;  %vm530_vm6 = vcmp.ge.s32.totalorder %v383_v41, %v5644_v5  ;;  %vm677_vm10 = vcmp.lt.s32.totalorder %v384_v37, %v5649_v8 }
  0xc6   :  { %4861 = vmatprep.subr.msk.bf16.mxu1 %vm4461_vm12, %v5503_v12  ;;  %vm800_vm13 = vmand %vm510_vm7, %vm656_vm9  ;;  %1260 = vmatmul.mubr.bf16.vlgmr.msra.gmra.mrb[4].mxu0 %v247_v31  ;;  %vm676_vm7 = vcmp.lt.s32.totalorder %v383_v41, %v5649_v8  ;;  %vm531_vm9 = vcmp.ge.s32.totalorder %v384_v37, %v5644_v5 }
  0xc7   :  { %vm801_vm0 = vmand %vm511_vm8, %vm657_vm11  ;;  %5038 = vmatprep.mubr.msk.bf16.mxu0 %vm7582_vm3, %v5504_v35 }
  0xc8   :  { %vm4445_vm4 = vmpackc.low %vm801_vm0, %vm800_vm13  ;;  %vm532_vm13 = vcmp.ge.s32.totalorder %v385_v48, %v5644_v5  ;;  %vm533_vm0 = vcmp.ge.s32.totalorder %v386_v49, %v5644_v5 }
  0xc9   :  { %4862 = vmatpush3.bf16.msk.msra.mxu1 %vm4445_vm4, %v5503_v12  ;;  %vm818_vm5 = vmand %vm528_vm14, %vm674_vm15  ;;  %vm678_vm14 = vcmp.lt.s32.totalorder %v385_v48, %v5649_v8 }
  0xca   :  { %vm819_vm8 = vmand %vm529_vm1, %vm675_vm2  ;;  %5042 = vmatprep.subr.bf16.mxu1 %v5504_v35  ;;  %vm679_vm1 = vcmp.lt.s32.totalorder %v386_v49, %v5649_v8 }
  0xcb   :  { %vm4463_vm11 = vmpackc.low %vm819_vm8, %vm818_vm5  ;;  %vm534_vm5 = vcmp.ge.s32.totalorder %v387_v42, %v5644_v5  ;;  %vm535_vm8 = vcmp.ge.s32.totalorder %v388_v51, %v5644_v5 }
  0xcc   :  { %5023 = vmatpush3.bf16.msk.msra.mxu0 %vm4463_vm11, %v5503_v12  ;;  %1301 = vmatmul.mubr.bf16.vlgmr.msra.gmra.mrb[4].mxu1 %v249_v40  ;;  %vm6342_vm12 = vmand %vm530_vm6, %vm676_vm7  ;;  %vm680_vm6 = vcmp.lt.s32.totalorder %v387_v42, %v5649_v8 }
  0xcd   :  { %5024 = vmatprep.subr.bf16.mxu0 %v5504_v35  ;;  %vm821_vm15 = vmand %vm531_vm9, %vm677_vm10  ;;  %5044 = vmatprep.mubr.msk.bf16.mxu1 %vm7582_vm3, %v5504_v35  ;;  %vm681_vm9 = vcmp.lt.s32.totalorder %v388_v51, %v5649_v8 }
  0xce   :  { %vm4465_vm2 = vmpackc.low %vm821_vm15, %vm6342_vm12  ;;  %vm536_vm12 = vcmp.ge.s32.totalorder %v389_v52, %v5644_v5  ;;  %vm537_vm15 = vcmp.ge.s32.totalorder %v390_v54, %v5644_v5  ;;  %5043 = vmatpush3.bf16.msra.mxu1 %v5150_v45 }
  0xcf   :  { %vm6357_vm4 = vmand %vm532_vm13, %vm678_vm14  ;;  %vm682_vm13 = vcmp.lt.s32.totalorder %v389_v52, %v5649_v8  ;;  %5048 = vmatprep.subr.bf16.mxu1 %v5504_v35 }
  0xd0   :  { %5025 = vmatpush3.bf16.msk.msra.mxu0 %vm4465_vm2, %v5503_v12  ;;  %vm823_vm7 = vmand %vm533_vm0, %vm679_vm1  ;;  %vm683_vm0 = vcmp.lt.s32.totalorder %v390_v54, %v5649_v8 }
  0xd1   :  { %5026 = vmatprep.subr.bf16.mxu0 %v5504_v35  ;;  %vm4467_vm10 = vmpackc.low %vm823_vm7, %vm6357_vm4  ;;  %vm538_vm4 = vcmp.ge.s32.totalorder %v391_v55, %v5644_v5  ;;  %vm539_vm7 = vcmp.ge.s32.totalorder %v392_v57, %v5644_v5 }
  0xd2   :  { %vm6371_vm11 = vmand %vm534_vm5, %vm680_vm6  ;;  %vm684_vm5 = vcmp.lt.s32.totalorder %v391_v55, %v5649_v8 }
  0xd3   :  { %vm6378_vm14 = vmand %vm535_vm8, %vm681_vm9  ;;  %vm685_vm8 = vcmp.lt.s32.totalorder %v392_v57, %v5649_v8 }
  0xd4   :  { %5027 = vmatpush3.bf16.msk.msra.mxu0 %vm4467_vm10, %v5503_v12  ;;  %vm4469_vm1 = vmpackc.low %vm6378_vm14, %vm6371_vm11  ;;  %vm541_vm14 = vcmp.ge.s32.totalorder %v394_v17, %v5644_v5 }
  0xd5   :  { %5028 = vmatprep.subr.bf16.mxu0 %v5504_v35  ;;  %vm6390_vm2 = vmand %vm536_vm12, %vm682_vm13  ;;  %vm540_vm12 = vcmp.ge.s32.totalorder %v393_v0, %v5644_v5  ;;  %vm686_vm13 = vcmp.lt.s32.totalorder %v393_v0, %v5649_v8 }
  0xd6   :  { %vm6397_vm6 = vmand %vm537_vm15, %vm683_vm0  ;;  %vm687_vm15 = vcmp.lt.s32.totalorder %v394_v17, %v5649_v8 }
  0xd7   :  { %vm4471_vm9 = vmpackc.low %vm6397_vm6, %vm6390_vm2  ;;  %vm543_vm6 = vcmp.ge.s32.totalorder %v396_v13, %v5644_v5 }
  0xd8   :  { %5029 = vmatpush3.bf16.msk.msra.mxu0 %vm4469_vm1, %v5503_v12  ;;  %vm6409_vm10 = vmand %vm538_vm4, %vm684_vm5  ;;  %vm542_vm4 = vcmp.ge.s32.totalorder %v395_v11, %v5644_v5  ;;  %vm688_vm5 = vcmp.lt.s32.totalorder %v395_v11, %v5649_v8  ;;  %v6457_v5 = vadd.f32 %v4334_v25, %v166_v23 }
  0xd9   :  { %5030 = vmatprep.subr.bf16.mxu0 %v5504_v35  ;;  %vm6417_vm11 = vmand %vm539_vm7, %vm685_vm8  ;;  %vm689_vm7 = vcmp.lt.s32.totalorder %v396_v13, %v5649_v8  ;;  %v6459_v8 = vadd.f32 %v4334_v25, %v175_v24 }
  0xda   :  { %vm4473_vm0 = vmpackc.low %vm6417_vm11, %vm6409_vm10 }
  0xdb   :  { %vm6432_vm1 = vmand %vm540_vm12, %vm686_vm13  ;;  %v251_v26 = vpack.c.bf16 %v6459_v8, %v6457_v5  ;;  %vm7584_vm12 = vcmask 130048   ;;  %vm1428_vm13 = vcmask 1040384  }
  0xdc   :  { %5031 = vmatpush3.bf16.msk.msra.mxu0 %vm4471_vm9, %v5503_v12  ;;  %vm6440_vm2 = vmand %vm541_vm14, %vm687_vm15  ;;  %vm1424_vm14 = vcmask 15360  }
  0xdd   :  { %5032 = vmatprep.subr.bf16.mxu0 %v5504_v35  ;;  %vm4475_vm8 = vmpackc.low %vm6440_vm2, %vm6432_vm1 }
  0xde   :  { %vm832_vm9 = vmand %vm542_vm4, %vm688_vm5 }
  0xdf   :  { %vm833_vm10 = vmand %vm543_vm6, %vm689_vm7 }
  0xe0   :  { %5033 = vmatpush3.bf16.msk.msra.mxu0 %vm4473_vm0, %v5503_v12  ;;  %vm4477_vm11 = vmpackc.low %vm833_vm10, %vm832_vm9 }
  0xe1   :  { %5034 = vmatprep.subr.bf16.mxu0 %v5504_v35 }
  0xe4   :  { %5035 = vmatpush3.bf16.msk.msra.mxu0 %vm4475_vm8, %v5503_v12 }
  0xe5   :  { %5036 = vmatprep.subr.bf16.mxu0 %v5504_v35 }
  0xe8   :  { %5037 = vmatpush3.bf16.msk.msra.mxu0 %vm4477_vm11, %v5503_v12 }
  0xeb   :  { %5039 = vmatmul.mubr.bf16.vlgmr.msra.gmra.mrb[8].mxu0 %v251_v26 }
 0x13c   :  { %v4797_v27 = vpop.f32.mrb[0].mxu0 }
 0x13d   :  { %v4798_v30 = vpop.f32.mrb[1].mxu0 }
 0x13e   :  { %v4799_v31 = vadd.f32 %v4798_v30, %v4797_v27  ;;  %v4800_v32 = vpop.f32.mrb[2].mxu0 }
 0x13f   :  { %v4819_v34 = vpop.f32.mrb[0].mxu1  ;;  %v4801_v41 = vpop.f32.mrb[3].mxu0 }
 0x140   :  { %v4820_v37 = vpop.f32.mrb[1].mxu1  ;;  %v4802_v40 = vadd.f32 %v4801_v41, %v4800_v32 }
 0x141   :  { %v4821_v48 = vadd.f32 %v4820_v37, %v4819_v34  ;;  %v4822_v49 = vpop.f32.mrb[2].mxu1  ;;  %v4479_v34 = vld [vmem:[%s7628_s0] ss:$0 sm:$0xff] }
 0x142   :  { %v4823_v42 = vpop.f32.mrb[3].mxu1 }
 0x143   :  { %v1221_v51 = vadd.f32 %v4821_v48, %v4799_v31  ;;  %v4824_v52 = vadd.f32 %v4823_v42, %v4822_v49  ;;  %v1416_v31 = vld [vmem:[%s7627_s28] sm:$0x1]  ;;  %s7648_s28 = sld [smem:[#allocation10_spill]] }
 0x144   :  { %v1430_v32 = vsel %vm1428_vm13, %v1416_v31, 0 }
 0x145   :  { %v1224_v50 = vadd.f32 %v4824_v52, %v4802_v40 }
 0x149   :  { %v5194_v31 = vld [vmem:[%s7648_s28 + $0x50] ss:$12 sps:$4 sm:$0xff]  }
 0x199   :  { %v4841_v54 = vpop.f32.mrb[4].mxu0 }
 0x19a   :  { %v4842_v55 = vpop.f32.mrb[5].mxu0 }
 0x19b   :  { %v4843_v56 = vadd.f32 %v4842_v55, %v4841_v54  ;;  %v4844_v57 = vpop.f32.mrb[6].mxu0  ;;  %v4482_v55 = vld [vmem:[%s7630_s6] ss:$0 sm:$0xff] }
 0x19c   :  { %v4845_v60 = vpop.f32.mrb[7].mxu0 }
 0x19d   :  { %v1262_v61 = vadd.f32 %v4843_v56, %v1221_v51  ;;  %v4846_v0 = vadd.f32 %v4845_v60, %v4844_v57 }
 0x19f   :  { %v4863_v6 = vpop.f32.mrb[4].mxu1  ;;  %v1265_v17 = vadd.f32 %v4846_v0, %v1224_v50  ;;  %v1476_v50 = vld [vmem:[%s7629_s7] sm:$0x1] }
 0x1a0   :  { %v4864_v18 = vpop.f32.mrb[5].mxu1  ;;  %v1488_v54 = vsel %vm1428_vm13, %v1476_v50, 0 }
 0x1a1   :  { %v4865_v7 = vadd.f32 %v4864_v18, %v4863_v6  ;;  %v4866_v9 = vpop.f32.mrb[6].mxu1 }
 0x1a2   :  { %v4867_v11 = vpop.f32.mrb[7].mxu1 }
 0x1a3   :  { %v4868_v13 = vadd.f32 %v4867_v11, %v4866_v9  ;;  %v1303_v16 = vadd.f32 %v4865_v7, %v1262_v61  ;;  %v1079_v9 = vadd.s32 1, %v5658_v10  ;;  %v6494_v11 = vmul.u32 72, %v5658_v10 }
 0x1a5   :  { %v1306_v19 = vadd.f32 %v4868_v13, %v1265_v17  ;;  %v6496_v13 = vmul.u32 72, %v1079_v9  ;;  %vm1069_vm15 = vcmp.ge.s32.totalorder %v5639_v2, %v6494_v11  ;;  %v5178_v9 = vld [vmem:[%s7648_s28 + $0xc8] ss:$12 sps:$4 sm:$0xff]  }
 0x1a7   :  { %vm1091_vm0 = vcmp.lt.s32.totalorder %v5639_v2, %v6496_v13 }
 0x1a8   :  { %vm6513_vm5 = vmand %vm1069_vm15, %vm1091_vm0 }
 0x1be   :  { %v1343_v20 = vpop.f32.mrb[8].mxu0 }
 0x1bf   :  { %v1344_v21 = vadd.f32 %v1343_v20, %v1303_v16  ;;  %v5040_v22 = vpop.f32.mrb[9].mxu0  ;;  %v1050_v16 = vadd.s32 128, %v5639_v2  ;;  %v1078_v20 = vadd.s32 1, %v5637_v1 }
 0x1c0   :  { %v1346_v23 = vpop.f32.mrb[10].mxu0  ;;  %v5160_v22 = vld [vmem:[%s7648_s28 + $0x48] ss:$12 sps:$4 sm:$0xff]  }
 0x1c1   :  { %v1347_v24 = vadd.f32 %v1346_v23, %v1306_v19  ;;  %v5041_v25 = vpop.f32.mrb[11].mxu0  ;;  %v1350_v26 = vmul.f32 0.013888889, %v1344_v21  ;;  %v6500_v19 = vmul.u32 72, %v5637_v1  ;;  %v1052_v21 = vadd.s32 384, %v5639_v2 }
 0x1c2   :  { %vm1070_vm2 = vcmp.ge.s32.totalorder %v1050_v16, %v6494_v11  ;;  %v6510_v10 = vmul.u32 72, %v1078_v20  ;;  %vm1092_vm4 = vcmp.lt.s32.totalorder %v1050_v16, %v6496_v13  ;;  %v5506_v1 = vmov 0   ;;  %v5183_v20 = vld [vmem:[%s7648_s28 + $0xe0] ss:$12 sps:$4 sm:$0xff]   ;;  %v5188_v23 = vld [vmem:[%s7648_s28 + $0xf8] ss:$12 sps:$4 sm:$0xff]  }
 0x1c3   :  { %v1351_v27 = vmul.f32 0.013888889, %v1347_v24  ;;  %vm1061_vm1 = vcmp.ge.s32.totalorder %v1050_v16, %v6500_v19  ;;  %1622 = vmatprep.mubr.bf16.mxu0 %v5506_v1  ;;  %vm1110_vm6 = vmand %vm1070_vm2, %vm1092_vm4  ;;  %vm1072_vm7 = vcmp.ge.s32.totalorder %v1052_v21, %v6494_v11  ;;  %vm1094_vm8 = vcmp.lt.s32.totalorder %v1052_v21, %v6496_v13 }
 0x1c4   :  { %vm1083_vm9 = vcmp.lt.s32.totalorder %v1050_v16, %v6510_v10  ;;  %vm1060_vm10 = vcmp.ge.s32.totalorder %v5639_v2, %v6500_v19  ;;  %vm1082_vm11 = vcmp.lt.s32.totalorder %v5639_v2, %v6510_v10  ;;  %vm6526_vm13 = vmand %vm1072_vm7, %vm1094_vm8  ;;  %v1051_v24 = vadd.s32 256, %v5639_v2  ;;  %v5159_v16 = vld [vmem:[%s7648_s28 + $0x34] ss:$12 sps:$4 sm:$0xff]  }
 0x1c5   :  { %v1352_v30 = vpack.c.bf16 %v1351_v27, %v1350_v26  ;;  %vm1063_vm0 = vcmp.ge.s32.totalorder %v1052_v21, %v6500_v19  ;;  %vm1085_vm2 = vcmp.lt.s32.totalorder %v1052_v21, %v6510_v10  ;;  %vm1100_vm4 = vmand %vm1060_vm10, %vm1082_vm11  ;;  %v1054_v25 = vadd.s32 640, %v5639_v2  ;;  %v5162_v21 = vld [vmem:[%s7648_s28 + $0x4c] ss:$12 sps:$4 sm:$0xff]  }
 0x1c6   :  { %vm1062_vm7 = vcmp.ge.s32.totalorder %v1051_v24, %v6500_v19  ;;  %vm1084_vm8 = vcmp.lt.s32.totalorder %v1051_v24, %v6510_v10  ;;  %v1056_v26 = vadd.s32 896, %v5639_v2  ;;  %v1053_v27 = vadd.s32 512, %v5639_v2 }
 0x1c7   :  { %5045 = vmatmul.mubr.msk.bf16.vlgmr.msra.gmra.mrb[8].mxu1 %vm7584_vm12, %v1352_v30  ;;  %vm1103_vm12 = vmand %vm1063_vm0, %vm1085_vm2  ;;  %v1055_v30 = vadd.s32 768, %v5639_v2 }
 0x1c8   :  { %5050 = vmatprep.mubr.msk.bf16.mxu1 %vm7582_vm3, %v5504_v35  ;;  %5049 = vmatpush3.bf16.msra.mxu1 %v1430_v32  ;;  %vm1102_vm10 = vmand %vm1062_vm7, %vm1084_vm8  ;;  %vm1067_vm0 = vcmp.ge.s32.totalorder %v1056_v26, %v6500_v19  ;;  %vm1089_vm2 = vcmp.lt.s32.totalorder %v1056_v26, %v6510_v10  ;;  %vm1076_vm7 = vcmp.ge.s32.totalorder %v1056_v26, %v6494_v11  ;;  %v1057_v32 = vadd.s32 1024, %v5639_v2  ;;  %v5199_v2 = vld [vmem:[%s7648_s28 + $0x68] ss:$12 sps:$4 sm:$0xff]  }
 0x1c9   :  { %5054 = vmatprep.subr.bf16.mxu1 %v5504_v35  ;;  %vm1098_vm8 = vcmp.lt.s32.totalorder %v1056_v26, %v6496_v13  ;;  %v5163_v26 = vld [vmem:[%s7648_s28 + $0x60] ss:$12 sps:$4 sm:$0xff]  }
 0x29a   :  { %v1406_v41 = vpop.f32.mrb[8].mxu1 }
 0x29b   :  { %v1407_v37 = vadd.f32 %v4479_v34, %v1406_v41  ;;  %v5046_v40 = vpop.f32.mrb[9].mxu1  ;;  %v5171_v41 = vld [vmem:[%s7648_s28 + $0x94] ss:$12 sps:$4 sm:$0xff]  }
 0x29c   :  { %v1409_v48 = vpop.f32.mrb[10].mxu1  ;;  %v5203_v40 = vld [vmem:[%s7648_s28 + $0x140] ss:$12 sps:$4 sm:$0xff]  }
 0x29d   :  { %v1410_v49 = vadd.f32 %v4479_v34, %v1409_v48  ;;  %v5047_v42 = vpop.f32.mrb[11].mxu1  ;;  %v1413_v45 = vmax.f32 %v1407_v37, 0.0  ;;  %v4484_v48 = vld [vmem:[%s7647_s26] ss:$0 sm:$0xff]  ;;  %v5198_v34 = vld [vmem:[%s7648_s28 + $0x128] ss:$12 sps:$4 sm:$0xff]  }
 0x29e   :  { %v5169_v37 = vld [vmem:[%s7648_s28 + $0x90] ss:$12 sps:$4 sm:$0xff]  }
 0x29f   :  { %v1414_v51 = vmax.f32 %v1410_v49, 0.0 }
 0x2a1   :  { %v1415_v52 = vpack.c.bf16 %v1414_v51, %v1413_v45 }
 0x2a3   :  { %5051 = vmatmul.mubr.msk.bf16.vlgmr.msra.gmra.mrb[12].mxu1 %vm1424_vm14, %v1415_v52 }
 0x2a4   :  { %5056 = vmatprep.mubr.msk.bf16.mxu1 %vm7582_vm3, %v5504_v35  ;;  %5055 = vmatpush3.bf16.msra.mxu1 %v1488_v54  ;;  %vm4490_vm3 = vmpackc.low %vm6513_vm5, %vm1100_vm4 }
 0x376   :  { %v1466_v56 = vpop.f32.mrb[12].mxu1 }
 0x377   :  { %v1467_v57 = vadd.f32 %v4482_v55, %v1466_v56  ;;  %v5052_v60 = vpop.f32.mrb[13].mxu1 }
 0x378   :  { %v1469_v61 = vpop.f32.mrb[14].mxu1 }
 0x379   :  { %v1470_v0 = vadd.f32 %v4482_v55, %v1469_v61  ;;  %v5053_v6 = vpop.f32.mrb[15].mxu1  ;;  %v1473_v17 = vmax.f32 %v1467_v57, 0.0 }
 0x37b   :  { %v1474_v18 = vmax.f32 %v1470_v0, 0.0 }
 0x37d   :  { %v1475_v7 = vpack.c.bf16 %v1474_v18, %v1473_v17  ;;  %v5153_v18 = vld [vmem:[%s7648_s28 + $0x4] ss:$12 sps:$4 sm:$0xff]  }
 0x37f   :  { %5057 = vmatmul.mubr.msk.bf16.vlgmr.msra.gmra.mrb[16].mxu1 %vm1424_vm14, %v1475_v7  ;;  %vm1101_vm14 = vmand %vm1061_vm1, %vm1083_vm9  ;;  %vm1071_vm1 = vcmp.ge.s32.totalorder %v1051_v24, %v6494_v11  ;;  %v5151_v7 = vld [vmem:[%s7648_s28] ss:$12 sps:$4 sm:$0xff]  }
 0x380   :  { %1579 = vmatprep.mubr.bf16.mxu1 %v5506_v1  ;;  %vm4488_vm15 = vmpackc.low %vm1110_vm6, %vm1101_vm14  ;;  %vm1093_vm6 = vcmp.lt.s32.totalorder %v1051_v24, %v6496_v13  ;;  %vm1074_vm14 = vcmp.ge.s32.totalorder %v1054_v25, %v6494_v11  ;;  %v5165_v24 = vld [vmem:[%s7648_s28 + $0x64] ss:$12 sps:$4 sm:$0xff]  }
 0x381   :  { %4489 = vmatprep.subr.msk.bf16.mxu1 %vm4488_vm15, %v5503_v12  ;;  %vm4493_vm9 = vmpackc.low %vm6526_vm13, %vm1103_vm12  ;;  %vm1087_vm15 = vcmp.lt.s32.totalorder %v1054_v25, %v6510_v10  ;;  %vm1096_vm12 = vcmp.lt.s32.totalorder %v1054_v25, %v6496_v13 }
 0x382   :  { %4491 = vmatpush1.bf16.msk.msra.mxu1 %vm4490_vm3, %v5503_v12  ;;  %4494 = vmatprep.subr.msk.bf16.mxu0 %vm4493_vm9, %v5503_v12  ;;  %vm1111_vm11 = vmand %vm1071_vm1, %vm1093_vm6  ;;  %vm1065_vm3 = vcmp.ge.s32.totalorder %v1054_v25, %v6500_v19  ;;  %vm1064_vm9 = vcmp.ge.s32.totalorder %v1053_v27, %v6500_v19  ;;  %v5189_v25 = vld [vmem:[%s7648_s28 + $0x38] ss:$12 sps:$4 sm:$0xff]  }
 0x383   :  { %vm4495_vm5 = vmpackc.low %vm1111_vm11, %vm1102_vm10  ;;  %vm1086_vm10 = vcmp.lt.s32.totalorder %v1053_v27, %v6510_v10 }
 0x384   :  { %4496 = vmatpush1.bf16.msk.msra.mxu0 %vm4495_vm5, %v5503_v12  ;;  %vm1105_vm13 = vmand %vm1065_vm3, %vm1087_vm15  ;;  %vm1073_vm5 = vcmp.ge.s32.totalorder %v1053_v27, %v6494_v11  ;;  %vm1095_vm3 = vcmp.lt.s32.totalorder %v1053_v27, %v6496_v13  ;;  %v5193_v27 = vld [vmem:[%s7648_s28 + $0x110] ss:$12 sps:$4 sm:$0xff]  }
 0x385   :  { %vm1114_vm4 = vmand %vm1074_vm14, %vm1096_vm12  ;;  %vm1066_vm12 = vcmp.ge.s32.totalorder %v1055_v30, %v6500_v19 }
 0x386   :  { %vm4498_vm1 = vmpackc.low %vm1114_vm4, %vm1105_vm13  ;;  %vm1088_vm13 = vcmp.lt.s32.totalorder %v1055_v30, %v6510_v10  ;;  %vm1097_vm4 = vcmp.lt.s32.totalorder %v1055_v30, %v6496_v13 }
 0x387   :  { %4499 = vmatprep.subr.msk.bf16.mxu1 %vm4498_vm1, %v5503_v12  ;;  %vm1107_vm6 = vmand %vm1067_vm0, %vm1089_vm2  ;;  %vm1075_vm2 = vcmp.ge.s32.totalorder %v1055_v30, %v6494_v11  ;;  %vm1068_vm1 = vcmp.ge.s32.totalorder %v1057_v32, %v6500_v19  ;;  %v5179_v19 = vld [vmem:[%s7648_s28 + $0x8] ss:$12 sps:$4 sm:$0xff]  }
 0x388   :  { %vm1116_vm11 = vmand %vm1076_vm7, %vm1098_vm8  ;;  %v5168_v30 = vld [vmem:[%s7648_s28 + $0x7c] ss:$12 sps:$4 sm:$0xff]  }
 0x389   :  { %vm4503_vm14 = vmpackc.low %vm1116_vm11, %vm1107_vm6  ;;  %vm1090_vm6 = vcmp.lt.s32.totalorder %v1057_v32, %v6510_v10  ;;  %vm1099_vm11 = vcmp.lt.s32.totalorder %v1057_v32, %v6496_v13  ;;  %v5154_v13 = vld [vmem:[%s7648_s28 + $0x18] ss:$12 sps:$4 sm:$0xff]   ;;  %v5184_v10 = vld [vmem:[%s7648_s28 + $0x20] ss:$12 sps:$4 sm:$0xff]  }
 0x38a   :  { %4504 = vmatprep.subr.msk.bf16.mxu0 %vm4503_vm14, %v5503_v12  ;;  %vm6565_vm15 = vmand %vm1064_vm9, %vm1086_vm10  ;;  %vm1077_vm10 = vcmp.ge.s32.totalorder %v1057_v32, %v6494_v11  ;;  %v5156_v11 = vld [vmem:[%s7648_s28 + $0x1c] ss:$12 sps:$4 sm:$0xff]   ;;  %v5166_v32 = vld [vmem:[%s7648_s28 + $0x78] ss:$12 sps:$4 sm:$0xff]  }
 0x38b   :  { %vm6572_vm0 = vmand %vm1073_vm5, %vm1095_vm3 }
 0x38c   :  { %vm4500_vm7 = vmpackc.low %vm6572_vm0, %vm6565_vm15 }
 0x38d   :  { %vm6582_vm8 = vmand %vm1066_vm12, %vm1088_vm13  ;;  %vm7649_vm13 = vcmask 130048  }
 0x38e   :  { %vm6588_vm9 = vmand %vm1075_vm2, %vm1097_vm4  ;;  %vm7653_vm4 = vmmov 0  }
 0x38f   :  { %vm4505_vm5 = vmpackc.low %vm6588_vm9, %vm6582_vm8  ;;  %vm4211_vm8 = vcmask 523264  }
 0x390   :  { %vm6598_vm3 = vmand %vm1068_vm1, %vm1090_vm6  ;;  %vm4282_vm1 = vcmask 261120  }
 0x391   :  { %vm6602_vm14 = vmand %vm1077_vm10, %vm1099_vm11 }
 0x392   :  { %vm4508_vm12 = vmpackc.low %vm6602_vm14, %vm6598_vm3 }
 0x393   :  { %vm7650_vm2 = vmmov %vm7649_vm13 }
 0x394   :  { %vm7651_vm15 = vmmov %vm7650_vm2 }
 0x395   :  { %vm7652_vm0 = vmmov %vm7650_vm2 }
 0x452   :  { %v1524_v49 = vpop.f32.mrb[16].mxu1 }
 0x453   :  { %v1525_v42 = vadd.f32 %v4484_v48, %v1524_v49  ;;  %v5058_v45 = vpop.f32.mrb[17].mxu1  ;;  %v5204_v49 = vld [vmem:[%s7648_s28 + $0x80] ss:$12 sps:$4 sm:$0xff]  }
 0x454   :  { %v1527_v51 = vpop.f32.mrb[18].mxu1  ;;  %v5177_v45 = vld [vmem:[%s7648_s28 + $0xc4] ss:$12 sps:$4 sm:$0xff]  }
 0x455   :  { %v4486_v52 = vmul.f32 -1.442695, %v1525_v42  ;;  %v1528_v50 = vadd.f32 %v4484_v48, %v1527_v51  ;;  %v5059_v54 = vpop.f32.mrb[19].mxu1  ;;  %v5174_v48 = vld [vmem:[%s7648_s28 + $0xac] ss:$12 sps:$4 sm:$0xff]  }
 0x456   :  { %v5172_v42 = vld [vmem:[%s7648_s28 + $0xa8] ss:$12 sps:$4 sm:$0xff]   ;;  %v5175_v51 = vld [vmem:[%s7648_s28 + $0xc0] ss:$12 sps:$4 sm:$0xff]  }
 0x457   :  { %5493 = vpow2.f32 %v4486_v52  ;;  %v4487_v55 = vmul.f32 -1.442695, %v1528_v50  ;;  %v5182_v52 = vld [vmem:[%s7648_s28 + $0xdc] ss:$12 sps:$4 sm:$0xff]   ;;  %v5180_v50 = vld [vmem:[%s7648_s28 + $0xd8] ss:$12 sps:$4 sm:$0xff]  }
 0x458   :  { %v5187_v54 = vld [vmem:[%s7648_s28 + $0xf4] ss:$12 sps:$4 sm:$0xff]  }
 0x459   :  { %5495 = vpow2.f32 %v4487_v55  ;;  %v5185_v55 = vld [vmem:[%s7648_s28 + $0xf0] ss:$12 sps:$4 sm:$0xff]  }
 0x461   :  { %v5494_v56 = vpop.eup %5493 }
 0x462   :  { %v1537_v57 = vadd.f32 1.0, %v5494_v56  ;;  %v5192_v56 = vld [vmem:[%s7648_s28 + $0x10c] ss:$12 sps:$4 sm:$0xff]  }
 0x463   :  { %v5496_v60 = vpop.eup %5495 }
 0x464   :  { %v1538_v61 = vadd.f32 1.0, %v5496_v60  ;;  %5497 = vrcp.f32 %v1537_v57  ;;  %v5190_v57 = vld [vmem:[%s7648_s28 + $0x108] ss:$12 sps:$4 sm:$0xff]   ;;  %v5197_v60 = vld [vmem:[%s7648_s28 + $0x124] ss:$12 sps:$4 sm:$0xff]  }
 0x466   :  { %5499 = vrcp.f32 %v1538_v61  ;;  %v5195_v61 = vld [vmem:[%s7648_s28 + $0x120] ss:$12 sps:$4 sm:$0xff]  }
 0x46e   :  { %v5498_v0 = vpop.eup %5497 }
 0x470   :  { %v5500_v6 = vpop.eup %5499 }
 0x471   :  { %v1543_v17 = vpack.c.bf16 %v5500_v6, %v5498_v0  ;;  %v5202_v0 = vld [vmem:[%s7648_s28 + $0x13c] ss:$12 sps:$4 sm:$0xff]   ;;  %v5200_v6 = vld [vmem:[%s7648_s28 + $0x138] ss:$12 sps:$4 sm:$0xff]  }
 0x473   :  { %4492 = vmatmul.mubr.msk.bf16.vlgmr.msra.gmra.mrb[20].mxu1 %vm7649_vm13, %v1543_v17  ;;  %4497 = vmatmul.mubr.msk.bf16.vlgmr.msra.gmra.mrb[12].mxu0 %vm7650_vm2, %v1543_v17 }
 0x474   :  { %4501 = vmatpush1.bf16.msk.msra.mxu1 %vm4500_vm7, %v5503_v12  ;;  %4506 = vmatpush1.bf16.msk.msra.mxu0 %vm4505_vm5, %v5503_v12  ;;  %vm7654_vm7 = vmmov %vm7652_vm0 }
 0x475   :  { %1665 = vmatprep.mubr.bf16.mxu1 %v5506_v1  ;;  %1708 = vmatprep.mubr.bf16.mxu0 %v5506_v1 }
 0x476   :  { %5060 = vmatprep.subr.bf16.mxu1 %v5504_v35  ;;  %3244 = vmatprep.subr.bf16.mxu0 %v5153_v18  ;;  %v5208_v18 = vld [vmem:[%s7648_s28 + $0x158] ss:$12 sps:$4 sm:$0xff]  }
 0x47b   :  { %4502 = vmatmul.mubr.msk.bf16.vlgmr.msra.gmra.mrb[24].mxu1 %vm7651_vm15, %v1543_v17  ;;  %4507 = vmatmul.mubr.msk.bf16.vlgmr.msra.gmra.mrb[16].mxu0 %vm7652_vm0, %v1543_v17 }
 0x47c   :  { %5061 = vmatpush3.bf16.msk.msra.mxu1 %vm4508_vm12, %v5503_v12  ;;  %5062 = vmatprep.mubr.msk.bf16.mxu1 %vm7653_vm4, %v5504_v35  ;;  %v5157_v12 = vld [vmem:[%s7648_s28 + $0x30] ss:$12 sps:$4 sm:$0xff]  }
 0x47d   :  { %3245 = vmatpush1.bf16.msra.mxu0 %v5151_v7  ;;  %4886 = vmatprep.subr.bf16.mxu1 %v5178_v9  ;;  %v5205_v7 = vld [vmem:[%s7648_s28 + $0x150] ss:$12 sps:$4 sm:$0xff]   ;;  %v5209_v9 = vld [vmem:[%s7648_s28 + $0x98] ss:$12 sps:$4 sm:$0xff]  }
 0x47e   :  { %3246 = vmatprep.subr.bf16.mxu0 %v5156_v11  ;;  %v5212_v11 = vld [vmem:[%s7648_s28 + $0x16c] ss:$12 sps:$4 sm:$0xff]  }
 0x481   :  { %3247 = vmatpush1.bf16.msra.mxu0 %v5154_v13  ;;  %v5213_v13 = vld [vmem:[%s7648_s28 + $0x170] ss:$12 sps:$4 sm:$0xff]  }
 0x482   :  { %3248 = vmatprep.subr.bf16.mxu0 %v5159_v16  ;;  %v5210_v16 = vld [vmem:[%s7648_s28 + $0x168] ss:$12 sps:$4 sm:$0xff]  }
 0x483   :  { %5063 = vmatmul.mubr.msk.bf16.vlgmr.msra.gmra.mrb[28].mxu1 %vm7654_vm7, %v1543_v17  ;;  %v5207_v17 = vld [vmem:[%s7648_s28 + $0x154] ss:$12 sps:$4 sm:$0xff]  }
 0x484   :  { %4887 = vmatpush3.bf16.msra.mxu1 %v5179_v19  ;;  %v5214_v19 = vld [vmem:[%s7648_s28 + $0xb0] ss:$12 sps:$4 sm:$0xff]  }
 0x485   :  { %3249 = vmatpush1.bf16.msra.mxu0 %v5157_v12  ;;  %4888 = vmatprep.subr.bf16.mxu1 %v5183_v20  ;;  %v5217_v12 = vld [vmem:[%s7648_s28 + $0x184] ss:$12 sps:$4 sm:$0xff]   ;;  %v5218_v20 = vld [vmem:[%s7648_s28 + $0x248] ss:$12 sps:$4 sm:$0xff]  }
 0x486   :  { %3250 = vmatprep.subr.bf16.mxu0 %v5162_v21 }
 0x488   :  { %4889 = vmatpush3.bf16.msra.mxu1 %v5184_v10 }
 0x489   :  { %3251 = vmatpush1.bf16.msra.mxu0 %v5160_v22  ;;  %4890 = vmatprep.subr.bf16.mxu1 %v5188_v23 }
 0x48a   :  { %3252 = vmatprep.subr.bf16.mxu0 %v5165_v24 }
 0x48c   :  { %4891 = vmatpush3.bf16.msra.mxu1 %v5189_v25 }
 0x48d   :  { %3253 = vmatpush1.bf16.msra.mxu0 %v5163_v26  ;;  %4892 = vmatprep.subr.bf16.mxu1 %v5193_v27 }
 0x48e   :  { %3254 = vmatprep.subr.bf16.mxu0 %v5168_v30 }
 0x490   :  { %4893 = vmatpush3.bf16.msra.mxu1 %v5194_v31 }
 0x491   :  { %3255 = vmatpush1.bf16.msra.mxu0 %v5166_v32  ;;  %4894 = vmatprep.subr.bf16.mxu1 %v5198_v34 }
 0x492   :  { %3256 = vmatprep.subr.bf16.mxu0 %v5171_v41 }
 0x494   :  { %4895 = vmatpush3.bf16.msra.mxu1 %v5199_v2 }
 0x495   :  { %3257 = vmatpush1.bf16.msra.mxu0 %v5169_v37  ;;  %4896 = vmatprep.subr.bf16.mxu1 %v5203_v40 }
 0x496   :  { %3258 = vmatprep.subr.bf16.mxu0 %v5174_v48 }
 0x498   :  { %4897 = vmatpush3.bf16.msra.mxu1 %v5204_v49 }
 0x499   :  { %3259 = vmatpush1.bf16.msra.mxu0 %v5172_v42  ;;  %4898 = vmatprep.subr.bf16.mxu1 %v5208_v18 }
 0x49a   :  { %3260 = vmatprep.subr.bf16.mxu0 %v5177_v45 }
 0x49c   :  { %4899 = vmatpush3.bf16.msra.mxu1 %v5209_v9 }
 0x49d   :  { %3261 = vmatpush1.bf16.msra.mxu0 %v5175_v51  ;;  %4900 = vmatprep.subr.bf16.mxu1 %v5213_v13 }
 0x49e   :  { %3262 = vmatprep.subr.bf16.mxu0 %v5182_v52 }
 0x4a0   :  { %4901 = vmatpush3.bf16.msra.mxu1 %v5214_v19 }
 0x4a1   :  { %3263 = vmatpush1.bf16.msra.mxu0 %v5180_v50  ;;  %4908 = vmatprep.subr.bf16.mxu1 %v5218_v20  ;;  %v5234_v20 = vld [vmem:[%s7648_s28 + $0x1d0] ss:$12 sps:$4 sm:$0xff]  }
 0x4a2   :  { %3264 = vmatprep.subr.bf16.mxu0 %v5187_v54 }
 0x4a5   :  { %3265 = vmatpush1.bf16.msra.mxu0 %v5185_v55  ;;  %v5220_v55 = vld [vmem:[%s7648_s28 + $0x198] ss:$12 sps:$4 sm:$0xff]  }
 0x4a6   :  { %3266 = vmatprep.subr.bf16.mxu0 %v5192_v56  ;;  %v5224_v56 = vld [vmem:[%s7648_s28 + $0x1a0] ss:$12 sps:$4 sm:$0xff]  }
 0x4a9   :  { %3267 = vmatpush1.bf16.msra.mxu0 %v5190_v57 }
 0x4aa   :  { %3268 = vmatprep.subr.bf16.mxu0 %v5197_v60 }
 0x4ad   :  { %3269 = vmatpush1.bf16.msra.mxu0 %v5195_v61 }
 0x4ae   :  { %3270 = vmatprep.subr.bf16.mxu0 %v5202_v0  ;;  %v5227_v0 = vld [vmem:[%s7648_s28 + $0x1b4] ss:$12 sps:$4 sm:$0xff]  }
 0x4b1   :  { %3271 = vmatpush1.bf16.msra.mxu0 %v5200_v6  ;;  %v5228_v6 = vld [vmem:[%s7648_s28 + $0x278] ss:$12 sps:$4 sm:$0xff]  }
 0x4b2   :  { %3272 = vmatprep.subr.bf16.mxu0 %v5207_v17 }
 0x4b5   :  { %3273 = vmatpush1.bf16.msra.mxu0 %v5205_v7 }
 0x4b6   :  { %3274 = vmatprep.subr.bf16.mxu0 %v5212_v11  ;;  %v5233_v11 = vld [vmem:[%s7648_s28 + $0x290] ss:$12 sps:$4 sm:$0xff]  }
 0x4b9   :  { %3275 = vmatpush1.bf16.msra.mxu0 %v5210_v16 }
 0x4ba   :  { %3287 = vmatprep.subr.bf16.mxu0 %v5217_v12  ;;  %v5230_v12 = vld [vmem:[%s7648_s28 + $0x1c8] ss:$12 sps:$4 sm:$0xff]  }
 0x546   :  { %v1581_v21 = vpop.f32.mrb[20].mxu1  ;;  %v1624_v10 = vpop.f32.mrb[12].mxu0 }
 0x547   :  { %v1583_v22 = vpop.f32.mrb[21].mxu1  ;;  %v1626_v23 = vpop.f32.mrb[13].mxu0  ;;  %v1760_v26 = vmul.f32 %v1581_v21, %v5983_v58  ;;  %v1762_v27 = vmul.f32 %v1624_v10, %v5996_v62  ;;  %v5219_v62 = vld [vmem:[%s7648_s28 + $0x188] ss:$12 sps:$4 sm:$0xff]  }
 0x548   :  { %v1585_v24 = vpop.f32.mrb[22].mxu1  ;;  %v1628_v25 = vpop.f32.mrb[14].mxu0  ;;  %v1761_v41 = vmul.f32 %v1583_v22, %v5850_v3  ;;  %v1763_v2 = vmul.f32 %v1626_v23, %v5867_v14  ;;  %v5223_v14 = vld [vmem:[%s7648_s28 + $0x260] ss:$12 sps:$4 sm:$0xff]   ;;  %v5237_v23 = vld [vmem:[%s7648_s28 + $0x1e4] ss:$12 sps:$4 sm:$0xff]  }
 0x549   :  { %v1769_v30 = vmul.f32 %v1585_v24, %v5985_v59  ;;  %v1771_v31 = vmul.f32 %v1628_v25, %v5998_v63  ;;  %v1587_v32 = vpop.f32.mrb[23].mxu1  ;;  %v1630_v34 = vpop.f32.mrb[15].mxu0  ;;  %v5215_v59 = vld [vmem:[%s7648_s28 + $0x180] ss:$12 sps:$4 sm:$0xff]   ;;  %v5238_v24 = vld [vmem:[%s7648_s28 + $0x2a8] ss:$12 sps:$4 sm:$0xff]  }
 0x54a   :  { %v1770_v37 = vmul.f32 %v1587_v32, %v5852_v4  ;;  %v1772_v40 = vmul.f32 %v1630_v34, %v5869_v15  ;;  %v5222_v4 = vld [vmem:[%s7648_s28 + $0x19c] ss:$12 sps:$4 sm:$0xff]   ;;  %v5247_v32 = vld [vmem:[%s7648_s28 + $0x214] ss:$12 sps:$4 sm:$0xff]   ;;  %v5248_v34 = vld [vmem:[%s7648_s28 + $0x2d8] ss:$12 sps:$4 sm:$0xff]  }
 0x54b   :  { %v1778_v48 = vpack.c.bf16 %v1769_v30, %v1760_v26  ;;  %v6799_v49 = vpack.c.bf16 %v1771_v31, %v1762_v27  ;;  %v5242_v26 = vld [vmem:[%s7648_s28 + $0x1fc] ss:$12 sps:$4 sm:$0xff]   ;;  %v5243_v27 = vld [vmem:[%s7648_s28 + $0x2c0] ss:$12 sps:$4 sm:$0xff]   ;;  %v5240_v30 = vld [vmem:[%s7648_s28 + $0x1f8] ss:$12 sps:$4 sm:$0xff]  }
 0x54c   :  { %v1779_v58 = vpack.c.bf16 %v1770_v37, %v1761_v41  ;;  %v1781_v42 = vpack.c.bf16 %v1772_v40, %v1763_v2  ;;  %v5244_v31 = vld [vmem:[%s7648_s28 + $0x200] ss:$12 sps:$4 sm:$0xff]   ;;  %v5245_v41 = vld [vmem:[%s7648_s28 + $0x210] ss:$12 sps:$4 sm:$0xff]   ;;  %v5249_v2 = vld [vmem:[%s7648_s28 + $0x218] ss:$12 sps:$4 sm:$0xff]  }
 0x54d   :  { %v5252_v37 = vld [vmem:[%s7648_s28 + $0x22c] ss:$12 sps:$4 sm:$0xff]   ;;  %v5253_v40 = vld [vmem:[%s7648_s28 + $0x2f0] ss:$12 sps:$4 sm:$0xff]  }
 0x54e   :  { %v1667_v3 = vpop.f32.mrb[24].mxu1  ;;  %v1710_v63 = vpop.f32.mrb[16].mxu0  ;;  %3276 = vmatprep.mubr.bf16.mxu0 %v1779_v58  ;;  %3491 = vmatprep.mubr.bf16.mxu1 %v1779_v58  ;;  %v5254_v58 = vld [vmem:[%s7648_s28 + $0x230] ss:$12 sps:$4 sm:$0xff]  }
 0x54f   :  { %v1669_v15 = vpop.f32.mrb[25].mxu1  ;;  %v1712_v45 = vpop.f32.mrb[17].mxu0  ;;  %3277 = vmatmul.mubr.bf16.vlgmr.msra.gmra.mrb[20].mxu0 %v1778_v48  ;;  %3492 = vmatmul.mubr.bf16.vlgmr.msra.gmra.mrb[32].mxu1 %v1778_v48  ;;  %v1764_v51 = vmul.f32 %v1667_v3, %v6292_v28  ;;  %v1766_v52 = vmul.f32 %v1710_v63, %v6315_v36  ;;  %v5250_v48 = vld [vmem:[%s7648_s28 + $0x228] ss:$12 sps:$4 sm:$0xff]  }
 0x550   :  { %3288 = vmatpush1.bf16.msra.mxu0 %v5215_v59  ;;  %4909 = vmatpush3.bf16.msra.mxu1 %v5219_v62  ;;  %v1671_v50 = vpop.f32.mrb[26].mxu1  ;;  %v1714_v54 = vpop.f32.mrb[18].mxu0  ;;  %v1765_v57 = vmul.f32 %v1669_v15, %v6082_v43  ;;  %v1767_v17 = vmul.f32 %v1712_v45, %v6105_v53  ;;  %v5225_v53 = vld [vmem:[%s7648_s28 + $0x1b0] ss:$12 sps:$4 sm:$0xff]   ;;  %v5258_v59 = vld [vmem:[%s7648_s28 + $0x3c8] ss:$12 sps:$4 sm:$0xff]  }
 0x551   :  { %v1773_v60 = vmul.f32 %v1671_v50, %v6294_v29  ;;  %v1775_v28 = vmul.f32 %v1714_v54, %v6317_v39  ;;  %3319 = vmatprep.mubr.bf16.mxu0 %v1781_v42  ;;  %3532 = vmatprep.mubr.bf16.mxu1 %v1781_v42  ;;  %v1673_v36 = vpop.f32.mrb[27].mxu1  ;;  %v1716_v61 = vpop.f32.mrb[19].mxu0  ;;  %v5257_v42 = vld [vmem:[%s7648_s28 + $0x244] ss:$12 sps:$4 sm:$0xff]   ;;  %v5255_v62 = vld [vmem:[%s7648_s28 + $0x240] ss:$12 sps:$4 sm:$0xff]  }
 0x552   :  { %v1774_v43 = vmul.f32 %v1673_v36, %v6084_v47  ;;  %v1776_v29 = vmul.f32 %v1716_v61, %v6107_v46  ;;  %3289 = vmatprep.subr.bf16.mxu0 %v5222_v4  ;;  %4910 = vmatprep.subr.bf16.mxu1 %v5223_v14  ;;  %v5229_v47 = vld [vmem:[%s7648_s28 + $0x1b8] ss:$12 sps:$4 sm:$0xff]   ;;  %v5259_v3 = vld [vmem:[%s7648_s28 + $0x308] ss:$12 sps:$4 sm:$0xff]   ;;  %v5263_v4 = vld [vmem:[%s7648_s28 + $0x3e0] ss:$12 sps:$4 sm:$0xff]  }
 0x553   :  { %v6833_v39 = vpack.c.bf16 %v1773_v60, %v1764_v51  ;;  %v6835_v18 = vpack.c.bf16 %v1775_v28, %v1766_v52  ;;  %v5232_v46 = vld [vmem:[%s7648_s28 + $0x1cc] ss:$12 sps:$4 sm:$0xff]   ;;  %v5262_v63 = vld [vmem:[%s7648_s28 + $0x25c] ss:$12 sps:$4 sm:$0xff]   ;;  %v5267_v45 = vld [vmem:[%s7648_s28 + $0x274] ss:$12 sps:$4 sm:$0xff]  }
 0x554   :  { %v6837_v7 = vpack.c.bf16 %v1774_v43, %v1765_v57  ;;  %v6839_v9 = vpack.c.bf16 %v1776_v29, %v1767_v17  ;;  %3290 = vmatpush1.bf16.msra.mxu0 %v5220_v55  ;;  %4911 = vmatpush3.bf16.msra.mxu1 %v5224_v56  ;;  %v5260_v14 = vld [vmem:[%s7648_s28 + $0x258] ss:$12 sps:$4 sm:$0xff]   ;;  %v5264_v15 = vld [vmem:[%s7648_s28 + $0x320] ss:$12 sps:$4 sm:$0xff]   ;;  %v5265_v52 = vld [vmem:[%s7648_s28 + $0x270] ss:$12 sps:$4 sm:$0xff]  }
 0x555   :  { %3291 = vmatprep.subr.bf16.mxu0 %v5227_v0  ;;  %4912 = vmatprep.subr.bf16.mxu1 %v5228_v6  ;;  %v5268_v51 = vld [vmem:[%s7648_s28 + $0x3f8] ss:$12 sps:$4 sm:$0xff]   ;;  %v5273_v55 = vld [vmem:[%s7648_s28 + $0x410] ss:$12 sps:$4 sm:$0xff]   ;;  %v5270_v56 = vld [vmem:[%s7648_s28 + $0x288] ss:$12 sps:$4 sm:$0xff]  }
 0x556   :  { %v1753_v13 = vpop.f32.mrb[28].mxu1  ;;  %v5269_v50 = vld [vmem:[%s7648_s28 + $0x338] ss:$12 sps:$4 sm:$0xff]   ;;  %v5274_v57 = vld [vmem:[%s7648_s28 + $0x350] ss:$12 sps:$4 sm:$0xff]  }
 0x557   :  { %v5064_v16 = vpop.f32.mrb[29].mxu1  ;;  %v1768_v21 = vmul.f32 %v1753_v13, %v6457_v5  ;;  %v5235_v5 = vld [vmem:[%s7648_s28 + $0x1e0] ss:$12 sps:$4 sm:$0xff]   ;;  %v5277_v60 = vld [vmem:[%s7648_s28 + $0x2a4] ss:$12 sps:$4 sm:$0xff]  }
 0x558   :  { %3292 = vmatpush1.bf16.msra.mxu0 %v5225_v53  ;;  %4913 = vmatpush3.bf16.msra.mxu1 %v5229_v47  ;;  %v1756_v19 = vpop.f32.mrb[30].mxu1  ;;  %v5272_v54 = vld [vmem:[%s7648_s28 + $0x28c] ss:$12 sps:$4 sm:$0xff]   ;;  %v5278_v28 = vld [vmem:[%s7648_s28 + $0x428] ss:$12 sps:$4 sm:$0xff]  }
 0x559   :  { %v1777_v10 = vmul.f32 %v1756_v19, %v6459_v8  ;;  %v5065_v22 = vpop.f32.mrb[31].mxu1  ;;  %3293 = vmatprep.subr.bf16.mxu0 %v5232_v46  ;;  %4914 = vmatprep.subr.bf16.mxu1 %v5233_v11  ;;  %v5239_v8 = vld [vmem:[%s7648_s28 + $0x1e8] ss:$12 sps:$4 sm:$0xff]   ;;  %v5275_v36 = vld [vmem:[%s7648_s28 + $0x2a0] ss:$12 sps:$4 sm:$0xff]  }
 0x55a   :  { %v5279_v61 = vld [vmem:[%s7648_s28 + $0x368] ss:$12 sps:$4 sm:$0xff]   ;;  %v5283_v6 = vld [vmem:[%s7648_s28 + $0x440] ss:$12 sps:$4 sm:$0xff]   ;;  %v5280_v17 = vld [vmem:[%s7648_s28 + $0x2b8] ss:$12 sps:$4 sm:$0xff]  }
 0x55b   :  { %v6867_v25 = vpack.c.bf16 %v1777_v10, %v1768_v21  ;;  %v5282_v0 = vld [vmem:[%s7648_s28 + $0x2bc] ss:$12 sps:$4 sm:$0xff]   ;;  %v5284_v43 = vld [vmem:[%s7648_s28 + $0x380] ss:$12 sps:$4 sm:$0xff]   ;;  %v5288_v53 = vld [vmem:[%s7648_s28 + $0x458] ss:$12 sps:$4 sm:$0xff]  }
 0x55c   :  { %3294 = vmatpush1.bf16.msra.mxu0 %v5230_v12  ;;  %4915 = vmatpush3.bf16.msra.mxu1 %v5234_v20  ;;  %v5287_v29 = vld [vmem:[%s7648_s28 + $0x2d4] ss:$12 sps:$4 sm:$0xff]   ;;  %v5285_v47 = vld [vmem:[%s7648_s28 + $0x2d0] ss:$12 sps:$4 sm:$0xff]   ;;  %v5289_v46 = vld [vmem:[%s7648_s28 + $0x398] ss:$12 sps:$4 sm:$0xff]  }
 0x55d   :  { %3295 = vmatprep.subr.bf16.mxu0 %v5237_v23  ;;  %4916 = vmatprep.subr.bf16.mxu1 %v5238_v24  ;;  %v5292_v11 = vld [vmem:[%s7648_s28 + $0x2ec] ss:$12 sps:$4 sm:$0xff]   ;;  %v5293_v13 = vld [vmem:[%s7648_s28 + $0x470] ss:$12 sps:$4 sm:$0xff]   ;;  %v5290_v16 = vld [vmem:[%s7648_s28 + $0x2e8] ss:$12 sps:$4 sm:$0xff]  }
 0x55e   :  { %v5294_v19 = vld [vmem:[%s7648_s28 + $0x3b0] ss:$12 sps:$4 sm:$0xff]   ;;  %v5298_v20 = vld [vmem:[%s7648_s28 + $0x548] ss:$12 sps:$4 sm:$0xff]   ;;  %v5295_v21 = vld [vmem:[%s7648_s28 + $0x300] ss:$12 sps:$4 sm:$0xff]  }
 0x55f   :  { %v5297_v12 = vld [vmem:[%s7648_s28 + $0x304] ss:$12 sps:$4 sm:$0xff]   ;;  %v5299_v10 = vld [vmem:[%s7648_s28 + $0x488] ss:$12 sps:$4 sm:$0xff]   ;;  %v5303_v23 = vld [vmem:[%s7648_s28 + $0x560] ss:$12 sps:$4 sm:$0xff]  }
 0x560   :  { %3296 = vmatpush1.bf16.msra.mxu0 %v5235_v5  ;;  %4917 = vmatpush3.bf16.msra.mxu1 %v5239_v8  ;;  %v5302_v22 = vld [vmem:[%s7648_s28 + $0x31c] ss:$12 sps:$4 sm:$0xff]   ;;  %v5300_v24 = vld [vmem:[%s7648_s28 + $0x318] ss:$12 sps:$4 sm:$0xff]   ;;  %v5304_v5 = vld [vmem:[%s7648_s28 + $0x4a0] ss:$12 sps:$4 sm:$0xff]  }
 0x561   :  { %3297 = vmatprep.subr.bf16.mxu0 %v5242_v26  ;;  %4918 = vmatprep.subr.bf16.mxu1 %v5243_v27  ;;  %v5305_v8 = vld [vmem:[%s7648_s28 + $0x330] ss:$12 sps:$4 sm:$0xff]   ;;  %v5309_v26 = vld [vmem:[%s7648_s28 + $0x4b8] ss:$12 sps:$4 sm:$0xff]  }
 0x562   :  { %v5312_v27 = vld [vmem:[%s7648_s28 + $0x34c] ss:$12 sps:$4 sm:$0xff]  }
 0x564   :  { %3298 = vmatpush1.bf16.msra.mxu0 %v5240_v30  ;;  %4919 = vmatpush3.bf16.msra.mxu1 %v5244_v31  ;;  %v5313_v30 = vld [vmem:[%s7648_s28 + $0x590] ss:$12 sps:$4 sm:$0xff]   ;;  %v5310_v31 = vld [vmem:[%s7648_s28 + $0x348] ss:$12 sps:$4 sm:$0xff]  }
 0x565   :  { %3299 = vmatprep.subr.bf16.mxu0 %v5247_v32  ;;  %4920 = vmatprep.subr.bf16.mxu1 %v5248_v34  ;;  %v5314_v32 = vld [vmem:[%s7648_s28 + $0x4d0] ss:$12 sps:$4 sm:$0xff]  }
 0x566   :  { %v5317_v34 = vld [vmem:[%s7648_s28 + $0x364] ss:$12 sps:$4 sm:$0xff]  }
 0x568   :  { %3300 = vmatpush1.bf16.msra.mxu0 %v5245_v41  ;;  %4921 = vmatpush3.bf16.msra.mxu1 %v5249_v2  ;;  %v5318_v41 = vld [vmem:[%s7648_s28 + $0x5a8] ss:$12 sps:$4 sm:$0xff]   ;;  %v5315_v2 = vld [vmem:[%s7648_s28 + $0x360] ss:$12 sps:$4 sm:$0xff]  }
 0x569   :  { %3301 = vmatprep.subr.bf16.mxu0 %v5252_v37  ;;  %4922 = vmatprep.subr.bf16.mxu1 %v5253_v40  ;;  %v5319_v37 = vld [vmem:[%s7648_s28 + $0x4e8] ss:$12 sps:$4 sm:$0xff]  }
 0x56a   :  { %v5322_v40 = vld [vmem:[%s7648_s28 + $0x37c] ss:$12 sps:$4 sm:$0xff]  }
 0x56c   :  { %3302 = vmatpush1.bf16.msra.mxu0 %v5250_v48  ;;  %4923 = vmatpush3.bf16.msra.mxu1 %v5254_v58  ;;  %v5323_v48 = vld [vmem:[%s7648_s28 + $0x5c0] ss:$12 sps:$4 sm:$0xff]   ;;  %v5320_v58 = vld [vmem:[%s7648_s28 + $0x378] ss:$12 sps:$4 sm:$0xff]  }
 0x56d   :  { %3303 = vmatprep.subr.bf16.mxu0 %v5257_v42  ;;  %4930 = vmatprep.subr.bf16.mxu1 %v5258_v59  ;;  %v5324_v42 = vld [vmem:[%s7648_s28 + $0x500] ss:$12 sps:$4 sm:$0xff]  }
 0x56e   :  { %v5327_v59 = vld [vmem:[%s7648_s28 + $0x394] ss:$12 sps:$4 sm:$0xff]  }
 0x56f   :  { %3533 = vmatmul.mubr.bf16.vlgmr.msra.gmra.mrb[36].mxu1 %v6799_v49 }
 0x570   :  { %3304 = vmatpush1.bf16.msra.mxu0 %v5255_v62  ;;  %4931 = vmatpush3.bf16.msra.mxu1 %v5259_v3  ;;  %v5328_v62 = vld [vmem:[%s7648_s28 + $0x5d8] ss:$12 sps:$4 sm:$0xff]   ;;  %v5325_v3 = vld [vmem:[%s7648_s28 + $0x390] ss:$12 sps:$4 sm:$0xff]  }
 0x571   :  { %3573 = vmatprep.mubr.bf16.mxu1 %v6837_v7  ;;  %3305 = vmatprep.subr.bf16.mxu0 %v5262_v63  ;;  %v5329_v63 = vld [vmem:[%s7648_s28 + $0x518] ss:$12 sps:$4 sm:$0xff]  }
 0x572   :  { %4932 = vmatprep.subr.bf16.mxu1 %v5263_v4  ;;  %v5332_v4 = vld [vmem:[%s7648_s28 + $0x3ac] ss:$12 sps:$4 sm:$0xff]  }
 0x574   :  { %3306 = vmatpush1.bf16.msra.mxu0 %v5260_v14  ;;  %4933 = vmatpush3.bf16.msra.mxu1 %v5264_v15  ;;  %v5333_v14 = vld [vmem:[%s7648_s28 + $0x5f0] ss:$12 sps:$4 sm:$0xff]   ;;  %v5330_v15 = vld [vmem:[%s7648_s28 + $0x3a8] ss:$12 sps:$4 sm:$0xff]  }
 0x575   :  { %3307 = vmatprep.subr.bf16.mxu0 %v5267_v45  ;;  %4934 = vmatprep.subr.bf16.mxu1 %v5268_v51  ;;  %v5334_v45 = vld [vmem:[%s7648_s28 + $0x530] ss:$12 sps:$4 sm:$0xff]  }
 0x576   :  { %v5337_v51 = vld [vmem:[%s7648_s28 + $0x3c4] ss:$12 sps:$4 sm:$0xff]  }
 0x578   :  { %3308 = vmatpush1.bf16.msra.mxu0 %v5265_v52  ;;  %4935 = vmatpush3.bf16.msra.mxu1 %v5269_v50  ;;  %v5335_v52 = vld [vmem:[%s7648_s28 + $0x3c0] ss:$12 sps:$4 sm:$0xff]   ;;  %v5338_v50 = vld [vmem:[%s7648_s28 + $0x608] ss:$12 sps:$4 sm:$0xff]  }
 0x579   :  { %3309 = vmatprep.subr.bf16.mxu0 %v5272_v54  ;;  %4936 = vmatprep.subr.bf16.mxu1 %v5273_v55  ;;  %v5341_v54 = vld [vmem:[%s7648_s28 + $0x3dc] ss:$12 sps:$4 sm:$0xff]   ;;  %v5339_v55 = vld [vmem:[%s7648_s28 + $0x3d8] ss:$12 sps:$4 sm:$0xff]  }
 0x57c   :  { %3310 = vmatpush1.bf16.msra.mxu0 %v5270_v56  ;;  %4937 = vmatpush3.bf16.msra.mxu1 %v5274_v57  ;;  %v5342_v56 = vld [vmem:[%s7648_s28 + $0x620] ss:$12 sps:$4 sm:$0xff]  }
 0x57d   :  { %3311 = vmatprep.subr.bf16.mxu0 %v5277_v60  ;;  %4938 = vmatprep.subr.bf16.mxu1 %v5278_v28  ;;  %v5345_v57 = vld [vmem:[%s7648_s28 + $0x3f4] ss:$12 sps:$4 sm:$0xff]   ;;  %v5343_v60 = vld [vmem:[%s7648_s28 + $0x3f0] ss:$12 sps:$4 sm:$0xff]   ;;  %v5346_v28 = vld [vmem:[%s7648_s28 + $0x638] ss:$12 sps:$4 sm:$0xff]  }
 0x580   :  { %3312 = vmatpush1.bf16.msra.mxu0 %v5275_v36  ;;  %4939 = vmatpush3.bf16.msra.mxu1 %v5279_v61  ;;  %v5349_v36 = vld [vmem:[%s7648_s28 + $0x40c] ss:$12 sps:$4 sm:$0xff]   ;;  %v5347_v61 = vld [vmem:[%s7648_s28 + $0x408] ss:$12 sps:$4 sm:$0xff]  }
 0x581   :  { %3313 = vmatprep.subr.bf16.mxu0 %v5282_v0  ;;  %4940 = vmatprep.subr.bf16.mxu1 %v5283_v6  ;;  %v5350_v0 = vld [vmem:[%s7648_s28 + $0x650] ss:$12 sps:$4 sm:$0xff]  }
 0x582   :  { %v5353_v6 = vld [vmem:[%s7648_s28 + $0x424] ss:$12 sps:$4 sm:$0xff]  }
 0x584   :  { %3314 = vmatpush1.bf16.msra.mxu0 %v5280_v17  ;;  %4941 = vmatpush3.bf16.msra.mxu1 %v5284_v43  ;;  %v5351_v17 = vld [vmem:[%s7648_s28 + $0x420] ss:$12 sps:$4 sm:$0xff]   ;;  %v5354_v43 = vld [vmem:[%s7648_s28 + $0x668] ss:$12 sps:$4 sm:$0xff]  }
 0x585   :  { %3315 = vmatprep.subr.bf16.mxu0 %v5287_v29  ;;  %4942 = vmatprep.subr.bf16.mxu1 %v5288_v53  ;;  %v5357_v29 = vld [vmem:[%s7648_s28 + $0x43c] ss:$12 sps:$4 sm:$0xff]   ;;  %v5355_v53 = vld [vmem:[%s7648_s28 + $0x438] ss:$12 sps:$4 sm:$0xff]  }
 0x588   :  { %3316 = vmatpush1.bf16.msra.mxu0 %v5285_v47  ;;  %4943 = vmatpush3.bf16.msra.mxu1 %v5289_v46  ;;  %v5358_v47 = vld [vmem:[%s7648_s28 + $0x680] ss:$12 sps:$4 sm:$0xff]  }
 0x589   :  { %3317 = vmatprep.subr.bf16.mxu0 %v5292_v11  ;;  %4944 = vmatprep.subr.bf16.mxu1 %v5293_v13  ;;  %v5361_v46 = vld [vmem:[%s7648_s28 + $0x454] ss:$12 sps:$4 sm:$0xff]   ;;  %v5359_v11 = vld [vmem:[%s7648_s28 + $0x450] ss:$12 sps:$4 sm:$0xff]   ;;  %v5362_v13 = vld [vmem:[%s7648_s28 + $0x698] ss:$12 sps:$4 sm:$0xff]  }
 0x58c   :  { %3318 = vmatpush1.bf16.msra.mxu0 %v5290_v16  ;;  %4945 = vmatpush3.bf16.msra.mxu1 %v5294_v19  ;;  %v5365_v16 = vld [vmem:[%s7648_s28 + $0x46c] ss:$12 sps:$4 sm:$0xff]   ;;  %v5363_v19 = vld [vmem:[%s7648_s28 + $0x468] ss:$12 sps:$4 sm:$0xff]  }
 0x58d   :  { %3330 = vmatprep.subr.bf16.mxu0 %v5297_v12  ;;  %4952 = vmatprep.subr.bf16.mxu1 %v5298_v20  ;;  %v5366_v12 = vld [vmem:[%s7648_s28 + $0x6b0] ss:$12 sps:$4 sm:$0xff]  }
 0x58e   :  { %v5369_v20 = vld [vmem:[%s7648_s28 + $0x484] ss:$12 sps:$4 sm:$0xff]  }
 0x58f   :  { %3320 = vmatmul.mubr.bf16.vlgmr.msra.gmra.mrb[20].mxu0 %v6799_v49  ;;  %3574 = vmatmul.mubr.bf16.vlgmr.msra.gmra.mrb[40].mxu1 %v6833_v39  ;;  %v5307_v49 = vld [vmem:[%s7648_s28 + $0x334] ss:$12 sps:$4 sm:$0xff]  }
 0x590   :  { %3331 = vmatpush1.bf16.msra.mxu0 %v5295_v21  ;;  %3362 = vmatprep.mubr.bf16.mxu0 %v6837_v7  ;;  %v5308_v7 = vld [vmem:[%s7648_s28 + $0x578] ss:$12 sps:$4 sm:$0xff]   ;;  %v5367_v21 = vld [vmem:[%s7648_s28 + $0x480] ss:$12 sps:$4 sm:$0xff]  }
 0x591   :  { %4953 = vmatpush3.bf16.msra.mxu1 %v5299_v10  ;;  %3614 = vmatprep.mubr.bf16.mxu1 %v6839_v9  ;;  %v5372_v10 = vld [vmem:[%s7648_s28 + $0x49c] ss:$12 sps:$4 sm:$0xff]  }
 0x592   :  { %3332 = vmatprep.subr.bf16.mxu0 %v5302_v22  ;;  %4954 = vmatprep.subr.bf16.mxu1 %v5303_v23  ;;  %v5370_v22 = vld [vmem:[%s7648_s28 + $0x498] ss:$12 sps:$4 sm:$0xff]   ;;  %v5375_v23 = vld [vmem:[%s7648_s28 + $0x4b4] ss:$12 sps:$4 sm:$0xff]  }
 0x594   :  { %3333 = vmatpush1.bf16.msra.mxu0 %v5300_v24  ;;  %v5373_v24 = vld [vmem:[%s7648_s28 + $0x4b0] ss:$12 sps:$4 sm:$0xff]  }
 0x595   :  { %4955 = vmatpush3.bf16.msra.mxu1 %v5304_v5  ;;  %3334 = vmatprep.subr.bf16.mxu0 %v5307_v49  ;;  %v5381_v5 = vld [vmem:[%s7648_s28 + $0x4e4] ss:$12 sps:$4 sm:$0xff]   ;;  %v5379_v49 = vld [vmem:[%s7648_s28 + $0x4e0] ss:$12 sps:$4 sm:$0xff]  }
 0x596   :  { %4956 = vmatprep.subr.bf16.mxu1 %v5308_v7  ;;  %v5384_v7 = vld [vmem:[%s7648_s28 + $0x4fc] ss:$12 sps:$4 sm:$0xff]  }
 0x598   :  { %3335 = vmatpush1.bf16.msra.mxu0 %v5305_v8  ;;  %v5382_v8 = vld [vmem:[%s7648_s28 + $0x4f8] ss:$12 sps:$4 sm:$0xff]  }
 0x599   :  { %4957 = vmatpush3.bf16.msra.mxu1 %v5309_v26  ;;  %3336 = vmatprep.subr.bf16.mxu0 %v5312_v27  ;;  %v5387_v26 = vld [vmem:[%s7648_s28 + $0x514] ss:$12 sps:$4 sm:$0xff]   ;;  %v5385_v27 = vld [vmem:[%s7648_s28 + $0x510] ss:$12 sps:$4 sm:$0xff]  }
 0x59a   :  { %4958 = vmatprep.subr.bf16.mxu1 %v5313_v30  ;;  %v5390_v30 = vld [vmem:[%s7648_s28 + $0x52c] ss:$12 sps:$4 sm:$0xff]  }
 0x59c   :  { %3337 = vmatpush1.bf16.msra.mxu0 %v5310_v31  ;;  %v5388_v31 = vld [vmem:[%s7648_s28 + $0x528] ss:$12 sps:$4 sm:$0xff]  }
 0x59d   :  { %4959 = vmatpush3.bf16.msra.mxu1 %v5314_v32  ;;  %3338 = vmatprep.subr.bf16.mxu0 %v5317_v34  ;;  %v5393_v32 = vld [vmem:[%s7648_s28 + $0x544] ss:$12 sps:$4 sm:$0xff]   ;;  %v5391_v34 = vld [vmem:[%s7648_s28 + $0x540] ss:$12 sps:$4 sm:$0xff]  }
 0x59e   :  { %4960 = vmatprep.subr.bf16.mxu1 %v5318_v41  ;;  %v5396_v41 = vld [vmem:[%s7648_s28 + $0x55c] ss:$12 sps:$4 sm:$0xff]  }
 0x5a0   :  { %3339 = vmatpush1.bf16.msra.mxu0 %v5315_v2  ;;  %v5394_v2 = vld [vmem:[%s7648_s28 + $0x558] ss:$12 sps:$4 sm:$0xff]  }
 0x5a1   :  { %4961 = vmatpush3.bf16.msra.mxu1 %v5319_v37  ;;  %3340 = vmatprep.subr.bf16.mxu0 %v5322_v40  ;;  %v5399_v37 = vld [vmem:[%s7648_s28 + $0x574] ss:$12 sps:$4 sm:$0xff]   ;;  %v5397_v40 = vld [vmem:[%s7648_s28 + $0x570] ss:$12 sps:$4 sm:$0xff]  }
 0x5a2   :  { %4962 = vmatprep.subr.bf16.mxu1 %v5323_v48  ;;  %v5402_v48 = vld [vmem:[%s7648_s28 + $0x58c] ss:$12 sps:$4 sm:$0xff]  }
 0x5a4   :  { %3341 = vmatpush1.bf16.msra.mxu0 %v5320_v58  ;;  %v5400_v58 = vld [vmem:[%s7648_s28 + $0x588] ss:$12 sps:$4 sm:$0xff]  }
 0x5a5   :  { %4963 = vmatpush3.bf16.msra.mxu1 %v5324_v42  ;;  %3342 = vmatprep.subr.bf16.mxu0 %v5327_v59  ;;  %v5405_v42 = vld [vmem:[%s7648_s28 + $0x5a4] ss:$12 sps:$4 sm:$0xff]   ;;  %v5403_v59 = vld [vmem:[%s7648_s28 + $0x5a0] ss:$12 sps:$4 sm:$0xff]  }
 0x5a6   :  { %4964 = vmatprep.subr.bf16.mxu1 %v5328_v62  ;;  %v5408_v62 = vld [vmem:[%s7648_s28 + $0x5bc] ss:$12 sps:$4 sm:$0xff]  }
 0x5a8   :  { %3343 = vmatpush1.bf16.msra.mxu0 %v5325_v3  ;;  %v5406_v3 = vld [vmem:[%s7648_s28 + $0x5b8] ss:$12 sps:$4 sm:$0xff]  }
 0x5a9   :  { %4965 = vmatpush3.bf16.msra.mxu1 %v5329_v63  ;;  %3344 = vmatprep.subr.bf16.mxu0 %v5332_v4  ;;  %v5411_v63 = vld [vmem:[%s7648_s28 + $0x5d4] ss:$12 sps:$4 sm:$0xff]   ;;  %v5409_v4 = vld [vmem:[%s7648_s28 + $0x5d0] ss:$12 sps:$4 sm:$0xff]  }
 0x5aa   :  { %4966 = vmatprep.subr.bf16.mxu1 %v5333_v14  ;;  %v5414_v14 = vld [vmem:[%s7648_s28 + $0x5ec] ss:$12 sps:$4 sm:$0xff]  }
 0x5ac   :  { %3345 = vmatpush1.bf16.msra.mxu0 %v5330_v15  ;;  %v5412_v15 = vld [vmem:[%s7648_s28 + $0x5e8] ss:$12 sps:$4 sm:$0xff]  }
 0x5ad   :  { %4967 = vmatpush3.bf16.msra.mxu1 %v5334_v45  ;;  %3346 = vmatprep.subr.bf16.mxu0 %v5337_v51  ;;  %v5417_v45 = vld [vmem:[%s7648_s28 + $0x604] ss:$12 sps:$4 sm:$0xff]   ;;  %v5415_v51 = vld [vmem:[%s7648_s28 + $0x600] ss:$12 sps:$4 sm:$0xff]  }
 0x5ae   :  { %5066 = vmatprep.subr.bf16.mxu1 %v5504_v35 }
 0x5b0   :  { %3615 = vmatmul.mubr.bf16.vlgmr.msra.gmra.mrb[44].mxu1 %v6835_v18  ;;  %3347 = vmatpush1.bf16.msra.mxu0 %v5335_v52  ;;  %v5420_v52 = vld [vmem:[%s7648_s28 + $0x61c] ss:$12 sps:$4 sm:$0xff]  }
 0x5b1   :  { %5067 = vmatpush3.bf16.msra.mxu1 %v5338_v50  ;;  %3348 = vmatprep.subr.bf16.mxu0 %v5341_v54  ;;  %v5418_v50 = vld [vmem:[%s7648_s28 + $0x618] ss:$12 sps:$4 sm:$0xff]   ;;  %v5423_v54 = vld [vmem:[%s7648_s28 + $0x634] ss:$12 sps:$4 sm:$0xff]  }
 0x5b2   :  { %5068 = vmatprep.subr.bf16.mxu1 %v5504_v35  ;;  %5082 = vmatprep.mubr.msk.bf16.mxu1 %vm7653_vm4, %v5504_v35 }
 0x5b4   :  { %3349 = vmatpush1.bf16.msra.mxu0 %v5339_v55  ;;  %v5421_v55 = vld [vmem:[%s7648_s28 + $0x630] ss:$12 sps:$4 sm:$0xff]  }
 0x5b5   :  { %5069 = vmatpush3.bf16.msra.mxu1 %v5342_v56  ;;  %3350 = vmatprep.subr.bf16.mxu0 %v5345_v57  ;;  %v5424_v56 = vld [vmem:[%s7648_s28 + $0x648] ss:$12 sps:$4 sm:$0xff]   ;;  %v5429_v57 = vld [vmem:[%s7648_s28 + $0x664] ss:$12 sps:$4 sm:$0xff]  }
 0x5b6   :  { %5070 = vmatprep.subr.bf16.mxu1 %v5504_v35 }
 0x5b8   :  { %3351 = vmatpush1.bf16.msra.mxu0 %v5343_v60  ;;  %v5427_v60 = vld [vmem:[%s7648_s28 + $0x660] ss:$12 sps:$4 sm:$0xff]  }
 0x5b9   :  { %5071 = vmatpush3.bf16.msra.mxu1 %v5346_v28  ;;  %3352 = vmatprep.subr.bf16.mxu0 %v5349_v36  ;;  %v5432_v28 = vld [vmem:[%s7648_s28 + $0x67c] ss:$12 sps:$4 sm:$0xff]   ;;  %v5430_v36 = vld [vmem:[%s7648_s28 + $0x678] ss:$12 sps:$4 sm:$0xff]  }
 0x5ba   :  { %5072 = vmatprep.subr.bf16.mxu1 %v5504_v35 }
 0x5bc   :  { %3353 = vmatpush1.bf16.msra.mxu0 %v5347_v61  ;;  %v5435_v61 = vld [vmem:[%s7648_s28 + $0x694] ss:$12 sps:$4 sm:$0xff]  }
 0x5bd   :  { %5073 = vmatpush3.bf16.msra.mxu1 %v5350_v0  ;;  %3354 = vmatprep.subr.bf16.mxu0 %v5353_v6 }
 0x5be   :  { %5074 = vmatprep.subr.bf16.mxu1 %v5504_v35 }
 0x5c0   :  { %3355 = vmatpush1.bf16.msra.mxu0 %v5351_v17 }
 0x5c1   :  { %5075 = vmatpush3.bf16.msra.mxu1 %v5354_v43  ;;  %3356 = vmatprep.subr.bf16.mxu0 %v5357_v29  ;;  %v5433_v29 = vld [vmem:[%s7648_s28 + $0x690] ss:$12 sps:$4 sm:$0xff]  }
 0x5c2   :  { %5076 = vmatprep.subr.bf16.mxu1 %v5504_v35 }
 0x5c4   :  { %3357 = vmatpush1.bf16.msra.mxu0 %v5355_v53 }
 0x5c5   :  { %5077 = vmatpush3.bf16.msra.mxu1 %v5358_v47  ;;  %3358 = vmatprep.subr.bf16.mxu0 %v5361_v46  ;;  %v5438_v47 = vld [vmem:[%s7648_s28 + $0x6ac] ss:$12 sps:$4 sm:$0xff]  }
 0x5c6   :  { %5078 = vmatprep.subr.bf16.mxu1 %v5504_v35 }
 0x5c8   :  { %3359 = vmatpush1.bf16.msra.mxu0 %v5359_v11  ;;  %v5436_v11 = vld [vmem:[%s7648_s28 + $0x6a8] ss:$12 sps:$4 sm:$0xff]  }
 0x5c9   :  { %5079 = vmatpush3.bf16.msra.mxu1 %v5362_v13  ;;  %3360 = vmatprep.subr.bf16.mxu0 %v5365_v16  ;;  %v5439_v13 = vld [vmem:[%s7562_s13 + $0x40] sm:$0xff]  }
 0x5ca   :  { %5080 = vmatprep.subr.bf16.mxu1 %v5504_v35  ;;  %v5440_v16 = vld [vmem:[%s7562_s13] sm:$0xff]  }
 0x5cc   :  { %3361 = vmatpush1.bf16.msra.mxu0 %v5363_v19  ;;  %v5441_v19 = vld [vmem:[%s7562_s13 + $0x48] sm:$0xff]  }
 0x5cd   :  { %5081 = vmatpush3.bf16.msra.mxu1 %v5366_v12  ;;  %3373 = vmatprep.subr.bf16.mxu0 %v5369_v20  ;;  %v5442_v12 = vld [vmem:[%s7562_s13 + $0x8] sm:$0xff]   ;;  %v5443_v20 = vld [vmem:[%s7562_s13 + $0x50] sm:$0xff]  }
 0x5ce   :  { %4983 = vmatprep.subr.bf16.mxu1 %v5439_v13 }
 0x5cf   :  { %3363 = vmatmul.mubr.bf16.vlgmr.msra.gmra.mrb[20].mxu0 %v6833_v39  ;;  %v5378_v39 = vld [vmem:[%s7648_s28 + $0x4cc] ss:$12 sps:$4 sm:$0xff]  }
 0x5d0   :  { %5083 = vmatmul.mubr.bf16.vlgmr.msra.gmra.mrb[48].mxu1 %v6867_v25  ;;  %3374 = vmatpush1.bf16.msra.mxu0 %v5367_v21  ;;  %v5444_v21 = vld [vmem:[%s7562_s13 + $0x10] sm:$0xff]  }
 0x5d1   :  { %3405 = vmatprep.mubr.bf16.mxu0 %v6839_v9  ;;  %3375 = vmatprep.subr.bf16.mxu0 %v5372_v10  ;;  %v5376_v9 = vld [vmem:[%s7648_s28 + $0x4c8] ss:$12 sps:$4 sm:$0xff]   ;;  %v5445_v10 = vld [vmem:[%s7562_s13 + $0x58] sm:$0xff]  }
 0x5d2   :  { %4984 = vmatpush3.bf16.msra.mxu1 %v5440_v16 }
 0x5d3   :  { %4985 = vmatprep.subr.bf16.mxu1 %v5441_v19 }
 0x5d4   :  { %3376 = vmatpush1.bf16.msra.mxu0 %v5370_v22  ;;  %v5446_v22 = vld [vmem:[%s7562_s13 + $0x18] sm:$0xff]  }
 0x5d5   :  { %3377 = vmatprep.subr.bf16.mxu0 %v5375_v23  ;;  %v5447_v23 = vld [vmem:[%s7562_s13 + $0x60] sm:$0xff]  }
 0x5d6   :  { %4986 = vmatpush3.bf16.msra.mxu1 %v5442_v12 }
 0x5d7   :  { %4987 = vmatprep.subr.bf16.mxu1 %v5443_v20 }
 0x5d8   :  { %3378 = vmatpush1.bf16.msra.mxu0 %v5373_v24 }
 0x5d9   :  { %3379 = vmatprep.subr.bf16.mxu0 %v5378_v39 }
 0x5da   :  { %4988 = vmatpush3.bf16.msra.mxu1 %v5444_v21 }
 0x5db   :  { %4989 = vmatprep.subr.bf16.mxu1 %v5445_v10 }
 0x5dc   :  { %3380 = vmatpush1.bf16.msra.mxu0 %v5376_v9 }
 0x5dd   :  { %3381 = vmatprep.subr.bf16.mxu0 %v5381_v5 }
 0x5de   :  { %4990 = vmatpush3.bf16.msra.mxu1 %v5446_v22 }
 0x5df   :  { %4991 = vmatprep.subr.bf16.mxu1 %v5447_v23 }
 0x5e0   :  { %3382 = vmatpush1.bf16.msra.mxu0 %v5379_v49 }
 0x5e1   :  { %3383 = vmatprep.subr.bf16.mxu0 %v5384_v7 }
 0x5e4   :  { %3384 = vmatpush1.bf16.msra.mxu0 %v5382_v8 }
 0x5e5   :  { %3385 = vmatprep.subr.bf16.mxu0 %v5387_v26 }
 0x5e8   :  { %3386 = vmatpush1.bf16.msra.mxu0 %v5385_v27 }
 0x5e9   :  { %3387 = vmatprep.subr.bf16.mxu0 %v5390_v30 }
 0x5ec   :  { %3388 = vmatpush1.bf16.msra.mxu0 %v5388_v31 }
 0x5ed   :  { %3389 = vmatprep.subr.bf16.mxu0 %v5393_v32 }
 0x5f0   :  { %3390 = vmatpush1.bf16.msra.mxu0 %v5391_v34 }
 0x5f1   :  { %3391 = vmatprep.subr.bf16.mxu0 %v5396_v41 }
 0x5f4   :  { %3392 = vmatpush1.bf16.msra.mxu0 %v5394_v2 }
 0x5f5   :  { %3393 = vmatprep.subr.bf16.mxu0 %v5399_v37 }
 0x5f8   :  { %3394 = vmatpush1.bf16.msra.mxu0 %v5397_v40 }
 0x5f9   :  { %3395 = vmatprep.subr.bf16.mxu0 %v5402_v48 }
 0x5fc   :  { %3396 = vmatpush1.bf16.msra.mxu0 %v5400_v58 }
 0x5fd   :  { %3397 = vmatprep.subr.bf16.mxu0 %v5405_v42 }
 0x600   :  { %3398 = vmatpush1.bf16.msra.mxu0 %v5403_v59 }
 0x601   :  { %3399 = vmatprep.subr.bf16.mxu0 %v5408_v62  ;;  %v5449_v62 = vld [vmem:[%s7562_s13 + $0x68] sm:$0xff]  }
 0x604   :  { %3400 = vmatpush1.bf16.msra.mxu0 %v5406_v3 }
 0x605   :  { %3401 = vmatprep.subr.bf16.mxu0 %v5411_v63 }
 0x608   :  { %3402 = vmatpush1.bf16.msra.mxu0 %v5409_v4  ;;  %v5450_v4 = vld [vmem:[%s7562_s13 + $0x28] sm:$0xff]  }
 0x609   :  { %3403 = vmatprep.subr.bf16.mxu0 %v5414_v14 }
 0x60c   :  { %3404 = vmatpush1.bf16.msra.mxu0 %v5412_v15 }
 0x60d   :  { %3416 = vmatprep.subr.bf16.mxu0 %v5417_v45 }
 0x60f   :  { %3406 = vmatmul.mubr.bf16.vlgmr.msra.gmra.mrb[20].mxu0 %v6835_v18  ;;  %v5426_v18 = vld [vmem:[%s7648_s28 + $0x64c] ss:$12 sps:$4 sm:$0xff]  }
 0x610   :  { %3417 = vmatpush1.bf16.msra.mxu0 %v5415_v51  ;;  %3448 = vmatprep.mubr.bf16.mxu0 %v5506_v1  ;;  %v5451_v51 = vld [vmem:[%s7562_s13 + $0x70] sm:$0xff]  }
 0x611   :  { %3418 = vmatprep.subr.bf16.mxu0 %v5420_v52 }
 0x614   :  { %3419 = vmatpush1.bf16.msra.mxu0 %v5418_v50  ;;  %v5452_v50 = vld [vmem:[%s7562_s13 + $0x30] sm:$0xff]  }
 0x615   :  { %3420 = vmatprep.subr.bf16.mxu0 %v5423_v54  ;;  %v5453_v54 = vld [vmem:[%s7562_s13 + $0x78] sm:$0xff]  }
 0x618   :  { %3421 = vmatpush1.bf16.msra.mxu0 %v5421_v55  ;;  %v5454_v55 = vld [vmem:[%s7562_s13 + $0x38] sm:$0xff]  }
 0x619   :  { %3422 = vmatprep.subr.bf16.mxu0 %v5426_v18  ;;  %v5457_v18 = vld [vmem:[%s7564_s17 + $0x4] ss:$8 sps:$4 sm:$0xff]  }
 0x61c   :  { %3423 = vmatpush1.bf16.msra.mxu0 %v5424_v56 }
 0x61d   :  { %3424 = vmatprep.subr.bf16.mxu0 %v5429_v57 }
 0x620   :  { %3425 = vmatpush1.bf16.msra.mxu0 %v5427_v60 }
 0x621   :  { %3426 = vmatprep.subr.bf16.mxu0 %v5432_v28 }
 0x622   :  { %v4902_v0 = vpop.f32.mrb[32].mxu1 }
 0x623   :  { %v4903_v6 = vpop.f32.mrb[33].mxu1 }
 0x624   :  { %3427 = vmatpush1.bf16.msra.mxu0 %v5430_v36  ;;  %v4904_v17 = vadd.f32 %v4903_v6, %v4902_v0  ;;  %v4905_v43 = vpop.f32.mrb[34].mxu1  ;;  %v3664_v0 = vld [vmem:[%s7565_s11] sm:$0x3] }
 0x625   :  { %v4906_v53 = vpop.f32.mrb[35].mxu1  ;;  %3428 = vmatprep.subr.bf16.mxu0 %v5435_v61 }
 0x626   :  { %v4907_v46 = vadd.f32 %v4906_v53, %v4905_v43 }
 0x628   :  { %3429 = vmatpush1.bf16.msra.mxu0 %v5433_v29  ;;  %v3669_v29 = vrot.slane %v3664_v0, %v5932_v33 }
 0x629   :  { %3430 = vmatprep.subr.bf16.mxu0 %v5438_v47  ;;  %v3673_v47 = vrot.slane %v3664_v0, %v5781_v44 }
 0x62c   :  { %3431 = vmatpush1.bf16.msra.mxu0 %v5436_v11 }
 0x62f   :  { %3449 = vmatmul.mubr.bf16.vlgmr.msra.gmra.mrb[20].mxu0 %v6867_v25  ;;  %v2075_v25 = vld [vmem:[%s7563_s10] sm:$0x7] }
 0x630   :  { %v2088_v24 = vrot.slane %v2075_v25, %v5943_v38  ;;  %v5448_v38 = vld [vmem:[%s7562_s13 + $0x20] sm:$0xff]   ;;  %v2080_v6 = vrot.slane %v2075_v25, %v5932_v33  ;;  %v2084_v43 = vrot.slane %v2075_v25, %v5781_v44 }
 0x631   :  { %4992 = vmatpush3.bf16.msra.mxu1 %v5448_v38  ;;  %v5472_v38 = vld [vmem:[%s7564_s17 + $0x54] ss:$8 sps:$4 sm:$0xff]  }
 0x632   :  { %v3494_v5 = vadd.f32 %v4904_v17, %v2088_v24  ;;  %v3497_v26 = vadd.f32 %v4907_v46, %v2088_v24  ;;  %4993 = vmatprep.subr.bf16.mxu1 %v5449_v62  ;;  %v3680_v17 = vld [vmem:[%s7566_s12] sm:$0x3] }
 0x633   :  { %v3685_v11 = vrot.slane %v3680_v17, %v5932_v33  ;;  %v3689_v19 = vrot.slane %v3680_v17, %v5781_v44  ;;  %v5473_v62 = vld [vmem:[%s7564_s17 + $0x60] ss:$8 sps:$4 sm:$0xff]  }
 0x635   :  { %4994 = vmatpush3.bf16.msra.mxu1 %v5450_v4 }
 0x636   :  { %4995 = vmatprep.subr.bf16.mxu1 %v5451_v51 }
 0x639   :  { %4996 = vmatpush3.bf16.msra.mxu1 %v5452_v50 }
 0x63a   :  { %4997 = vmatprep.subr.bf16.mxu1 %v5453_v54 }
 0x63d   :  { %4998 = vmatpush3.bf16.msra.mxu1 %v5454_v55 }
 0x63e   :  { %4007 = vmatprep.subr.bf16.mxu1 %v5457_v18  ;;  %v4745_v18 = vld [vmem:[%s7570_s16] ss:$0 sm:$0xff] }
 0x642   :  { %v4924_v39 = vpop.f32.mrb[36].mxu1 }
 0x643   :  { %v4925_v9 = vpop.f32.mrb[37].mxu1 }
 0x644   :  { %v4926_v49 = vadd.f32 %v4925_v9, %v4924_v39  ;;  %v4927_v7 = vpop.f32.mrb[38].mxu1 }
 0x645   :  { %v4928_v8 = vpop.f32.mrb[39].mxu1 }
 0x646   :  { %v3535_v27 = vadd.f32 %v4926_v49, %v3494_v5  ;;  %v4929_v30 = vadd.f32 %v4928_v8, %v4927_v7 }
 0x648   :  { %v3538_v31 = vadd.f32 %v4929_v30, %v3497_v26 }
 0x662   :  { %v4946_v32 = vpop.f32.mrb[40].mxu1 }
 0x663   :  { %v4947_v34 = vpop.f32.mrb[41].mxu1 }
 0x664   :  { %v4948_v41 = vadd.f32 %v4947_v34, %v4946_v32  ;;  %v4949_v2 = vpop.f32.mrb[42].mxu1  ;;  %v5455_v32 = vld [vmem:[%s7564_s17] ss:$8 sps:$4 sm:$0xff]   ;;  %v5460_v34 = vld [vmem:[%s7564_s17 + $0x14] ss:$8 sps:$4 sm:$0xff]  }
 0x665   :  { %v4950_v37 = vpop.f32.mrb[43].mxu1 }
 0x666   :  { %v3576_v40 = vadd.f32 %v4948_v41, %v3535_v27  ;;  %v4951_v48 = vadd.f32 %v4950_v37, %v4949_v2  ;;  %v5458_v41 = vld [vmem:[%s7564_s17 + $0x10] ss:$8 sps:$4 sm:$0xff]   ;;  %v5463_v2 = vld [vmem:[%s7564_s17 + $0x24] ss:$8 sps:$4 sm:$0xff]   ;;  %v5461_v37 = vld [vmem:[%s7564_s17 + $0x20] ss:$8 sps:$4 sm:$0xff]  }
 0x668   :  { %v3579_v58 = vadd.f32 %v4951_v48, %v3538_v31  ;;  %v5469_v48 = vld [vmem:[%s7564_s17 + $0x44] ss:$8 sps:$4 sm:$0xff]  }
 0x683   :  { %v4968_v42 = vpop.f32.mrb[44].mxu1 }
 0x684   :  { %v4969_v59 = vpop.f32.mrb[45].mxu1 }
 0x685   :  { %v4970_v3 = vadd.f32 %v4969_v59, %v4968_v42  ;;  %v4971_v63 = vpop.f32.mrb[46].mxu1  ;;  %v5470_v42 = vld [vmem:[%s7564_s17 + $0x50] ss:$8 sps:$4 sm:$0xff]   ;;  %v5475_v59 = vld [vmem:[%s7564_s17 + $0x64] ss:$8 sps:$4 sm:$0xff]  }
 0x686   :  { %v4972_v14 = vpop.f32.mrb[47].mxu1 }
 0x687   :  { %v4973_v15 = vadd.f32 %v4972_v14, %v4971_v63  ;;  %v3617_v45 = vadd.f32 %v4970_v3, %v3576_v40  ;;  %v5466_v40 = vld [vmem:[%s7564_s17 + $0x34] ss:$8 sps:$4 sm:$0xff]   ;;  %v5476_v63 = vld [vmem:[%s7564_s17 + $0x70] ss:$8 sps:$4 sm:$0xff]   ;;  %v4727_v14 = vld [vmem:[%s7568_s14] ss:$0 sm:$0xff] }
 0x688   :  { %v5478_v3 = vld [vmem:[%s7564_s17 + $0x74] ss:$8 sps:$4 sm:$0xff]  }
 0x689   :  { %v3620_v52 = vadd.f32 %v4973_v15, %v3579_v58  ;;  %v5467_v58 = vld [vmem:[%s7564_s17 + $0x40] ss:$8 sps:$4 sm:$0xff]  }
 0x6a3   :  { %v3657_v56 = vpop.f32.mrb[48].mxu1 }
 0x6a4   :  { %v7397_v57 = vadd.f32 %v3657_v56, %v3617_v45  ;;  %v5084_v60 = vpop.f32.mrb[49].mxu1 }
 0x6a5   :  { %v3660_v28 = vpop.f32.mrb[50].mxu1 }
 0x6a6   :  { %v7399_v36 = vadd.f32 %v3660_v28, %v3620_v52  ;;  %v5085_v61 = vpop.f32.mrb[51].mxu1  ;;  %v4744_v52 = vld [vmem:[%s7569_s15] ss:$0 sm:$0xff] }
 0x702   :  { %v3450_v53 = vpop.f32.mrb[20].mxu0 }
 0x703   :  { %v5126_v46 = vadd.f32 %v3450_v53, %v2080_v6  ;;  %v3452_v13 = vpop.f32.mrb[21].mxu0  ;;  %v5480_v53 = vld [vmem:[%s7567_s19 + $0x8] sm:$0xff]  }
 0x704   :  { %v5127_v16 = vadd.f32 %v3452_v13, %v2084_v43  ;;  %v3454_v12 = vpop.f32.mrb[22].mxu0  ;;  %v5484_v13 = vld [vmem:[%s7567_s19 + $0x28] sm:$0xff]  }
 0x705   :  { %v3676_v20 = vmul.f32 %v5126_v46, %v3669_v29  ;;  %v5128_v21 = vadd.f32 %v3454_v12, %v2080_v6  ;;  %v3456_v10 = vpop.f32.mrb[23].mxu0  ;;  %v5482_v46 = vld [vmem:[%s7567_s19 + $0x18] sm:$0xff]   ;;  %v3915_v12 = vld [vmem:[%s7572_s18] sm:$0x3] }
 0x706   :  { %v3677_v22 = vmul.f32 %v5127_v16, %v3673_v47  ;;  %v5129_v23 = vadd.f32 %v3456_v10, %v2084_v43  ;;  %v5479_v43 = vld [vmem:[%s7567_s19] sm:$0xff]   ;;  %v5485_v16 = vld [vmem:[%s7567_s19 + $0x30] sm:$0xff]  }
 0x707   :  { %v3692_v24 = vadd.f32 %v3685_v11, %v3676_v20  ;;  %v3678_v25 = vmul.f32 %v5128_v21, %v3669_v29  ;;  %v3920_v20 = vrot.slane %v3915_v12, %v5932_v33  ;;  %v5487_v33 = vld [vmem:[%s7571_s21] sm:$0xff]  }
 0x708   :  { %v3693_v39 = vadd.f32 %v3689_v19, %v3677_v22  ;;  %v3679_v9 = vmul.f32 %v5129_v23, %v3673_v47  ;;  %v5481_v47 = vld [vmem:[%s7567_s19 + $0x10] sm:$0xff]   ;;  %v3924_v22 = vrot.slane %v3915_v12, %v5781_v44  ;;  %v5488_v44 = vld [vmem:[%s7571_s21 + $0x8] sm:$0xff]  }
 0x709   :  { %v3694_v5 = vadd.f32 %v3685_v11, %v3678_v25  ;;  %v3696_v7 = vmax.f32 %v3692_v24, 0.0  ;;  %v5483_v11 = vld [vmem:[%s7567_s19 + $0x20] sm:$0xff]  }
 0x70a   :  { %v3695_v49 = vadd.f32 %v3689_v19, %v3679_v9  ;;  %v3697_v26 = vmax.f32 %v3693_v39, 0.0  ;;  %v5486_v19 = vld [vmem:[%s7567_s19 + $0x38] sm:$0xff]  }
 0x70b   :  { %v3698_v8 = vmax.f32 %v3694_v5, 0.0 }
 0x70c   :  { %v3699_v27 = vmax.f32 %v3695_v49, 0.0 }
 0x70d   :  { %v3700_v30 = vpack.c.bf16 %v3698_v8, %v3696_v7 }
 0x70e   :  { %v3701_v31 = vpack.c.bf16 %v3699_v27, %v3697_v26 }
 0x710   :  { %3869 = vmatprep.mubr.bf16.mxu1 %v3701_v31 }
 0x711   :  { %3870 = vmatmul.mubr.bf16.vlgmr.msra.gmra.mrb[52].mxu1 %v3700_v30 }
 0x712   :  { %4008 = vmatpush1.bf16.msra.mxu1 %v5455_v32  ;;  %4039 = vmatprep.mubr.bf16.mxu1 %v5506_v1  ;;  %v5464_v1 = vld [vmem:[%s7564_s17 + $0x30] ss:$8 sps:$4 sm:$0xff]   ;;  %v4762_v32 = vld [vmem:[%s7573_s20] ss:$0 sm:$0xff] }
 0x713   :  { %4009 = vmatprep.subr.bf16.mxu1 %v5460_v34 }
 0x716   :  { %4010 = vmatpush1.bf16.msra.mxu1 %v5458_v41 }
 0x717   :  { %4011 = vmatprep.subr.bf16.mxu1 %v5463_v2 }
 0x71a   :  { %4012 = vmatpush1.bf16.msra.mxu1 %v5461_v37 }
 0x71b   :  { %4013 = vmatprep.subr.bf16.mxu1 %v5466_v40 }
 0x71e   :  { %4014 = vmatpush1.bf16.msra.mxu1 %v5464_v1 }
 0x71f   :  { %4015 = vmatprep.subr.bf16.mxu1 %v5469_v48 }
 0x722   :  { %4016 = vmatpush1.bf16.msra.mxu1 %v5467_v58 }
 0x723   :  { %4017 = vmatprep.subr.bf16.mxu1 %v5472_v38 }
 0x726   :  { %4018 = vmatpush1.bf16.msra.mxu1 %v5470_v42  ;;  %v5491_v42 = vld [vmem:[%s7574_s23] sm:$0xff]  }
 0x727   :  { %4019 = vmatprep.subr.bf16.mxu1 %v5475_v59  ;;  %v5492_v59 = vld [vmem:[%s7574_s23 + $0x8] sm:$0xff]  }
 0x72a   :  { %4020 = vmatpush1.bf16.msra.mxu1 %v5473_v62  ;;  %v4771_v62 = vld [vmem:[%s7575_s22] ss:$0 sm:$0xff] }
 0x72b   :  { %4021 = vmatprep.subr.bf16.mxu1 %v5478_v3 }
 0x72e   :  { %4022 = vmatpush1.bf16.msra.mxu1 %v5476_v63 }
 0x72f   :  { %5086 = vmatprep.subr.bf16.mxu1 %v5504_v35 }
 0x7e4   :  { %v4999_v4 = vpop.f32.mrb[52].mxu1 }
 0x7e5   :  { %v5000_v15 = vpop.f32.mrb[53].mxu1 }
 0x7e6   :  { %v5001_v45 = vadd.f32 %v5000_v15, %v4999_v4  ;;  %v5002_v51 = vpop.f32.mrb[54].mxu1 }
 0x7e7   :  { %v5003_v50 = vpop.f32.mrb[55].mxu1 }
 0x7e8   :  { %v3872_v54 = vadd.f32 %v5001_v45, %v4727_v14  ;;  %v5004_v55 = vadd.f32 %v5003_v50, %v5002_v51 }
 0x7ea   :  { %v3885_v56 = vmul.f32 %v4744_v52, %v3872_v54  ;;  %v3875_v60 = vadd.f32 %v5004_v55, %v4727_v14 }
 0x7ec   :  { %v3894_v28 = vadd.f32 %v4745_v18, %v3885_v56  ;;  %v3886_v61 = vmul.f32 %v4744_v52, %v3875_v60 }
 0x7ee   :  { %v3895_v0 = vadd.f32 %v4745_v18, %v3886_v61  ;;  %v3896_v6 = vmax.f32 %v3894_v28, 0.0 }
 0x7f0   :  { %v3897_v17 = vmax.f32 %v3895_v0, 0.0 }
 0x7f2   :  { %v3898_v29 = vpack.c.bf16 %v3897_v17, %v3896_v6 }
 0x7f4   :  { %4040 = vmatmul.mubr.bf16.vlgmr.msra.gmra.mrb[56].mxu1 %v3898_v29 }
 0x7f5   :  { %5087 = vmatpush3.bf16.msra.mxu1 %v5479_v43  ;;  %5102 = vmatprep.mubr.msk.bf16.mxu1 %vm7653_vm4, %v5504_v35 }
 0x7f6   :  { %5088 = vmatprep.subr.bf16.mxu1 %v5504_v35 }
 0x7f9   :  { %5089 = vmatpush3.bf16.msra.mxu1 %v5480_v53 }
 0x7fa   :  { %5090 = vmatprep.subr.bf16.mxu1 %v5504_v35 }
 0x7fd   :  { %5091 = vmatpush3.bf16.msra.mxu1 %v5481_v47 }
 0x7fe   :  { %5092 = vmatprep.subr.bf16.mxu1 %v5504_v35 }
 0x801   :  { %5093 = vmatpush3.bf16.msra.mxu1 %v5482_v46 }
 0x802   :  { %5094 = vmatprep.subr.bf16.mxu1 %v5504_v35 }
 0x805   :  { %5095 = vmatpush3.bf16.msra.mxu1 %v5483_v11 }
 0x806   :  { %5096 = vmatprep.subr.bf16.mxu1 %v5504_v35 }
 0x809   :  { %5097 = vmatpush3.bf16.msra.mxu1 %v5484_v13 }
 0x80a   :  { %5098 = vmatprep.subr.bf16.mxu1 %v5504_v35 }
 0x80d   :  { %5099 = vmatpush3.bf16.msra.mxu1 %v5485_v16 }
 0x80e   :  { %5100 = vmatprep.subr.bf16.mxu1 %v5504_v35 }
 0x811   :  { %5101 = vmatpush3.bf16.msra.mxu1 %v5486_v19 }
 0x812   :  { %5106 = vmatprep.subr.bf16.mxu1 %v5504_v35 }
 0x8c7   :  { %v4041_v21 = vpop.f32.mrb[56].mxu1 }
 0x8c8   :  { %v4042_v10 = vadd.f32 %v4041_v21, %v3920_v20  ;;  %v4043_v23 = vpop.f32.mrb[57].mxu1 }
 0x8c9   :  { %v4045_v24 = vpop.f32.mrb[58].mxu1  ;;  %v4044_v49 = vadd.f32 %v4043_v23, %v3924_v22 }
 0x8ca   :  { %v4050_v25 = vmax.f32 %v4042_v10, 0.0  ;;  %v4046_v39 = vadd.f32 %v4045_v24, %v3920_v20  ;;  %v4047_v9 = vpop.f32.mrb[59].mxu1 }
 0x8cb   :  { %v4048_v27 = vadd.f32 %v4047_v9, %v3924_v22 }
 0x8cc   :  { %v4052_v5 = vadd.f32 %v4050_v25, %v7397_v57  ;;  %v4051_v7 = vmax.f32 %v4046_v39, 0.0  ;;  %v5489_v57 = vld [vmem:[%s7571_s21 + $0x10] sm:$0xff]  }
 0x8ce   :  { %v4054_v8 = vadd.f32 %v4052_v5, %v4044_v49  ;;  %v4053_v26 = vadd.f32 %v4051_v7, %v7399_v36  ;;  %v5490_v36 = vld [vmem:[%s7571_s21 + $0x18] sm:$0xff]  }
 0x8d0   :  { %v4055_v30 = vadd.f32 %v4053_v26, %v4048_v27 }
 0x8d2   :  { %v4056_v31 = vpack.c.bf16 %v4055_v30, %v4054_v8 }
 0x8d4   :  { %5103 = vmatmul.mubr.bf16.vlgmr.msra.gmra.mrb[60].mxu1 %v4056_v31 }
 0x8d5   :  { %5107 = vmatpush3.bf16.msra.mxu1 %v5487_v33  ;;  %5114 = vmatprep.mubr.msk.bf16.mxu1 %vm7653_vm4, %v5504_v35 }
 0x8d6   :  { %5108 = vmatprep.subr.bf16.mxu1 %v5504_v35 }
 0x8d9   :  { %5109 = vmatpush3.bf16.msra.mxu1 %v5488_v44 }
 0x8da   :  { %5110 = vmatprep.subr.bf16.mxu1 %v5504_v35 }
 0x8dd   :  { %5111 = vmatpush3.bf16.msra.mxu1 %v5489_v57 }
 0x8de   :  { %5112 = vmatprep.subr.bf16.mxu1 %v5504_v35 }
 0x8e1   :  { %5113 = vmatpush3.bf16.msra.mxu1 %v5490_v36 }
 0x8e2   :  { %5118 = vmatprep.subr.bf16.mxu1 %v5504_v35 }
 0x9a7   :  { %v4162_v34 = vpop.f32.mrb[60].mxu1 }
 0x9a8   :  { %v4163_v41 = vadd.f32 %v4762_v32, %v4162_v34  ;;  %v5104_v2 = vpop.f32.mrb[61].mxu1 }
 0x9a9   :  { %v4165_v37 = vpop.f32.mrb[62].mxu1 }
 0x9aa   :  { %v4166_v40 = vadd.f32 %v4762_v32, %v4165_v37  ;;  %v5105_v1 = vpop.f32.mrb[63].mxu1  ;;  %v4169_v48 = vmax.f32 %v4163_v41, 0.0 }
 0x9ac   :  { %v4170_v58 = vmax.f32 %v4166_v40, 0.0 }
 0x9ae   :  { %v4171_v38 = vpack.c.bf16 %v4170_v58, %v4169_v48 }
 0x9b0   :  { %5115 = vmatmul.mubr.msk.bf16.vlgmr.msra.gmra.mrb[64].mxu1 %vm4211_vm8, %v4171_v38 }
 0x9b1   :  { %5122 = vmatprep.mubr.msk.bf16.mxu1 %vm7653_vm4, %v5504_v35  ;;  %5119 = vmatpush3.bf16.msra.mxu1 %v5491_v42 }
 0x9b2   :  { %5120 = vmatprep.subr.bf16.mxu1 %v5504_v35  ;;  %v4777_v35 = vld [vmem:[%s7576_s24] ss:$0 sm:$0xff] }
 0x9b5   :  { %5121 = vmatpush3.bf16.msra.mxu1 %v5492_v59 }
 0xa83   :  { %v4249_v3 = vpop.f32.mrb[64].mxu1 }
 0xa84   :  { %v4250_v63 = vadd.f32 %v4771_v62, %v4249_v3  ;;  %v5116_v4 = vpop.f32.mrb[65].mxu1 }
 0xa85   :  { %v4252_v14 = vpop.f32.mrb[66].mxu1 }
 0xa86   :  { %v4253_v15 = vadd.f32 %v4771_v62, %v4252_v14  ;;  %v5117_v45 = vpop.f32.mrb[67].mxu1  ;;  %v4256_v51 = vmax.f32 %v4250_v63, 0.0 }
 0xa88   :  { %v4257_v52 = vmax.f32 %v4253_v15, 0.0 }
 0xa8a   :  { %v4258_v50 = vpack.c.bf16 %v4257_v52, %v4256_v51 }
 0xa8c   :  { %5123 = vmatmul.mubr.msk.bf16.vlgmr.msra.gmra.mrb[68].mxu1 %vm4282_vm1, %v4258_v50 }
 0xb5f   :  { %v4320_v54 = vpop.f32.mrb[68].mxu1 }
 0xb60   :  { %v4321_v55 = vadd.f32 %v4777_v35, %v4320_v54  ;;  %v5124_v18 = vpop.f32.mrb[69].mxu1 }
 0xb61   :  { %v4323_v56 = vpop.f32.mrb[70].mxu1 }
 0xb62   :  { %4327 = vst [vmem:[%s7577_s25] sm:$0xff] %v4321_v55  ;;  %v4324_v60 = vadd.f32 %v4777_v35, %v4323_v56  ;;  %v5125_v28 = vpop.f32.mrb[71].mxu1 }
 0xb64   :  { %4328 = vst [vmem:[%s7577_s25 + $0x8] sm:$0xff] %v4324_v60 }

</bundles_post_ra>
